<compile_context>
chip_gen: v7x
topology: tpu7x:2x2x1
jax: 0.10.0
libtpu: 0.0.40
codegen_flags: <defaults>
</compile_context>

<pallas_src>
import math
import jax
import jax.numpy as jnp
from jax.experimental import pallas as pl
from jax.experimental.pallas import tpu as pltpu

# ---- scaled-down AST dims (real AST: T=1024, mel=128, D=768, H=12, 12 layers) ----
B = 2
T_FRAMES = 64
N_MELS = 32
PATCH = 16
F_STRIDE = 10
T_STRIDE = 10
D = 64            # hidden size
H = 4             # attention heads
DH = D // H
HP = 128          # per-head width padded to one full lane group (lane-aligned slices)
FFN = 4 * D
NUM_LAYERS = 2
NUM_CLASSES = 14
C_PAD = 128       # classifier output padded to a full lane group (sliced to 14 outside)
LN_EPS = 1e-12

F_OUT = (N_MELS - PATCH) // F_STRIDE + 1
T_OUT = (T_FRAMES - PATCH) // T_STRIDE + 1
N_PATCHES = F_OUT * T_OUT
SEQ = N_PATCHES + 2            # +cls +distillation tokens
N_ROWS = B * SEQ
NEG_INF = -1e30


# ------------------------------- in-kernel helpers -------------------------------
def _layer_norm(x, w, b):
    mu = jnp.mean(x, axis=-1, keepdims=True)
    var = jnp.mean((x - mu) * (x - mu), axis=-1, keepdims=True)
    return (x - mu) * jax.lax.rsqrt(var + LN_EPS) * w + b


_SQRT_2_OVER_PI = 0.7978845608028654


def _gelu(x):
    # tanh-approximate GELU (jnp.tanh -> EUP). HF AST uses the exact erf GELU; the
    # approximation differs by <1e-3 which is immaterial for classification.
    return 0.5 * x * (1.0 + jnp.tanh(_SQRT_2_OVER_PI * (x + 0.044715 * x * x * x)))


# --------------------------------- fused kernel ----------------------------------
def _fused_ast_kernel(patches_ref, pw_ref, emb_ref, bias_ref,
                      wqkv_ref, bqkv_ref, wo_ref, w1_ref, b1_ref, w2_ref, vec_ref,
                      fln_ref, pool_ref, cw_ref, cb_ref, out_ref):
    # ---- patch embedding + (cls/dist tokens + position emb + conv bias) in one matmul+add ----
    x = jnp.dot(patches_ref[...].astype(jnp.bfloat16), pw_ref[...],
                preferred_element_type=jnp.float32) + emb_ref[...]          # (N_ROWS, D) f32
    attn_bias = bias_ref[...]                                               # (N_ROWS, N_ROWS)

    for l in range(NUM_LAYERS):                        # static unroll (2 layers)
        wqkv = wqkv_ref[l]                             # (D, 3*H*HP) bf16, q cols pre-scaled
        bqkv = bqkv_ref[l]                             # (1, 3*H*HP) f32
        wo = wo_ref[l]                                 # (H*HP, D) bf16, zero-padded rows
        w1 = w1_ref[l]                                 # (D, FFN) bf16
        b1 = b1_ref[l]                                 # (1, FFN) f32
        w2 = w2_ref[l]                                 # (FFN, D) bf16
        vec = vec_ref[l]                               # (6, D) packed f32 vectors
        ln1w, ln1b, bo = vec[0:1, :], vec[1:2, :], vec[2:3, :]
        ln2w, ln2b, b2 = vec[3:4, :], vec[4:5, :], vec[5:6, :]

        # --- multi-head self-attention (pre-LN), heads packed into 128-lane blocks ---
        h = _layer_norm(x, ln1w, ln1b)
        qkv = jnp.dot(h.astype(jnp.bfloat16), wqkv,
                      preferred_element_type=jnp.float32) + bqkv            # (N_ROWS, 3*H*HP)

        attn_out = jnp.zeros((N_ROWS, D), jnp.float32)
        for hi in range(H):
            # all slices are at 128-lane boundaries (full-vreg extracts)
            q = qkv[:, hi * HP:(hi + 1) * HP]
            k = qkv[:, (H + hi) * HP:(H + hi + 1) * HP]
            v = qkv[:, (2 * H + hi) * HP:(2 * H + hi + 1) * HP]
            s = jax.lax.dot_general(q, k, (((1,), (1,)), ((), ())),
                                    preferred_element_type=jnp.float32) + attn_bias
            p = jnp.exp(s - jnp.max(s, axis=-1, keepdims=True))
            attn = p * pl.reciprocal(jnp.sum(p, axis=-1, keepdims=True),
                                     approx=True)        # attention dropout = identity
            ctx = jnp.dot(attn, v, preferred_element_type=jnp.float32)      # (N_ROWS, HP)
            # accumulating per-head ctx @ wo[row-block] == concat(ctx_heads) @ wo
            attn_out = attn_out + jnp.dot(ctx.astype(jnp.bfloat16),
                                          wo[hi * HP:(hi + 1) * HP, :],
                                          preferred_element_type=jnp.float32)
        x = x + attn_out + bo                            # residual 1

        # --- MLP ---
        h2 = _layer_norm(x, ln2w, ln2b)
        ff = _gelu(jnp.dot(h2.astype(jnp.bfloat16), w1,
                           preferred_element_type=jnp.float32) + b1)
        x = x + jnp.dot(ff.astype(jnp.bfloat16), w2,
                        preferred_element_type=jnp.float32) + b2            # residual 2

    # ---- final LayerNorm + per-batch mean pool as ONE matmul + classifier, one full store ----
    fln = fln_ref[...]                                   # (2, D): [weight, bias]
    xn = _layer_norm(x, fln[0:1, :], fln[1:2, :])
    pooled = jnp.dot(pool_ref[...], xn, preferred_element_type=jnp.float32)  # (B, D)
    out_ref[...] = jnp.dot(pooled.astype(jnp.bfloat16), cw_ref[...],
                           preferred_element_type=jnp.float32) + cb_ref[...]


def _fused_forward(patches, p):
    args = (patches, p['patch_w'], p['emb_bias'], p['attn_bias'],
            p['wqkv'], p['bqkv'], p['wo'], p['w1'], p['b1'], p['w2'], p['vec'],
            p['final_ln'], p['pool'], p['cls_w'], p['cls_b'])
    vmem = pl.BlockSpec(memory_space=pltpu.MemorySpace.VMEM)
    out = pl.pallas_call(
        _fused_ast_kernel,
        out_shape=jax.ShapeDtypeStruct((B, C_PAD), jnp.float32),
        in_specs=[vmem] * len(args),
        out_specs=vmem,
    )(*args)
    return out[:, :NUM_CLASSES]


# ------------------------------- parameter init ----------------------------------
def init_params(key):
    def nrm(k, shape, scale=0.02):
        return (scale * jax.random.normal(k, shape)).astype(jnp.float32)

    keys = iter(jax.random.split(key, 5 + 6 * NUM_LAYERS))

    patch_w = nrm(next(keys), (PATCH * PATCH, D))   # Conv2d(1, D, 16, stride=(10,10)) flattened
    patch_b = jnp.zeros((1, D), jnp.float32)
    cls_token = nrm(next(keys), (1, D))
    dist_token = nrm(next(keys), (1, D))
    pos_emb = nrm(next(keys), (SEQ, D))
    cls_w_raw = nrm(next(keys), (D, NUM_CLASSES))   # nn.Linear(hidden, 14)

    # fold cls/dist tokens, position embedding and the conv bias into one additive
    # per-row embedding, tiled over the batch (row index = b*SEQ + s)
    emb_rows = jnp.concatenate([pos_emb[0:1] + cls_token,
                                pos_emb[1:2] + dist_token,
                                pos_emb[2:] + patch_b], axis=0)            # (SEQ, D)
    emb_bias = jnp.tile(emb_rows, (B, 1))                                  # (N_ROWS, D)

    # additive block-diagonal attention bias: different batch items never attend
    row_b = jnp.arange(N_ROWS)[:, None] // SEQ
    col_b = jnp.arange(N_ROWS)[None, :] // SEQ
    attn_bias = jnp.where(row_b == col_b, 0.0, NEG_INF).astype(jnp.float32)

    # per-batch mean-pool matrix: pooled = pool @ xn  (1/SEQ on the block diagonal)
    pool = jnp.repeat(jnp.eye(B, dtype=jnp.float32), SEQ, axis=1) / SEQ    # (B, N_ROWS)

    att_scale = 1.0 / math.sqrt(DH)
    ones_d = jnp.ones((D,), jnp.float32)
    zeros_d = jnp.zeros((D,), jnp.float32)
    wqkv_l, wo_l, w1_l, w2_l, vec_l = [], [], [], [], []
    for _ in range(NUM_LAYERS):
        wq = nrm(next(keys), (D, D)) * att_scale    # 1/sqrt(DH) folded into q projection
        wk = nrm(next(keys), (D, D))
        wv = nrm(next(keys), (D, D))
        wo = nrm(next(keys), (D, D))
        w1 = nrm(next(keys), (D, FFN))
        w2 = nrm(next(keys), (FFN, D))

        # pack q/k/v of each head into its own zero-padded 128-lane block; pad wo rows too
        wqkv = jnp.zeros((D, 3 * H * HP), jnp.float32)
        wo_pad = jnp.zeros((H * HP, D), jnp.float32)
        for hi in range(H):
            wqkv = wqkv.at[:, hi * HP:hi * HP + DH].set(wq[:, hi * DH:(hi + 1) * DH])
            wqkv = wqkv.at[:, (H + hi) * HP:(H + hi) * HP + DH].set(wk[:, hi * DH:(hi + 1) * DH])
            wqkv = wqkv.at[:, (2 * H + hi) * HP:(2 * H + hi) * HP + DH].set(
                wv[:, hi * DH:(hi + 1) * DH])
            wo_pad = wo_pad.at[hi * HP:hi * HP + DH, :].set(wo[hi * DH:(hi + 1) * DH, :])

        wqkv_l.append(wqkv.astype(jnp.bfloat16))
        wo_l.append(wo_pad.astype(jnp.bfloat16))
        w1_l.append(w1.astype(jnp.bfloat16))
        w2_l.append(w2.astype(jnp.bfloat16))
        # packed per-layer vectors: [ln1_w, ln1_b, attn_out_bias, ln2_w, ln2_b, mlp_out_bias]
        vec_l.append(jnp.stack([ones_d, zeros_d, zeros_d, ones_d, zeros_d, zeros_d]))

    cls_w = jnp.zeros((D, C_PAD), jnp.float32).at[:, :NUM_CLASSES].set(cls_w_raw)

    return {
        'patch_w': patch_w.astype(jnp.bfloat16),        # (256, D) bf16
        'emb_bias': emb_bias,                           # (N_ROWS, D) f32
        'attn_bias': attn_bias,                         # (N_ROWS, N_ROWS) f32
        'pool': pool,                                   # (B, N_ROWS) f32
        'wqkv': jnp.stack(wqkv_l),                      # (L, D, 3*H*HP) bf16
        'bqkv': jnp.zeros((NUM_LAYERS, 1, 3 * H * HP), jnp.float32),
        'wo': jnp.stack(wo_l),                          # (L, H*HP, D) bf16
        'w1': jnp.stack(w1_l),                          # (L, D, FFN) bf16
        'b1': jnp.zeros((NUM_LAYERS, 1, FFN), jnp.float32),
        'w2': jnp.stack(w2_l),                          # (L, FFN, D) bf16
        'vec': jnp.stack(vec_l),                        # (L, 6, D) f32
        'final_ln': jnp.stack([ones_d, zeros_d]),       # (2, D) f32
        'cls_w': cls_w.astype(jnp.bfloat16),            # (D, C_PAD) bf16
        'cls_b': jnp.zeros((1, C_PAD), jnp.float32),
    }


# ----------------------------------- forward -------------------------------------
@jax.jit
def ast_classifier_forward(input_values, params):
    # input_values: (B, T_FRAMES, N_MELS) log-mel features (ASTFeatureExtractor output)
    # (B, 1, N_MELS, T_FRAMES) ~ NCHW with C=1, matching HF's unsqueeze(1).transpose(2,3)
    spec = jnp.transpose(input_values, (0, 2, 1))[:, None, :, :]
    # single-op im2col matching Conv2d(1, D, 16, stride=(10,10)).flatten(2).transpose(1,2)
    patches = jax.lax.conv_general_dilated_patches(
        spec, filter_shape=(PATCH, PATCH),
        window_strides=(F_STRIDE, T_STRIDE), padding='VALID')   # (B, 256, F_OUT, T_OUT)
    patches = patches.reshape(B, PATCH * PATCH, N_PATCHES)
    patches = jnp.transpose(patches, (0, 2, 1))                 # (B, N_PATCHES, 256) freq-major
    # prepend two zero rows per batch item (cls/dist slots) so the fused kernel builds
    # the whole (B*SEQ, D) token matrix with a single matmul + add
    patches = jnp.pad(patches, ((0, 0), (SEQ - N_PATCHES, 0), (0, 0)))
    patches = patches.reshape(N_ROWS, PATCH * PATCH)            # (B*SEQ, 256)

    return _fused_forward(patches, params)                      # (B, NUM_CLASSES) logits


if __name__ == "__main__":
    key = jax.random.PRNGKey(0)
    k_param, k_input = jax.random.split(key)
    params = init_params(k_param)
    # deterministic synthetic log-mel features (stands in for the processor output)
    input_values = jax.random.normal(k_input, (B, T_FRAMES, N_MELS), jnp.float32)

    logits = jax.block_until_ready(ast_classifier_forward(input_values, params))
    assert logits.shape == (B, NUM_CLASSES) and logits.dtype == jnp.float32
    assert bool(jnp.all(jnp.isfinite(logits)))
    print("KERNEL_OK")
</pallas_src>

<mosaic_0001>
module attributes {stable_mosaic.version = 11 : i64} {
  func.func @_fused_ast_kernel(%arg0: memref<24x256xf32, #tpu.memory_space<vmem>>, %arg1: memref<256x64xbf16, #tpu.memory_space<vmem>>, %arg2: memref<24x64xf32, #tpu.memory_space<vmem>>, %arg3: memref<24x24xf32, #tpu.memory_space<vmem>>, %arg4: memref<2x64x1536xbf16, #tpu.memory_space<vmem>>, %arg5: memref<2x1x1536xf32, #tpu.memory_space<vmem>>, %arg6: memref<2x512x64xbf16, #tpu.memory_space<vmem>>, %arg7: memref<2x64x256xbf16, #tpu.memory_space<vmem>>, %arg8: memref<2x1x256xf32, #tpu.memory_space<vmem>>, %arg9: memref<2x256x64xbf16, #tpu.memory_space<vmem>>, %arg10: memref<2x6x64xf32, #tpu.memory_space<vmem>>, %arg11: memref<2x64xf32, #tpu.memory_space<vmem>>, %arg12: memref<2x24xf32, #tpu.memory_space<vmem>>, %arg13: memref<64x128xbf16, #tpu.memory_space<vmem>>, %arg14: memref<1x128xf32, #tpu.memory_space<vmem>>, %arg15: memref<2x128xf32, #tpu.memory_space<vmem>>) attributes {dimension_semantics = [], scalar_prefetch = 0 : i64, scratch_operands = 0 : i64, tpu.core_type = #tpu.core_type<tc>} {
    %c0 = arith.constant 0 : index
    %c0_0 = arith.constant 0 : index
    %0 = vector.load %arg0[%c0, %c0_0] : memref<24x256xf32, #tpu.memory_space<vmem>>, vector<24x256xf32>
    %1 = arith.truncf %0 : vector<24x256xf32> to vector<24x256xbf16>
    %c0_1 = arith.constant 0 : index
    %c0_2 = arith.constant 0 : index
    %2 = vector.load %arg1[%c0_1, %c0_2] : memref<256x64xbf16, #tpu.memory_space<vmem>>, vector<256x64xbf16>
    %cst = arith.constant dense<0.000000e+00> : vector<24x64xf32>
    %3 = tpu.matmul %1, %2, %cst {dimension_numbers = #tpu.dot_dimension_numbers<[1], [0], [0], [1], [0, 0, 1, 1], [], []>} : vector<24x256xbf16>, vector<256x64xbf16>, vector<24x64xf32> -> vector<24x64xf32>
    %c0_3 = arith.constant 0 : index
    %c0_4 = arith.constant 0 : index
    %4 = vector.load %arg2[%c0_3, %c0_4] : memref<24x64xf32, #tpu.memory_space<vmem>>, vector<24x64xf32>
    %5 = arith.addf %3, %4 : vector<24x64xf32>
    %c0_5 = arith.constant 0 : index
    %c0_6 = arith.constant 0 : index
    %6 = vector.load %arg3[%c0_5, %c0_6] : memref<24x24xf32, #tpu.memory_space<vmem>>, vector<24x24xf32>
    %c0_7 = arith.constant 0 : index
    %c0_8 = arith.constant 0 : index
    %c0_9 = arith.constant 0 : index
    %7 = vector.load %arg4[%c0_7, %c0_8, %c0_9] : memref<2x64x1536xbf16, #tpu.memory_space<vmem>>, vector<1x64x1536xbf16>
    %8 = vector.shape_cast %7 : vector<1x64x1536xbf16> to vector<64x1536xbf16>
    %c0_10 = arith.constant 0 : index
    %c0_11 = arith.constant 0 : index
    %c0_12 = arith.constant 0 : index
    %9 = vector.load %arg5[%c0_10, %c0_11, %c0_12] : memref<2x1x1536xf32, #tpu.memory_space<vmem>>, vector<1x1x1536xf32>
    %10 = vector.shape_cast %9 : vector<1x1x1536xf32> to vector<1x1536xf32>
    %c0_13 = arith.constant 0 : index
    %c0_14 = arith.constant 0 : index
    %c0_15 = arith.constant 0 : index
    %11 = vector.load %arg6[%c0_13, %c0_14, %c0_15] : memref<2x512x64xbf16, #tpu.memory_space<vmem>>, vector<1x512x64xbf16>
    %12 = vector.shape_cast %11 : vector<1x512x64xbf16> to vector<512x64xbf16>
    %c0_16 = arith.constant 0 : index
    %c0_17 = arith.constant 0 : index
    %c0_18 = arith.constant 0 : index
    %13 = vector.load %arg7[%c0_16, %c0_17, %c0_18] : memref<2x64x256xbf16, #tpu.memory_space<vmem>>, vector<1x64x256xbf16>
    %14 = vector.shape_cast %13 : vector<1x64x256xbf16> to vector<64x256xbf16>
    %c0_19 = arith.constant 0 : index
    %c0_20 = arith.constant 0 : index
    %c0_21 = arith.constant 0 : index
    %15 = vector.load %arg8[%c0_19, %c0_20, %c0_21] : memref<2x1x256xf32, #tpu.memory_space<vmem>>, vector<1x1x256xf32>
    %16 = vector.shape_cast %15 : vector<1x1x256xf32> to vector<1x256xf32>
    %c0_22 = arith.constant 0 : index
    %c0_23 = arith.constant 0 : index
    %c0_24 = arith.constant 0 : index
    %17 = vector.load %arg9[%c0_22, %c0_23, %c0_24] : memref<2x256x64xbf16, #tpu.memory_space<vmem>>, vector<1x256x64xbf16>
    %18 = vector.shape_cast %17 : vector<1x256x64xbf16> to vector<256x64xbf16>
    %c0_25 = arith.constant 0 : index
    %c0_26 = arith.constant 0 : index
    %c0_27 = arith.constant 0 : index
    %19 = vector.load %arg10[%c0_25, %c0_26, %c0_27] : memref<2x6x64xf32, #tpu.memory_space<vmem>>, vector<1x6x64xf32>
    %20 = vector.shape_cast %19 : vector<1x6x64xf32> to vector<6x64xf32>
    %21 = vector.extract_strided_slice %20 {offsets = [0, 0], sizes = [1, 64], strides = [1, 1]} : vector<6x64xf32> to vector<1x64xf32>
    %22 = vector.extract_strided_slice %20 {offsets = [1, 0], sizes = [1, 64], strides = [1, 1]} : vector<6x64xf32> to vector<1x64xf32>
    %23 = vector.extract_strided_slice %20 {offsets = [2, 0], sizes = [1, 64], strides = [1, 1]} : vector<6x64xf32> to vector<1x64xf32>
    %24 = vector.extract_strided_slice %20 {offsets = [3, 0], sizes = [1, 64], strides = [1, 1]} : vector<6x64xf32> to vector<1x64xf32>
    %25 = vector.extract_strided_slice %20 {offsets = [4, 0], sizes = [1, 64], strides = [1, 1]} : vector<6x64xf32> to vector<1x64xf32>
    %26 = vector.extract_strided_slice %20 {offsets = [5, 0], sizes = [1, 64], strides = [1, 1]} : vector<6x64xf32> to vector<1x64xf32>
    %cst_28 = arith.constant dense<0.000000e+00> : vector<24xf32>
    %27 = vector.multi_reduction <add>, %5, %cst_28 [1] : vector<24x64xf32> to vector<24xf32>
    %28 = vector.shape_cast %27 : vector<24xf32> to vector<24x1xf32>
    %cst_29 = arith.constant 6.400000e+01 : f32
    %29 = vector.broadcast %cst_29 : f32 to vector<24x1xf32>
    %30 = arith.divf %28, %29 : vector<24x1xf32>
    %31 = vector.broadcast %30 : vector<24x1xf32> to vector<24x64xf32>
    %32 = arith.subf %5, %31 : vector<24x64xf32>
    %33 = vector.broadcast %30 : vector<24x1xf32> to vector<24x64xf32>
    %34 = arith.subf %5, %33 : vector<24x64xf32>
    %35 = arith.mulf %32, %34 : vector<24x64xf32>
    %cst_30 = arith.constant dense<0.000000e+00> : vector<24xf32>
    %36 = vector.multi_reduction <add>, %35, %cst_30 [1] : vector<24x64xf32> to vector<24xf32>
    %37 = vector.shape_cast %36 : vector<24xf32> to vector<24x1xf32>
    %cst_31 = arith.constant 6.400000e+01 : f32
    %38 = vector.broadcast %cst_31 : f32 to vector<24x1xf32>
    %39 = arith.divf %37, %38 : vector<24x1xf32>
    %40 = vector.broadcast %30 : vector<24x1xf32> to vector<24x64xf32>
    %41 = arith.subf %5, %40 : vector<24x64xf32>
    %cst_32 = arith.constant 9.99999996E-13 : f32
    %42 = vector.broadcast %cst_32 : f32 to vector<24x1xf32>
    %43 = arith.addf %39, %42 : vector<24x1xf32>
    %44 = math.rsqrt %43 : vector<24x1xf32>
    %45 = vector.broadcast %44 : vector<24x1xf32> to vector<24x64xf32>
    %46 = arith.mulf %41, %45 : vector<24x64xf32>
    %47 = vector.broadcast %21 : vector<1x64xf32> to vector<24x64xf32>
    %48 = arith.mulf %46, %47 : vector<24x64xf32>
    %49 = vector.broadcast %22 : vector<1x64xf32> to vector<24x64xf32>
    %50 = arith.addf %48, %49 : vector<24x64xf32>
    %51 = arith.truncf %50 : vector<24x64xf32> to vector<24x64xbf16>
    %cst_33 = arith.constant dense<0.000000e+00> : vector<24x1536xf32>
    %52 = tpu.matmul %51, %8, %cst_33 {dimension_numbers = #tpu.dot_dimension_numbers<[1], [0], [0], [1], [0, 0, 1, 1], [], []>} : vector<24x64xbf16>, vector<64x1536xbf16>, vector<24x1536xf32> -> vector<24x1536xf32>
    %53 = vector.broadcast %10 : vector<1x1536xf32> to vector<24x1536xf32>
    %54 = arith.addf %52, %53 : vector<24x1536xf32>
    %cst_34 = arith.constant 0.000000e+00 : f32
    %55 = vector.broadcast %cst_34 : f32 to vector<24x64xf32>
    %56 = vector.extract_strided_slice %54 {offsets = [0, 0], sizes = [24, 128], strides = [1, 1]} : vector<24x1536xf32> to vector<24x128xf32>
    %57 = vector.extract_strided_slice %54 {offsets = [0, 512], sizes = [24, 128], strides = [1, 1]} : vector<24x1536xf32> to vector<24x128xf32>
    %58 = vector.extract_strided_slice %54 {offsets = [0, 1024], sizes = [24, 128], strides = [1, 1]} : vector<24x1536xf32> to vector<24x128xf32>
    %cst_35 = arith.constant dense<0.000000e+00> : vector<24x24xf32>
    %59 = tpu.matmul %56, %57, %cst_35 {dimension_numbers = #tpu.dot_dimension_numbers<[1], [1], [0], [0], [0, 0, 1, 0], [], []>} : vector<24x128xf32>, vector<24x128xf32>, vector<24x24xf32> -> vector<24x24xf32>
    %60 = arith.addf %59, %6 : vector<24x24xf32>
    %cst_36 = arith.constant dense<0xFF800000> : vector<24xf32>
    %61 = vector.multi_reduction <maximumf>, %60, %cst_36 [1] : vector<24x24xf32> to vector<24xf32>
    %62 = vector.shape_cast %61 : vector<24xf32> to vector<24x1xf32>
    %63 = vector.broadcast %62 : vector<24x1xf32> to vector<24x24xf32>
    %64 = arith.subf %60, %63 : vector<24x24xf32>
    %65 = math.exp %64 : vector<24x24xf32>
    %cst_37 = arith.constant dense<0.000000e+00> : vector<24xf32>
    %66 = vector.multi_reduction <add>, %65, %cst_37 [1] : vector<24x24xf32> to vector<24xf32>
    %67 = vector.shape_cast %66 : vector<24xf32> to vector<24x1xf32>
    %68 = tpu.reciprocal %67 {approx = true} : vector<24x1xf32> -> vector<24x1xf32>
    %69 = vector.broadcast %68 : vector<24x1xf32> to vector<24x24xf32>
    %70 = arith.mulf %65, %69 : vector<24x24xf32>
    %cst_38 = arith.constant dense<0.000000e+00> : vector<24x128xf32>
    %71 = tpu.matmul %70, %58, %cst_38 {dimension_numbers = #tpu.dot_dimension_numbers<[1], [0], [0], [1], [0, 0, 1, 1], [], []>} : vector<24x24xf32>, vector<24x128xf32>, vector<24x128xf32> -> vector<24x128xf32>
    %72 = arith.truncf %71 : vector<24x128xf32> to vector<24x128xbf16>
    %73 = vector.extract_strided_slice %12 {offsets = [0, 0], sizes = [128, 64], strides = [1, 1]} : vector<512x64xbf16> to vector<128x64xbf16>
    %cst_39 = arith.constant dense<0.000000e+00> : vector<24x64xf32>
    %74 = tpu.matmul %72, %73, %cst_39 {dimension_numbers = #tpu.dot_dimension_numbers<[1], [0], [0], [1], [0, 0, 1, 1], [], []>} : vector<24x128xbf16>, vector<128x64xbf16>, vector<24x64xf32> -> vector<24x64xf32>
    %75 = arith.addf %55, %74 : vector<24x64xf32>
    %76 = vector.extract_strided_slice %54 {offsets = [0, 128], sizes = [24, 128], strides = [1, 1]} : vector<24x1536xf32> to vector<24x128xf32>
    %77 = vector.extract_strided_slice %54 {offsets = [0, 640], sizes = [24, 128], strides = [1, 1]} : vector<24x1536xf32> to vector<24x128xf32>
    %78 = vector.extract_strided_slice %54 {offsets = [0, 1152], sizes = [24, 128], strides = [1, 1]} : vector<24x1536xf32> to vector<24x128xf32>
    %cst_40 = arith.constant dense<0.000000e+00> : vector<24x24xf32>
    %79 = tpu.matmul %76, %77, %cst_40 {dimension_numbers = #tpu.dot_dimension_numbers<[1], [1], [0], [0], [0, 0, 1, 0], [], []>} : vector<24x128xf32>, vector<24x128xf32>, vector<24x24xf32> -> vector<24x24xf32>
    %80 = arith.addf %79, %6 : vector<24x24xf32>
    %cst_41 = arith.constant dense<0xFF800000> : vector<24xf32>
    %81 = vector.multi_reduction <maximumf>, %80, %cst_41 [1] : vector<24x24xf32> to vector<24xf32>
    %82 = vector.shape_cast %81 : vector<24xf32> to vector<24x1xf32>
    %83 = vector.broadcast %82 : vector<24x1xf32> to vector<24x24xf32>
    %84 = arith.subf %80, %83 : vector<24x24xf32>
    %85 = math.exp %84 : vector<24x24xf32>
    %cst_42 = arith.constant dense<0.000000e+00> : vector<24xf32>
    %86 = vector.multi_reduction <add>, %85, %cst_42 [1] : vector<24x24xf32> to vector<24xf32>
    %87 = vector.shape_cast %86 : vector<24xf32> to vector<24x1xf32>
    %88 = tpu.reciprocal %87 {approx = true} : vector<24x1xf32> -> vector<24x1xf32>
    %89 = vector.broadcast %88 : vector<24x1xf32> to vector<24x24xf32>
    %90 = arith.mulf %85, %89 : vector<24x24xf32>
    %cst_43 = arith.constant dense<0.000000e+00> : vector<24x128xf32>
    %91 = tpu.matmul %90, %78, %cst_43 {dimension_numbers = #tpu.dot_dimension_numbers<[1], [0], [0], [1], [0, 0, 1, 1], [], []>} : vector<24x24xf32>, vector<24x128xf32>, vector<24x128xf32> -> vector<24x128xf32>
    %92 = arith.truncf %91 : vector<24x128xf32> to vector<24x128xbf16>
    %93 = vector.extract_strided_slice %12 {offsets = [128, 0], sizes = [128, 64], strides = [1, 1]} : vector<512x64xbf16> to vector<128x64xbf16>
    %cst_44 = arith.constant dense<0.000000e+00> : vector<24x64xf32>
    %94 = tpu.matmul %92, %93, %cst_44 {dimension_numbers = #tpu.dot_dimension_numbers<[1], [0], [0], [1], [0, 0, 1, 1], [], []>} : vector<24x128xbf16>, vector<128x64xbf16>, vector<24x64xf32> -> vector<24x64xf32>
    %95 = arith.addf %75, %94 : vector<24x64xf32>
    %96 = vector.extract_strided_slice %54 {offsets = [0, 256], sizes = [24, 128], strides = [1, 1]} : vector<24x1536xf32> to vector<24x128xf32>
    %97 = vector.extract_strided_slice %54 {offsets = [0, 768], sizes = [24, 128], strides = [1, 1]} : vector<24x1536xf32> to vector<24x128xf32>
    %98 = vector.extract_strided_slice %54 {offsets = [0, 1280], sizes = [24, 128], strides = [1, 1]} : vector<24x1536xf32> to vector<24x128xf32>
    %cst_45 = arith.constant dense<0.000000e+00> : vector<24x24xf32>
    %99 = tpu.matmul %96, %97, %cst_45 {dimension_numbers = #tpu.dot_dimension_numbers<[1], [1], [0], [0], [0, 0, 1, 0], [], []>} : vector<24x128xf32>, vector<24x128xf32>, vector<24x24xf32> -> vector<24x24xf32>
    %100 = arith.addf %99, %6 : vector<24x24xf32>
    %cst_46 = arith.constant dense<0xFF800000> : vector<24xf32>
    %101 = vector.multi_reduction <maximumf>, %100, %cst_46 [1] : vector<24x24xf32> to vector<24xf32>
    %102 = vector.shape_cast %101 : vector<24xf32> to vector<24x1xf32>
    %103 = vector.broadcast %102 : vector<24x1xf32> to vector<24x24xf32>
    %104 = arith.subf %100, %103 : vector<24x24xf32>
    %105 = math.exp %104 : vector<24x24xf32>
    %cst_47 = arith.constant dense<0.000000e+00> : vector<24xf32>
    %106 = vector.multi_reduction <add>, %105, %cst_47 [1] : vector<24x24xf32> to vector<24xf32>
    %107 = vector.shape_cast %106 : vector<24xf32> to vector<24x1xf32>
    %108 = tpu.reciprocal %107 {approx = true} : vector<24x1xf32> -> vector<24x1xf32>
    %109 = vector.broadcast %108 : vector<24x1xf32> to vector<24x24xf32>
    %110 = arith.mulf %105, %109 : vector<24x24xf32>
    %cst_48 = arith.constant dense<0.000000e+00> : vector<24x128xf32>
    %111 = tpu.matmul %110, %98, %cst_48 {dimension_numbers = #tpu.dot_dimension_numbers<[1], [0], [0], [1], [0, 0, 1, 1], [], []>} : vector<24x24xf32>, vector<24x128xf32>, vector<24x128xf32> -> vector<24x128xf32>
    %112 = arith.truncf %111 : vector<24x128xf32> to vector<24x128xbf16>
    %113 = vector.extract_strided_slice %12 {offsets = [256, 0], sizes = [128, 64], strides = [1, 1]} : vector<512x64xbf16> to vector<128x64xbf16>
    %cst_49 = arith.constant dense<0.000000e+00> : vector<24x64xf32>
    %114 = tpu.matmul %112, %113, %cst_49 {dimension_numbers = #tpu.dot_dimension_numbers<[1], [0], [0], [1], [0, 0, 1, 1], [], []>} : vector<24x128xbf16>, vector<128x64xbf16>, vector<24x64xf32> -> vector<24x64xf32>
    %115 = arith.addf %95, %114 : vector<24x64xf32>
    %116 = vector.extract_strided_slice %54 {offsets = [0, 384], sizes = [24, 128], strides = [1, 1]} : vector<24x1536xf32> to vector<24x128xf32>
    %117 = vector.extract_strided_slice %54 {offsets = [0, 896], sizes = [24, 128], strides = [1, 1]} : vector<24x1536xf32> to vector<24x128xf32>
    %118 = vector.extract_strided_slice %54 {offsets = [0, 1408], sizes = [24, 128], strides = [1, 1]} : vector<24x1536xf32> to vector<24x128xf32>
    %cst_50 = arith.constant dense<0.000000e+00> : vector<24x24xf32>
    %119 = tpu.matmul %116, %117, %cst_50 {dimension_numbers = #tpu.dot_dimension_numbers<[1], [1], [0], [0], [0, 0, 1, 0], [], []>} : vector<24x128xf32>, vector<24x128xf32>, vector<24x24xf32> -> vector<24x24xf32>
    %120 = arith.addf %119, %6 : vector<24x24xf32>
    %cst_51 = arith.constant dense<0xFF800000> : vector<24xf32>
    %121 = vector.multi_reduction <maximumf>, %120, %cst_51 [1] : vector<24x24xf32> to vector<24xf32>
    %122 = vector.shape_cast %121 : vector<24xf32> to vector<24x1xf32>
    %123 = vector.broadcast %122 : vector<24x1xf32> to vector<24x24xf32>
    %124 = arith.subf %120, %123 : vector<24x24xf32>
    %125 = math.exp %124 : vector<24x24xf32>
    %cst_52 = arith.constant dense<0.000000e+00> : vector<24xf32>
    %126 = vector.multi_reduction <add>, %125, %cst_52 [1] : vector<24x24xf32> to vector<24xf32>
    %127 = vector.shape_cast %126 : vector<24xf32> to vector<24x1xf32>
    %128 = tpu.reciprocal %127 {approx = true} : vector<24x1xf32> -> vector<24x1xf32>
    %129 = vector.broadcast %128 : vector<24x1xf32> to vector<24x24xf32>
    %130 = arith.mulf %125, %129 : vector<24x24xf32>
    %cst_53 = arith.constant dense<0.000000e+00> : vector<24x128xf32>
    %131 = tpu.matmul %130, %118, %cst_53 {dimension_numbers = #tpu.dot_dimension_numbers<[1], [0], [0], [1], [0, 0, 1, 1], [], []>} : vector<24x24xf32>, vector<24x128xf32>, vector<24x128xf32> -> vector<24x128xf32>
    %132 = arith.truncf %131 : vector<24x128xf32> to vector<24x128xbf16>
    %133 = vector.extract_strided_slice %12 {offsets = [384, 0], sizes = [128, 64], strides = [1, 1]} : vector<512x64xbf16> to vector<128x64xbf16>
    %cst_54 = arith.constant dense<0.000000e+00> : vector<24x64xf32>
    %134 = tpu.matmul %132, %133, %cst_54 {dimension_numbers = #tpu.dot_dimension_numbers<[1], [0], [0], [1], [0, 0, 1, 1], [], []>} : vector<24x128xbf16>, vector<128x64xbf16>, vector<24x64xf32> -> vector<24x64xf32>
    %135 = arith.addf %115, %134 : vector<24x64xf32>
    %136 = arith.addf %5, %135 : vector<24x64xf32>
    %137 = vector.broadcast %23 : vector<1x64xf32> to vector<24x64xf32>
    %138 = arith.addf %136, %137 : vector<24x64xf32>
    %cst_55 = arith.constant dense<0.000000e+00> : vector<24xf32>
    %139 = vector.multi_reduction <add>, %138, %cst_55 [1] : vector<24x64xf32> to vector<24xf32>
    %140 = vector.shape_cast %139 : vector<24xf32> to vector<24x1xf32>
    %cst_56 = arith.constant 6.400000e+01 : f32
    %141 = vector.broadcast %cst_56 : f32 to vector<24x1xf32>
    %142 = arith.divf %140, %141 : vector<24x1xf32>
    %143 = vector.broadcast %142 : vector<24x1xf32> to vector<24x64xf32>
    %144 = arith.subf %138, %143 : vector<24x64xf32>
    %145 = vector.broadcast %142 : vector<24x1xf32> to vector<24x64xf32>
    %146 = arith.subf %138, %145 : vector<24x64xf32>
    %147 = arith.mulf %144, %146 : vector<24x64xf32>
    %cst_57 = arith.constant dense<0.000000e+00> : vector<24xf32>
    %148 = vector.multi_reduction <add>, %147, %cst_57 [1] : vector<24x64xf32> to vector<24xf32>
    %149 = vector.shape_cast %148 : vector<24xf32> to vector<24x1xf32>
    %cst_58 = arith.constant 6.400000e+01 : f32
    %150 = vector.broadcast %cst_58 : f32 to vector<24x1xf32>
    %151 = arith.divf %149, %150 : vector<24x1xf32>
    %152 = vector.broadcast %142 : vector<24x1xf32> to vector<24x64xf32>
    %153 = arith.subf %138, %152 : vector<24x64xf32>
    %cst_59 = arith.constant 9.99999996E-13 : f32
    %154 = vector.broadcast %cst_59 : f32 to vector<24x1xf32>
    %155 = arith.addf %151, %154 : vector<24x1xf32>
    %156 = math.rsqrt %155 : vector<24x1xf32>
    %157 = vector.broadcast %156 : vector<24x1xf32> to vector<24x64xf32>
    %158 = arith.mulf %153, %157 : vector<24x64xf32>
    %159 = vector.broadcast %24 : vector<1x64xf32> to vector<24x64xf32>
    %160 = arith.mulf %158, %159 : vector<24x64xf32>
    %161 = vector.broadcast %25 : vector<1x64xf32> to vector<24x64xf32>
    %162 = arith.addf %160, %161 : vector<24x64xf32>
    %163 = arith.truncf %162 : vector<24x64xf32> to vector<24x64xbf16>
    %cst_60 = arith.constant dense<0.000000e+00> : vector<24x256xf32>
    %164 = tpu.matmul %163, %14, %cst_60 {dimension_numbers = #tpu.dot_dimension_numbers<[1], [0], [0], [1], [0, 0, 1, 1], [], []>} : vector<24x64xbf16>, vector<64x256xbf16>, vector<24x256xf32> -> vector<24x256xf32>
    %165 = vector.broadcast %16 : vector<1x256xf32> to vector<24x256xf32>
    %166 = arith.addf %164, %165 : vector<24x256xf32>
    %cst_61 = arith.constant 5.000000e-01 : f32
    %167 = vector.broadcast %cst_61 : f32 to vector<24x256xf32>
    %168 = arith.mulf %167, %166 : vector<24x256xf32>
    %cst_62 = arith.constant 4.471500e-02 : f32
    %169 = vector.broadcast %cst_62 : f32 to vector<24x256xf32>
    %170 = arith.mulf %169, %166 : vector<24x256xf32>
    %171 = arith.mulf %170, %166 : vector<24x256xf32>
    %172 = arith.mulf %171, %166 : vector<24x256xf32>
    %173 = arith.addf %166, %172 : vector<24x256xf32>
    %cst_63 = arith.constant 0.797884583 : f32
    %174 = vector.broadcast %cst_63 : f32 to vector<24x256xf32>
    %175 = arith.mulf %174, %173 : vector<24x256xf32>
    %176 = math.tanh %175 : vector<24x256xf32>
    %cst_64 = arith.constant 1.000000e+00 : f32
    %177 = vector.broadcast %cst_64 : f32 to vector<24x256xf32>
    %178 = arith.addf %177, %176 : vector<24x256xf32>
    %179 = arith.mulf %168, %178 : vector<24x256xf32>
    %180 = arith.truncf %179 : vector<24x256xf32> to vector<24x256xbf16>
    %cst_65 = arith.constant dense<0.000000e+00> : vector<24x64xf32>
    %181 = tpu.matmul %180, %18, %cst_65 {dimension_numbers = #tpu.dot_dimension_numbers<[1], [0], [0], [1], [0, 0, 1, 1], [], []>} : vector<24x256xbf16>, vector<256x64xbf16>, vector<24x64xf32> -> vector<24x64xf32>
    %182 = arith.addf %138, %181 : vector<24x64xf32>
    %183 = vector.broadcast %26 : vector<1x64xf32> to vector<24x64xf32>
    %184 = arith.addf %182, %183 : vector<24x64xf32>
    %c1 = arith.constant 1 : index
    %c0_66 = arith.constant 0 : index
    %c0_67 = arith.constant 0 : index
    %185 = vector.load %arg4[%c1, %c0_66, %c0_67] : memref<2x64x1536xbf16, #tpu.memory_space<vmem>>, vector<1x64x1536xbf16>
    %186 = vector.shape_cast %185 : vector<1x64x1536xbf16> to vector<64x1536xbf16>
    %c1_68 = arith.constant 1 : index
    %c0_69 = arith.constant 0 : index
    %c0_70 = arith.constant 0 : index
    %187 = vector.load %arg5[%c1_68, %c0_69, %c0_70] : memref<2x1x1536xf32, #tpu.memory_space<vmem>>, vector<1x1x1536xf32>
    %188 = vector.shape_cast %187 : vector<1x1x1536xf32> to vector<1x1536xf32>
    %c1_71 = arith.constant 1 : index
    %c0_72 = arith.constant 0 : index
    %c0_73 = arith.constant 0 : index
    %189 = vector.load %arg6[%c1_71, %c0_72, %c0_73] : memref<2x512x64xbf16, #tpu.memory_space<vmem>>, vector<1x512x64xbf16>
    %190 = vector.shape_cast %189 : vector<1x512x64xbf16> to vector<512x64xbf16>
    %c1_74 = arith.constant 1 : index
    %c0_75 = arith.constant 0 : index
    %c0_76 = arith.constant 0 : index
    %191 = vector.load %arg7[%c1_74, %c0_75, %c0_76] : memref<2x64x256xbf16, #tpu.memory_space<vmem>>, vector<1x64x256xbf16>
    %192 = vector.shape_cast %191 : vector<1x64x256xbf16> to vector<64x256xbf16>
    %c1_77 = arith.constant 1 : index
    %c0_78 = arith.constant 0 : index
    %c0_79 = arith.constant 0 : index
    %193 = vector.load %arg8[%c1_77, %c0_78, %c0_79] : memref<2x1x256xf32, #tpu.memory_space<vmem>>, vector<1x1x256xf32>
    %194 = vector.shape_cast %193 : vector<1x1x256xf32> to vector<1x256xf32>
    %c1_80 = arith.constant 1 : index
    %c0_81 = arith.constant 0 : index
    %c0_82 = arith.constant 0 : index
    %195 = vector.load %arg9[%c1_80, %c0_81, %c0_82] : memref<2x256x64xbf16, #tpu.memory_space<vmem>>, vector<1x256x64xbf16>
    %196 = vector.shape_cast %195 : vector<1x256x64xbf16> to vector<256x64xbf16>
    %c1_83 = arith.constant 1 : index
    %c0_84 = arith.constant 0 : index
    %c0_85 = arith.constant 0 : index
    %197 = vector.load %arg10[%c1_83, %c0_84, %c0_85] : memref<2x6x64xf32, #tpu.memory_space<vmem>>, vector<1x6x64xf32>
    %198 = vector.shape_cast %197 : vector<1x6x64xf32> to vector<6x64xf32>
    %199 = vector.extract_strided_slice %198 {offsets = [0, 0], sizes = [1, 64], strides = [1, 1]} : vector<6x64xf32> to vector<1x64xf32>
    %200 = vector.extract_strided_slice %198 {offsets = [1, 0], sizes = [1, 64], strides = [1, 1]} : vector<6x64xf32> to vector<1x64xf32>
    %201 = vector.extract_strided_slice %198 {offsets = [2, 0], sizes = [1, 64], strides = [1, 1]} : vector<6x64xf32> to vector<1x64xf32>
    %202 = vector.extract_strided_slice %198 {offsets = [3, 0], sizes = [1, 64], strides = [1, 1]} : vector<6x64xf32> to vector<1x64xf32>
    %203 = vector.extract_strided_slice %198 {offsets = [4, 0], sizes = [1, 64], strides = [1, 1]} : vector<6x64xf32> to vector<1x64xf32>
    %204 = vector.extract_strided_slice %198 {offsets = [5, 0], sizes = [1, 64], strides = [1, 1]} : vector<6x64xf32> to vector<1x64xf32>
    %cst_86 = arith.constant dense<0.000000e+00> : vector<24xf32>
    %205 = vector.multi_reduction <add>, %184, %cst_86 [1] : vector<24x64xf32> to vector<24xf32>
    %206 = vector.shape_cast %205 : vector<24xf32> to vector<24x1xf32>
    %cst_87 = arith.constant 6.400000e+01 : f32
    %207 = vector.broadcast %cst_87 : f32 to vector<24x1xf32>
    %208 = arith.divf %206, %207 : vector<24x1xf32>
    %209 = vector.broadcast %208 : vector<24x1xf32> to vector<24x64xf32>
    %210 = arith.subf %184, %209 : vector<24x64xf32>
    %211 = vector.broadcast %208 : vector<24x1xf32> to vector<24x64xf32>
    %212 = arith.subf %184, %211 : vector<24x64xf32>
    %213 = arith.mulf %210, %212 : vector<24x64xf32>
    %cst_88 = arith.constant dense<0.000000e+00> : vector<24xf32>
    %214 = vector.multi_reduction <add>, %213, %cst_88 [1] : vector<24x64xf32> to vector<24xf32>
    %215 = vector.shape_cast %214 : vector<24xf32> to vector<24x1xf32>
    %cst_89 = arith.constant 6.400000e+01 : f32
    %216 = vector.broadcast %cst_89 : f32 to vector<24x1xf32>
    %217 = arith.divf %215, %216 : vector<24x1xf32>
    %218 = vector.broadcast %208 : vector<24x1xf32> to vector<24x64xf32>
    %219 = arith.subf %184, %218 : vector<24x64xf32>
    %cst_90 = arith.constant 9.99999996E-13 : f32
    %220 = vector.broadcast %cst_90 : f32 to vector<24x1xf32>
    %221 = arith.addf %217, %220 : vector<24x1xf32>
    %222 = math.rsqrt %221 : vector<24x1xf32>
    %223 = vector.broadcast %222 : vector<24x1xf32> to vector<24x64xf32>
    %224 = arith.mulf %219, %223 : vector<24x64xf32>
    %225 = vector.broadcast %199 : vector<1x64xf32> to vector<24x64xf32>
    %226 = arith.mulf %224, %225 : vector<24x64xf32>
    %227 = vector.broadcast %200 : vector<1x64xf32> to vector<24x64xf32>
    %228 = arith.addf %226, %227 : vector<24x64xf32>
    %229 = arith.truncf %228 : vector<24x64xf32> to vector<24x64xbf16>
    %cst_91 = arith.constant dense<0.000000e+00> : vector<24x1536xf32>
    %230 = tpu.matmul %229, %186, %cst_91 {dimension_numbers = #tpu.dot_dimension_numbers<[1], [0], [0], [1], [0, 0, 1, 1], [], []>} : vector<24x64xbf16>, vector<64x1536xbf16>, vector<24x1536xf32> -> vector<24x1536xf32>
    %231 = vector.broadcast %188 : vector<1x1536xf32> to vector<24x1536xf32>
    %232 = arith.addf %230, %231 : vector<24x1536xf32>
    %cst_92 = arith.constant 0.000000e+00 : f32
    %233 = vector.broadcast %cst_92 : f32 to vector<24x64xf32>
    %234 = vector.extract_strided_slice %232 {offsets = [0, 0], sizes = [24, 128], strides = [1, 1]} : vector<24x1536xf32> to vector<24x128xf32>
    %235 = vector.extract_strided_slice %232 {offsets = [0, 512], sizes = [24, 128], strides = [1, 1]} : vector<24x1536xf32> to vector<24x128xf32>
    %236 = vector.extract_strided_slice %232 {offsets = [0, 1024], sizes = [24, 128], strides = [1, 1]} : vector<24x1536xf32> to vector<24x128xf32>
    %cst_93 = arith.constant dense<0.000000e+00> : vector<24x24xf32>
    %237 = tpu.matmul %234, %235, %cst_93 {dimension_numbers = #tpu.dot_dimension_numbers<[1], [1], [0], [0], [0, 0, 1, 0], [], []>} : vector<24x128xf32>, vector<24x128xf32>, vector<24x24xf32> -> vector<24x24xf32>
    %238 = arith.addf %237, %6 : vector<24x24xf32>
    %cst_94 = arith.constant dense<0xFF800000> : vector<24xf32>
    %239 = vector.multi_reduction <maximumf>, %238, %cst_94 [1] : vector<24x24xf32> to vector<24xf32>
    %240 = vector.shape_cast %239 : vector<24xf32> to vector<24x1xf32>
    %241 = vector.broadcast %240 : vector<24x1xf32> to vector<24x24xf32>
    %242 = arith.subf %238, %241 : vector<24x24xf32>
    %243 = math.exp %242 : vector<24x24xf32>
    %cst_95 = arith.constant dense<0.000000e+00> : vector<24xf32>
    %244 = vector.multi_reduction <add>, %243, %cst_95 [1] : vector<24x24xf32> to vector<24xf32>
    %245 = vector.shape_cast %244 : vector<24xf32> to vector<24x1xf32>
    %246 = tpu.reciprocal %245 {approx = true} : vector<24x1xf32> -> vector<24x1xf32>
    %247 = vector.broadcast %246 : vector<24x1xf32> to vector<24x24xf32>
    %248 = arith.mulf %243, %247 : vector<24x24xf32>
    %cst_96 = arith.constant dense<0.000000e+00> : vector<24x128xf32>
    %249 = tpu.matmul %248, %236, %cst_96 {dimension_numbers = #tpu.dot_dimension_numbers<[1], [0], [0], [1], [0, 0, 1, 1], [], []>} : vector<24x24xf32>, vector<24x128xf32>, vector<24x128xf32> -> vector<24x128xf32>
    %250 = arith.truncf %249 : vector<24x128xf32> to vector<24x128xbf16>
    %251 = vector.extract_strided_slice %190 {offsets = [0, 0], sizes = [128, 64], strides = [1, 1]} : vector<512x64xbf16> to vector<128x64xbf16>
    %cst_97 = arith.constant dense<0.000000e+00> : vector<24x64xf32>
    %252 = tpu.matmul %250, %251, %cst_97 {dimension_numbers = #tpu.dot_dimension_numbers<[1], [0], [0], [1], [0, 0, 1, 1], [], []>} : vector<24x128xbf16>, vector<128x64xbf16>, vector<24x64xf32> -> vector<24x64xf32>
    %253 = arith.addf %233, %252 : vector<24x64xf32>
    %254 = vector.extract_strided_slice %232 {offsets = [0, 128], sizes = [24, 128], strides = [1, 1]} : vector<24x1536xf32> to vector<24x128xf32>
    %255 = vector.extract_strided_slice %232 {offsets = [0, 640], sizes = [24, 128], strides = [1, 1]} : vector<24x1536xf32> to vector<24x128xf32>
    %256 = vector.extract_strided_slice %232 {offsets = [0, 1152], sizes = [24, 128], strides = [1, 1]} : vector<24x1536xf32> to vector<24x128xf32>
    %cst_98 = arith.constant dense<0.000000e+00> : vector<24x24xf32>
    %257 = tpu.matmul %254, %255, %cst_98 {dimension_numbers = #tpu.dot_dimension_numbers<[1], [1], [0], [0], [0, 0, 1, 0], [], []>} : vector<24x128xf32>, vector<24x128xf32>, vector<24x24xf32> -> vector<24x24xf32>
    %258 = arith.addf %257, %6 : vector<24x24xf32>
    %cst_99 = arith.constant dense<0xFF800000> : vector<24xf32>
    %259 = vector.multi_reduction <maximumf>, %258, %cst_99 [1] : vector<24x24xf32> to vector<24xf32>
    %260 = vector.shape_cast %259 : vector<24xf32> to vector<24x1xf32>
    %261 = vector.broadcast %260 : vector<24x1xf32> to vector<24x24xf32>
    %262 = arith.subf %258, %261 : vector<24x24xf32>
    %263 = math.exp %262 : vector<24x24xf32>
    %cst_100 = arith.constant dense<0.000000e+00> : vector<24xf32>
    %264 = vector.multi_reduction <add>, %263, %cst_100 [1] : vector<24x24xf32> to vector<24xf32>
    %265 = vector.shape_cast %264 : vector<24xf32> to vector<24x1xf32>
    %266 = tpu.reciprocal %265 {approx = true} : vector<24x1xf32> -> vector<24x1xf32>
    %267 = vector.broadcast %266 : vector<24x1xf32> to vector<24x24xf32>
    %268 = arith.mulf %263, %267 : vector<24x24xf32>
    %cst_101 = arith.constant dense<0.000000e+00> : vector<24x128xf32>
    %269 = tpu.matmul %268, %256, %cst_101 {dimension_numbers = #tpu.dot_dimension_numbers<[1], [0], [0], [1], [0, 0, 1, 1], [], []>} : vector<24x24xf32>, vector<24x128xf32>, vector<24x128xf32> -> vector<24x128xf32>
    %270 = arith.truncf %269 : vector<24x128xf32> to vector<24x128xbf16>
    %271 = vector.extract_strided_slice %190 {offsets = [128, 0], sizes = [128, 64], strides = [1, 1]} : vector<512x64xbf16> to vector<128x64xbf16>
    %cst_102 = arith.constant dense<0.000000e+00> : vector<24x64xf32>
    %272 = tpu.matmul %270, %271, %cst_102 {dimension_numbers = #tpu.dot_dimension_numbers<[1], [0], [0], [1], [0, 0, 1, 1], [], []>} : vector<24x128xbf16>, vector<128x64xbf16>, vector<24x64xf32> -> vector<24x64xf32>
    %273 = arith.addf %253, %272 : vector<24x64xf32>
    %274 = vector.extract_strided_slice %232 {offsets = [0, 256], sizes = [24, 128], strides = [1, 1]} : vector<24x1536xf32> to vector<24x128xf32>
    %275 = vector.extract_strided_slice %232 {offsets = [0, 768], sizes = [24, 128], strides = [1, 1]} : vector<24x1536xf32> to vector<24x128xf32>
    %276 = vector.extract_strided_slice %232 {offsets = [0, 1280], sizes = [24, 128], strides = [1, 1]} : vector<24x1536xf32> to vector<24x128xf32>
    %cst_103 = arith.constant dense<0.000000e+00> : vector<24x24xf32>
    %277 = tpu.matmul %274, %275, %cst_103 {dimension_numbers = #tpu.dot_dimension_numbers<[1], [1], [0], [0], [0, 0, 1, 0], [], []>} : vector<24x128xf32>, vector<24x128xf32>, vector<24x24xf32> -> vector<24x24xf32>
    %278 = arith.addf %277, %6 : vector<24x24xf32>
    %cst_104 = arith.constant dense<0xFF800000> : vector<24xf32>
    %279 = vector.multi_reduction <maximumf>, %278, %cst_104 [1] : vector<24x24xf32> to vector<24xf32>
    %280 = vector.shape_cast %279 : vector<24xf32> to vector<24x1xf32>
    %281 = vector.broadcast %280 : vector<24x1xf32> to vector<24x24xf32>
    %282 = arith.subf %278, %281 : vector<24x24xf32>
    %283 = math.exp %282 : vector<24x24xf32>
    %cst_105 = arith.constant dense<0.000000e+00> : vector<24xf32>
    %284 = vector.multi_reduction <add>, %283, %cst_105 [1] : vector<24x24xf32> to vector<24xf32>
    %285 = vector.shape_cast %284 : vector<24xf32> to vector<24x1xf32>
    %286 = tpu.reciprocal %285 {approx = true} : vector<24x1xf32> -> vector<24x1xf32>
    %287 = vector.broadcast %286 : vector<24x1xf32> to vector<24x24xf32>
    %288 = arith.mulf %283, %287 : vector<24x24xf32>
    %cst_106 = arith.constant dense<0.000000e+00> : vector<24x128xf32>
    %289 = tpu.matmul %288, %276, %cst_106 {dimension_numbers = #tpu.dot_dimension_numbers<[1], [0], [0], [1], [0, 0, 1, 1], [], []>} : vector<24x24xf32>, vector<24x128xf32>, vector<24x128xf32> -> vector<24x128xf32>
    %290 = arith.truncf %289 : vector<24x128xf32> to vector<24x128xbf16>
    %291 = vector.extract_strided_slice %190 {offsets = [256, 0], sizes = [128, 64], strides = [1, 1]} : vector<512x64xbf16> to vector<128x64xbf16>
    %cst_107 = arith.constant dense<0.000000e+00> : vector<24x64xf32>
    %292 = tpu.matmul %290, %291, %cst_107 {dimension_numbers = #tpu.dot_dimension_numbers<[1], [0], [0], [1], [0, 0, 1, 1], [], []>} : vector<24x128xbf16>, vector<128x64xbf16>, vector<24x64xf32> -> vector<24x64xf32>
    %293 = arith.addf %273, %292 : vector<24x64xf32>
    %294 = vector.extract_strided_slice %232 {offsets = [0, 384], sizes = [24, 128], strides = [1, 1]} : vector<24x1536xf32> to vector<24x128xf32>
    %295 = vector.extract_strided_slice %232 {offsets = [0, 896], sizes = [24, 128], strides = [1, 1]} : vector<24x1536xf32> to vector<24x128xf32>
    %296 = vector.extract_strided_slice %232 {offsets = [0, 1408], sizes = [24, 128], strides = [1, 1]} : vector<24x1536xf32> to vector<24x128xf32>
    %cst_108 = arith.constant dense<0.000000e+00> : vector<24x24xf32>
    %297 = tpu.matmul %294, %295, %cst_108 {dimension_numbers = #tpu.dot_dimension_numbers<[1], [1], [0], [0], [0, 0, 1, 0], [], []>} : vector<24x128xf32>, vector<24x128xf32>, vector<24x24xf32> -> vector<24x24xf32>
    %298 = arith.addf %297, %6 : vector<24x24xf32>
    %cst_109 = arith.constant dense<0xFF800000> : vector<24xf32>
    %299 = vector.multi_reduction <maximumf>, %298, %cst_109 [1] : vector<24x24xf32> to vector<24xf32>
    %300 = vector.shape_cast %299 : vector<24xf32> to vector<24x1xf32>
    %301 = vector.broadcast %300 : vector<24x1xf32> to vector<24x24xf32>
    %302 = arith.subf %298, %301 : vector<24x24xf32>
    %303 = math.exp %302 : vector<24x24xf32>
    %cst_110 = arith.constant dense<0.000000e+00> : vector<24xf32>
    %304 = vector.multi_reduction <add>, %303, %cst_110 [1] : vector<24x24xf32> to vector<24xf32>
    %305 = vector.shape_cast %304 : vector<24xf32> to vector<24x1xf32>
    %306 = tpu.reciprocal %305 {approx = true} : vector<24x1xf32> -> vector<24x1xf32>
    %307 = vector.broadcast %306 : vector<24x1xf32> to vector<24x24xf32>
    %308 = arith.mulf %303, %307 : vector<24x24xf32>
    %cst_111 = arith.constant dense<0.000000e+00> : vector<24x128xf32>
    %309 = tpu.matmul %308, %296, %cst_111 {dimension_numbers = #tpu.dot_dimension_numbers<[1], [0], [0], [1], [0, 0, 1, 1], [], []>} : vector<24x24xf32>, vector<24x128xf32>, vector<24x128xf32> -> vector<24x128xf32>
    %310 = arith.truncf %309 : vector<24x128xf32> to vector<24x128xbf16>
    %311 = vector.extract_strided_slice %190 {offsets = [384, 0], sizes = [128, 64], strides = [1, 1]} : vector<512x64xbf16> to vector<128x64xbf16>
    %cst_112 = arith.constant dense<0.000000e+00> : vector<24x64xf32>
    %312 = tpu.matmul %310, %311, %cst_112 {dimension_numbers = #tpu.dot_dimension_numbers<[1], [0], [0], [1], [0, 0, 1, 1], [], []>} : vector<24x128xbf16>, vector<128x64xbf16>, vector<24x64xf32> -> vector<24x64xf32>
    %313 = arith.addf %293, %312 : vector<24x64xf32>
    %314 = arith.addf %184, %313 : vector<24x64xf32>
    %315 = vector.broadcast %201 : vector<1x64xf32> to vector<24x64xf32>
    %316 = arith.addf %314, %315 : vector<24x64xf32>
    %cst_113 = arith.constant dense<0.000000e+00> : vector<24xf32>
    %317 = vector.multi_reduction <add>, %316, %cst_113 [1] : vector<24x64xf32> to vector<24xf32>
    %318 = vector.shape_cast %317 : vector<24xf32> to vector<24x1xf32>
    %cst_114 = arith.constant 6.400000e+01 : f32
    %319 = vector.broadcast %cst_114 : f32 to vector<24x1xf32>
    %320 = arith.divf %318, %319 : vector<24x1xf32>
    %321 = vector.broadcast %320 : vector<24x1xf32> to vector<24x64xf32>
    %322 = arith.subf %316, %321 : vector<24x64xf32>
    %323 = vector.broadcast %320 : vector<24x1xf32> to vector<24x64xf32>
    %324 = arith.subf %316, %323 : vector<24x64xf32>
    %325 = arith.mulf %322, %324 : vector<24x64xf32>
    %cst_115 = arith.constant dense<0.000000e+00> : vector<24xf32>
    %326 = vector.multi_reduction <add>, %325, %cst_115 [1] : vector<24x64xf32> to vector<24xf32>
    %327 = vector.shape_cast %326 : vector<24xf32> to vector<24x1xf32>
    %cst_116 = arith.constant 6.400000e+01 : f32
    %328 = vector.broadcast %cst_116 : f32 to vector<24x1xf32>
    %329 = arith.divf %327, %328 : vector<24x1xf32>
    %330 = vector.broadcast %320 : vector<24x1xf32> to vector<24x64xf32>
    %331 = arith.subf %316, %330 : vector<24x64xf32>
    %cst_117 = arith.constant 9.99999996E-13 : f32
    %332 = vector.broadcast %cst_117 : f32 to vector<24x1xf32>
    %333 = arith.addf %329, %332 : vector<24x1xf32>
    %334 = math.rsqrt %333 : vector<24x1xf32>
    %335 = vector.broadcast %334 : vector<24x1xf32> to vector<24x64xf32>
    %336 = arith.mulf %331, %335 : vector<24x64xf32>
    %337 = vector.broadcast %202 : vector<1x64xf32> to vector<24x64xf32>
    %338 = arith.mulf %336, %337 : vector<24x64xf32>
    %339 = vector.broadcast %203 : vector<1x64xf32> to vector<24x64xf32>
    %340 = arith.addf %338, %339 : vector<24x64xf32>
    %341 = arith.truncf %340 : vector<24x64xf32> to vector<24x64xbf16>
    %cst_118 = arith.constant dense<0.000000e+00> : vector<24x256xf32>
    %342 = tpu.matmul %341, %192, %cst_118 {dimension_numbers = #tpu.dot_dimension_numbers<[1], [0], [0], [1], [0, 0, 1, 1], [], []>} : vector<24x64xbf16>, vector<64x256xbf16>, vector<24x256xf32> -> vector<24x256xf32>
    %343 = vector.broadcast %194 : vector<1x256xf32> to vector<24x256xf32>
    %344 = arith.addf %342, %343 : vector<24x256xf32>
    %cst_119 = arith.constant 5.000000e-01 : f32
    %345 = vector.broadcast %cst_119 : f32 to vector<24x256xf32>
    %346 = arith.mulf %345, %344 : vector<24x256xf32>
    %cst_120 = arith.constant 4.471500e-02 : f32
    %347 = vector.broadcast %cst_120 : f32 to vector<24x256xf32>
    %348 = arith.mulf %347, %344 : vector<24x256xf32>
    %349 = arith.mulf %348, %344 : vector<24x256xf32>
    %350 = arith.mulf %349, %344 : vector<24x256xf32>
    %351 = arith.addf %344, %350 : vector<24x256xf32>
    %cst_121 = arith.constant 0.797884583 : f32
    %352 = vector.broadcast %cst_121 : f32 to vector<24x256xf32>
    %353 = arith.mulf %352, %351 : vector<24x256xf32>
    %354 = math.tanh %353 : vector<24x256xf32>
    %cst_122 = arith.constant 1.000000e+00 : f32
    %355 = vector.broadcast %cst_122 : f32 to vector<24x256xf32>
    %356 = arith.addf %355, %354 : vector<24x256xf32>
    %357 = arith.mulf %346, %356 : vector<24x256xf32>
    %358 = arith.truncf %357 : vector<24x256xf32> to vector<24x256xbf16>
    %cst_123 = arith.constant dense<0.000000e+00> : vector<24x64xf32>
    %359 = tpu.matmul %358, %196, %cst_123 {dimension_numbers = #tpu.dot_dimension_numbers<[1], [0], [0], [1], [0, 0, 1, 1], [], []>} : vector<24x256xbf16>, vector<256x64xbf16>, vector<24x64xf32> -> vector<24x64xf32>
    %360 = arith.addf %316, %359 : vector<24x64xf32>
    %361 = vector.broadcast %204 : vector<1x64xf32> to vector<24x64xf32>
    %362 = arith.addf %360, %361 : vector<24x64xf32>
    %c0_124 = arith.constant 0 : index
    %c0_125 = arith.constant 0 : index
    %363 = vector.load %arg11[%c0_124, %c0_125] : memref<2x64xf32, #tpu.memory_space<vmem>>, vector<2x64xf32>
    %364 = vector.extract_strided_slice %363 {offsets = [0, 0], sizes = [1, 64], strides = [1, 1]} : vector<2x64xf32> to vector<1x64xf32>
    %365 = vector.extract_strided_slice %363 {offsets = [1, 0], sizes = [1, 64], strides = [1, 1]} : vector<2x64xf32> to vector<1x64xf32>
    %cst_126 = arith.constant dense<0.000000e+00> : vector<24xf32>
    %366 = vector.multi_reduction <add>, %362, %cst_126 [1] : vector<24x64xf32> to vector<24xf32>
    %367 = vector.shape_cast %366 : vector<24xf32> to vector<24x1xf32>
    %cst_127 = arith.constant 6.400000e+01 : f32
    %368 = vector.broadcast %cst_127 : f32 to vector<24x1xf32>
    %369 = arith.divf %367, %368 : vector<24x1xf32>
    %370 = vector.broadcast %369 : vector<24x1xf32> to vector<24x64xf32>
    %371 = arith.subf %362, %370 : vector<24x64xf32>
    %372 = vector.broadcast %369 : vector<24x1xf32> to vector<24x64xf32>
    %373 = arith.subf %362, %372 : vector<24x64xf32>
    %374 = arith.mulf %371, %373 : vector<24x64xf32>
    %cst_128 = arith.constant dense<0.000000e+00> : vector<24xf32>
    %375 = vector.multi_reduction <add>, %374, %cst_128 [1] : vector<24x64xf32> to vector<24xf32>
    %376 = vector.shape_cast %375 : vector<24xf32> to vector<24x1xf32>
    %cst_129 = arith.constant 6.400000e+01 : f32
    %377 = vector.broadcast %cst_129 : f32 to vector<24x1xf32>
    %378 = arith.divf %376, %377 : vector<24x1xf32>
    %379 = vector.broadcast %369 : vector<24x1xf32> to vector<24x64xf32>
    %380 = arith.subf %362, %379 : vector<24x64xf32>
    %cst_130 = arith.constant 9.99999996E-13 : f32
    %381 = vector.broadcast %cst_130 : f32 to vector<24x1xf32>
    %382 = arith.addf %378, %381 : vector<24x1xf32>
    %383 = math.rsqrt %382 : vector<24x1xf32>
    %384 = vector.broadcast %383 : vector<24x1xf32> to vector<24x64xf32>
    %385 = arith.mulf %380, %384 : vector<24x64xf32>
    %386 = vector.broadcast %364 : vector<1x64xf32> to vector<24x64xf32>
    %387 = arith.mulf %385, %386 : vector<24x64xf32>
    %388 = vector.broadcast %365 : vector<1x64xf32> to vector<24x64xf32>
    %389 = arith.addf %387, %388 : vector<24x64xf32>
    %c0_131 = arith.constant 0 : index
    %c0_132 = arith.constant 0 : index
    %390 = vector.load %arg12[%c0_131, %c0_132] : memref<2x24xf32, #tpu.memory_space<vmem>>, vector<2x24xf32>
    %cst_133 = arith.constant dense<0.000000e+00> : vector<2x64xf32>
    %391 = tpu.matmul %390, %389, %cst_133 {dimension_numbers = #tpu.dot_dimension_numbers<[1], [0], [0], [1], [0, 0, 1, 1], [], []>} : vector<2x24xf32>, vector<24x64xf32>, vector<2x64xf32> -> vector<2x64xf32>
    %392 = arith.truncf %391 : vector<2x64xf32> to vector<2x64xbf16>
    %c0_134 = arith.constant 0 : index
    %c0_135 = arith.constant 0 : index
    %393 = vector.load %arg13[%c0_134, %c0_135] : memref<64x128xbf16, #tpu.memory_space<vmem>>, vector<64x128xbf16>
    %cst_136 = arith.constant dense<0.000000e+00> : vector<2x128xf32>
    %394 = tpu.matmul %392, %393, %cst_136 {dimension_numbers = #tpu.dot_dimension_numbers<[1], [0], [0], [1], [0, 0, 1, 1], [], []>} : vector<2x64xbf16>, vector<64x128xbf16>, vector<2x128xf32> -> vector<2x128xf32>
    %c0_137 = arith.constant 0 : index
    %c0_138 = arith.constant 0 : index
    %395 = vector.load %arg14[%c0_137, %c0_138] : memref<1x128xf32, #tpu.memory_space<vmem>>, vector<1x128xf32>
    %396 = vector.broadcast %395 : vector<1x128xf32> to vector<2x128xf32>
    %397 = arith.addf %394, %396 : vector<2x128xf32>
    %c0_139 = arith.constant 0 : index
    %c0_140 = arith.constant 0 : index
    %398 = vector.load %arg15[%c0_139, %c0_140] : memref<2x128xf32, #tpu.memory_space<vmem>>, vector<2x128xf32>
    tpu.vector_store %arg15[%c0_139, %c0_140], %397 {strides = array<i32>} : memref<2x128xf32, #tpu.memory_space<vmem>>, vector<2x128xf32>,
    return
  }
}

</mosaic_0001>

<bundles_post_ra>
// kernel: ast_classifier_forward.1
= control target key start
LH: loop header
LB: loop body
LE: loop exit
PB: predicated region body
PF: predicated region fallthrough
CT: control target
= control target key end

     0   :  { %s8597_s0 = inlined_call_operand.vmem [shape: f32[24,256], index: 0, kind: input, shape index: {}]   ;;  %s8598_s1 = inlined_call_operand.vmem [shape: bf16[256,64], index: 1, kind: input, shape index: {}]   ;;  %s8599_s2 = inlined_call_operand.vmem [shape: f32[24,64], index: 2, kind: input, shape index: {}]   ;;  %s8600_s3 = inlined_call_operand.vmem [shape: f32[24,24], index: 3, kind: input, shape index: {}]   ;;  %s8601_s4 = inlined_call_operand.vmem [shape: bf16[2,64,1536], index: 4, kind: input, shape index: {}]   ;;  %s8602_s5 = inlined_call_operand.vmem [shape: f32[2,1,1536], index: 5, kind: input, shape index: {}]   ;;  %s8603_s6 = inlined_call_operand.vmem [shape: bf16[2,512,64], index: 6, kind: input, shape index: {}]   ;;  %s8604_s7 = inlined_call_operand.vmem [shape: bf16[2,64,256], index: 7, kind: input, shape index: {}]   ;;  %s8605_s8 = inlined_call_operand.vmem [shape: f32[2,1,256], index: 8, kind: input, shape index: {}]   ;;  %s8606_s9 = inlined_call_operand.vmem [shape: bf16[2,256,64], index: 9, kind: input, shape index: {}]   ;;  %s8607_s10 = inlined_call_operand.vmem [shape: f32[2,6,64], index: 10, kind: input, shape index: {}]   ;;  %s8608_s11 = inlined_call_operand.vmem [shape: f32[2,64], index: 11, kind: input, shape index: {}]   ;;  %s8609_s12 = inlined_call_operand.vmem [shape: f32[2,24], index: 12, kind: input, shape index: {}]   ;;  %s8610_s13 = inlined_call_operand.vmem [shape: bf16[64,128], index: 13, kind: input, shape index: {}]   ;;  %s8611_s14 = inlined_call_operand.vmem [shape: f32[1,128], index: 14, kind: input, shape index: {}]   ;;  %s8612_s15 = inlined_call_operand.hbm [shape: f32[2,128], index: 15, kind: output, shape index: {}]  }
   0x1   :  { %v6497_v0 = vld [vmem:[%s8598_s1 + $0x40] sm:$0xff]   ;;  %v6499_v2 = vld [vmem:[%s8598_s1 + $0x48] sm:$0xff]   ;;  %v6501_v4 = vld [vmem:[%s8598_s1 + $0x50] sm:$0xff]  }
   0x2   :  { %v6498_v1 = vld [vmem:[%s8598_s1] sm:$0xff]   ;;  %5751 = vmatprep.subr.bf16.mxu0 %v6497_v0  ;;  %v6500_v3 = vld [vmem:[%s8598_s1 + $0x8] sm:$0xff]   ;;  %v6502_v5 = vld [vmem:[%s8598_s1 + $0x10] sm:$0xff]  }
   0x3   :  { %5752 = vmatpush3.bf16.msra.mxu0 %v6498_v1  ;;  %v6503_v6 = vld [vmem:[%s8598_s1 + $0x58] sm:$0xff]   ;;  %v6505_v8 = vld [vmem:[%s8598_s1 + $0x60] sm:$0xff]   ;;  %v6507_v10 = vld [vmem:[%s8598_s1 + $0x68] sm:$0xff]  }
   0x4   :  { %5753 = vmatprep.subr.bf16.mxu0 %v6499_v2  ;;  %v6504_v7 = vld [vmem:[%s8598_s1 + $0x18] sm:$0xff]   ;;  %v6506_v9 = vld [vmem:[%s8598_s1 + $0x20] sm:$0xff]   ;;  %v53_v11 = vld [vmem:[%s8597_s0 + $0x8] sm:$0xff] }
   0x5   :  { %v55_v12 = vld [vmem:[%s8597_s0 + $0x18] sm:$0xff]  ;;  %v6508_v13 = vld [vmem:[%s8598_s1 + $0x28] sm:$0xff]   ;;  %v6509_v15 = vld [vmem:[%s8598_s1 + $0x70] sm:$0xff]  }
   0x6   :  { %v59_v14 = vpack.c.bf16 %v55_v12, %v53_v11  ;;  %v6510_v16 = vld [vmem:[%s8598_s1 + $0x30] sm:$0xff]   ;;  %v6511_v17 = vld [vmem:[%s8598_s1 + $0x78] sm:$0xff]   ;;  %v52_v19 = vld [vmem:[%s8597_s0] sm:$0xff] }
   0x7   :  { %5754 = vmatpush3.bf16.msra.mxu0 %v6500_v3  ;;  %v6512_v18 = vld [vmem:[%s8598_s1 + $0x38] sm:$0xff]   ;;  %v54_v20 = vld [vmem:[%s8597_s0 + $0x10] sm:$0xff]  ;;  %v57_v21 = vld [vmem:[%s8597_s0 + $0x28] sm:$0xff] }
   0x8   :  { %5755 = vmatprep.subr.bf16.mxu0 %v6501_v4  ;;  %225 = vmatprep.mubr.bf16.mxu0 %v59_v14  ;;  %v58_v22 = vpack.c.bf16 %v54_v20, %v52_v19  ;;  %v61_v23 = vpack.c.bf16 %v57_v21, %v57_v21  ;;  %v56_v24 = vld [vmem:[%s8597_s0 + $0x20] sm:$0xff] }
   0x9   :  { %v60_v25 = vpack.c.bf16 %v56_v24, %v56_v24 }
   0xb   :  { %5756 = vmatpush3.bf16.msra.mxu0 %v6502_v5 }
   0xc   :  { %5757 = vmatprep.subr.bf16.mxu0 %v6503_v6 }
   0xf   :  { %5758 = vmatpush3.bf16.msra.mxu0 %v6504_v7 }
  0x10   :  { %5759 = vmatprep.subr.bf16.mxu0 %v6505_v8 }
  0x13   :  { %5760 = vmatpush3.bf16.msra.mxu0 %v6506_v9 }
  0x14   :  { %5761 = vmatprep.subr.bf16.mxu0 %v6507_v10 }
  0x17   :  { %5762 = vmatpush3.bf16.msra.mxu0 %v6508_v13 }
  0x18   :  { %5763 = vmatprep.subr.bf16.mxu0 %v6509_v15 }
  0x1b   :  { %5764 = vmatpush3.bf16.msra.mxu0 %v6510_v16 }
  0x1c   :  { %5765 = vmatprep.subr.bf16.mxu0 %v6511_v17 }
  0x1f   :  { %5766 = vmatpush3.bf16.msra.mxu0 %v6512_v18 }
  0x22   :  { %226 = vmatmul.mubr.bf16.vlgmr.msra.gmra.mrb[0].mxu0 %v58_v22 }
  0x23   :  { %233 = vmatprep.mubr.bf16.mxu0 %v61_v23 }
  0x2a   :  { %234 = vmatmul.mubr.bf16.gmra.mrb[4].mxu0 %v60_v25 }
  0x2b   :  { %20 = vsyncpa [#allocation3], 0  ;;  %v94_v27 = vld [vmem:[%s8599_s2] sm:$0xff]  ;;  %v95_v31 = vld [vmem:[%s8599_s2 + $0x8] sm:$0xff]  ;;  %vm400_vm0 = vcmask 523264   ;;  %v8615_v15 = vmov 0   ;;  %v441_v19 = vlaneseq }
  0x2c   :  { %v96_v38 = vld [vmem:[%s8599_s2 + $0x10] sm:$0xff]  ;;  %v6539_v13 = vld [vmem:[%s8601_s4 + $0xc] ss:$48 sps:$4 sm:$0xff]   ;;  %797 = vmatprep.mubr.bf16.mxu1 %v8615_v15  ;;  %899 = vmatprep.mubr.bf16.mxu0 %v8615_v15  ;;  %vm6962_vm1 = vmmov 0   ;;  %vm1151_vm2 = vcmask 195584  }
  0x2d   :  { %v6513_v61 = vld [vmem:[%s8601_s4 + $0x4] ss:$48 sps:$4 sm:$0xff]   ;;  %v6515_v63 = vld [vmem:[%s8601_s4 + $0x10] ss:$48 sps:$4 sm:$0xff]   ;;  %v7206_v23 = vshrl.u32 %v441_v19, 7 }
  0x2e   :  { %v6517_v62 = vld [vmem:[%s8601_s4 + $0x14] ss:$48 sps:$4 sm:$0xff]   ;;  %v6518_v0 = vld [vmem:[%s8601_s4] ss:$48 sps:$4 sm:$0xff]   ;;  %765 = vmatprep.subr.bf16.mxu1 %v6513_v61  ;;  %v6555_v61 = vld [vmem:[%s8601_s4 + $0x128] ss:$48 sps:$4 sm:$0xff]  }
  0x2f   :  { %867 = vmatprep.subr.bf16.mxu0 %v6517_v62  ;;  %766 = vmatpush1.bf16.msra.mxu1 %v6518_v0  ;;  %v6519_v1 = vld [vmem:[%s8601_s4 + $0x64] ss:$48 sps:$4 sm:$0xff]   ;;  %v6521_v3 = vld [vmem:[%s8601_s4 + $0x70] ss:$48 sps:$4 sm:$0xff]   ;;  %v6561_v0 = vld [vmem:[%s8601_s4 + $0x18] ss:$48 sps:$4 sm:$0xff]  }
  0x30   :  { %868 = vmatpush1.bf16.msra.mxu0 %v6515_v63  ;;  %v6523_v2 = vld [vmem:[%s8601_s4 + $0x74] ss:$48 sps:$4 sm:$0xff]   ;;  %v6524_v4 = vld [vmem:[%s8601_s4 + $0x60] ss:$48 sps:$4 sm:$0xff]   ;;  %767 = vmatprep.subr.bf16.mxu1 %v6519_v1  ;;  %v6563_v63 = vld [vmem:[%s8601_s4 + $0x1c] ss:$48 sps:$4 sm:$0xff]  }
  0x31   :  { %869 = vmatprep.subr.bf16.mxu0 %v6523_v2  ;;  %v6525_v5 = vld [vmem:[%s8601_s4 + $0xc4] ss:$48 sps:$4 sm:$0xff]   ;;  %v6527_v7 = vld [vmem:[%s8601_s4 + $0xd0] ss:$48 sps:$4 sm:$0xff]   ;;  %v6566_v1 = vld [vmem:[%s8601_s4 + $0x7c] ss:$48 sps:$4 sm:$0xff]  }
  0x32   :  { %v6529_v6 = vld [vmem:[%s8601_s4 + $0xd4] ss:$48 sps:$4 sm:$0xff]   ;;  %v6530_v8 = vld [vmem:[%s8601_s4 + $0xc0] ss:$48 sps:$4 sm:$0xff]   ;;  %v6564_v2 = vld [vmem:[%s8601_s4 + $0x78] ss:$48 sps:$4 sm:$0xff]  }
  0x33   :  { %768 = vmatpush1.bf16.msra.mxu1 %v6524_v4  ;;  %v6531_v9 = vld [vmem:[%s8601_s4 + $0x124] ss:$48 sps:$4 sm:$0xff]   ;;  %v6533_v11 = vld [vmem:[%s8601_s4 + $0x130] ss:$48 sps:$4 sm:$0xff]   ;;  %v6567_v4 = vld [vmem:[%s8601_s4 + $0xd8] ss:$48 sps:$4 sm:$0xff]  }
  0x34   :  { %870 = vmatpush1.bf16.msra.mxu0 %v6521_v3  ;;  %769 = vmatprep.subr.bf16.mxu1 %v6525_v5  ;;  %v6535_v10 = vld [vmem:[%s8601_s4 + $0x134] ss:$48 sps:$4 sm:$0xff]   ;;  %v6536_v12 = vld [vmem:[%s8601_s4 + $0x120] ss:$48 sps:$4 sm:$0xff]   ;;  %v6569_v3 = vld [vmem:[%s8601_s4 + $0xdc] ss:$48 sps:$4 sm:$0xff]  }
  0x35   :  { %871 = vmatprep.subr.bf16.mxu0 %v6529_v6  ;;  %v6542_v14 = vld [vmem:[%s8601_s4 + $0x24] ss:$48 sps:$4 sm:$0xff]   ;;  %v6558_v62 = vld [vmem:[%s8601_s4 + $0x140] ss:$48 sps:$4 sm:$0xff]   ;;  %v6572_v5 = vld [vmem:[%s8601_s4 + $0x13c] ss:$48 sps:$4 sm:$0xff]  }
  0x36   :  { %v6570_v6 = vld [vmem:[%s8601_s4 + $0x138] ss:$48 sps:$4 sm:$0xff]   ;;  %v7354_v19 = vld [vmem:[%s8602_s5] sm:$0xff] }
  0x37   :  { %770 = vmatpush1.bf16.msra.mxu1 %v6530_v8  ;;  %v6573_v8 = vld [vmem:[%s8601_s4 + $0x28] ss:$48 sps:$4 sm:$0xff]  }
  0x38   :  { %872 = vmatpush1.bf16.msra.mxu0 %v6527_v7  ;;  %771 = vmatprep.subr.bf16.mxu1 %v6531_v9  ;;  %v6575_v7 = vld [vmem:[%s8601_s4 + $0x2c] ss:$48 sps:$4 sm:$0xff]  }
  0x39   :  { %873 = vmatprep.subr.bf16.mxu0 %v6535_v10  ;;  %v6578_v9 = vld [vmem:[%s8601_s4 + $0x8c] ss:$48 sps:$4 sm:$0xff]   ;;  %v6576_v10 = vld [vmem:[%s8601_s4 + $0x88] ss:$48 sps:$4 sm:$0xff]  }
  0x3b   :  { %772 = vmatpush1.bf16.msra.mxu1 %v6536_v12  ;;  %v6579_v12 = vld [vmem:[%s8601_s4 + $0xe8] ss:$48 sps:$4 sm:$0xff]  }
  0x3c   :  { %874 = vmatpush1.bf16.msra.mxu0 %v6533_v11  ;;  %816 = vmatprep.subr.bf16.mxu1 %v6539_v13  ;;  %v6581_v11 = vld [vmem:[%s8601_s4 + $0xec] ss:$48 sps:$4 sm:$0xff]  }
  0x3d   :  { %969 = vmatprep.subr.bf16.mxu0 %v6542_v14  ;;  %v6584_v13 = vld [vmem:[%s8601_s4 + $0x14c] ss:$48 sps:$4 sm:$0xff]   ;;  %v6582_v14 = vld [vmem:[%s8601_s4 + $0x148] ss:$48 sps:$4 sm:$0xff]  }
  0xf5   :  { %v5767_v26 = vpop.f32.mrb[0].mxu0 }
  0xf6   :  { %v5768_v28 = vpop.f32.mrb[1].mxu0 }
  0xf7   :  { %v5769_v29 = vadd.f32 %v5768_v28, %v5767_v26  ;;  %v5770_v30 = vpop.f32.mrb[2].mxu0  ;;  %v399_v28 = vld [vmem:[%s8607_s10] sm:$0x3f] }
  0xf8   :  { %v5771_v32 = vpop.f32.mrb[3].mxu0 }
  0xf9   :  { %v7117_v33 = vadd.f32 %v5769_v29, %v94_v27  ;;  %v5772_v34 = vadd.f32 %v5771_v32, %v5770_v30  ;;  %v7209_v27 = vsub.s32 0, %v7206_v23 }
  0xfb   :  { %v7119_v35 = vadd.f32 %v5772_v34, %v95_v31  ;;  %v401_v36 = vsel %vm400_vm0, %v7117_v33, 0.0  ;;  %v444_v30 = vrot.slane %v399_v28, %v7209_v27  ;;  %v7216_v31 = vsub.s32 1, %v7206_v23 }
  0xfc   :  { %402 = vadd.xlane.f32.xlu0 %v401_v36 }
  0xfd   :  { %v5773_v37 = vpop.f32.mrb[4].mxu0  ;;  %v404_v41 = vsel %vm400_vm0, %v7119_v35, 0.0  ;;  %v451_v36 = vrot.slane %v399_v28, %v7216_v31 }
  0xfe   :  { %v5774_v39 = vpop.f32.mrb[5].mxu0 }
  0xff   :  { %v5775_v40 = vadd.f32 %v5774_v39, %v5773_v37  ;;  %v5776_v42 = vpop.f32.mrb[6].mxu0 }
 0x100   :  { %405 = vadd.xlane.f32.xlu0 %v404_v41  ;;  %v5777_v43 = vpop.f32.mrb[7].mxu0 }
 0x101   :  { %v7128_v44 = vadd.f32 %v5775_v40, %v96_v38 }
 0x103   :  { %v407_v45 = vsel %vm400_vm0, %v7128_v44, 0.0 }
 0x104   :  { %408 = vadd.xlane.f32.xlu1 %v407_v45  ;;  %v6537_v45 = vld [vmem:[%s8601_s4 + $0x8] ss:$48 sps:$4 sm:$0xff]  }
 0x189   :  { %v403_v46 = vpop.xlane.xlu0 %402 }
 0x18a   :  { %v411_v47 = vmul.f32 0.015625, %v403_v46  ;;  %v6540_v46 = vld [vmem:[%s8601_s4 + $0x20] ss:$48 sps:$4 sm:$0xff]  }
 0x18c   :  { %v7133_v48 = vsub.f32 %v7117_v33, %v411_v47 }
 0x18d   :  { %v406_v49 = vpop.xlane.xlu0 %405 }
 0x18e   :  { %v412_v50 = vmul.f32 0.015625, %v406_v49  ;;  %v417_v51 = vmul.f32 %v7133_v48, %v7133_v48  ;;  %v6545_v49 = vld [vmem:[%s8601_s4 + $0x6c] ss:$48 sps:$4 sm:$0xff]  }
 0x190   :  { %v7138_v52 = vsub.f32 %v7119_v35, %v412_v50  ;;  %v420_v53 = vsel %vm400_vm0, %v417_v51, 0.0  ;;  %v6548_v50 = vld [vmem:[%s8601_s4 + $0x84] ss:$48 sps:$4 sm:$0xff]   ;;  %v6543_v51 = vld [vmem:[%s8601_s4 + $0x68] ss:$48 sps:$4 sm:$0xff]  }
 0x191   :  { %v409_v54 = vpop.xlane.xlu1 %408  ;;  %421 = vadd.xlane.f32.xlu1 %v420_v53 }
 0x192   :  { %v413_v55 = vmul.f32 0.015625, %v409_v54  ;;  %v418_v56 = vmul.f32 %v7138_v52, %v7138_v52  ;;  %v6551_v54 = vld [vmem:[%s8601_s4 + $0xcc] ss:$48 sps:$4 sm:$0xff]  }
 0x194   :  { %v7144_v57 = vsub.f32 %v7128_v44, %v413_v55  ;;  %v423_v58 = vsel %vm400_vm0, %v418_v56, 0.0  ;;  %v6554_v55 = vld [vmem:[%s8601_s4 + $0xe4] ss:$48 sps:$4 sm:$0xff]   ;;  %v6549_v56 = vld [vmem:[%s8601_s4 + $0xc8] ss:$48 sps:$4 sm:$0xff]  }
 0x195   :  { %424 = vadd.xlane.f32.xlu0 %v423_v58 }
 0x196   :  { %v419_v59 = vmul.f32 %v7144_v57, %v7144_v57 }
 0x198   :  { %v426_v60 = vsel %vm400_vm0, %v419_v59, 0.0  ;;  %v6557_v59 = vld [vmem:[%s8601_s4 + $0x12c] ss:$48 sps:$4 sm:$0xff]  }
 0x199   :  { %427 = vadd.xlane.f32.xlu1 %v426_v60  ;;  %v6560_v60 = vld [vmem:[%s8601_s4 + $0x144] ss:$48 sps:$4 sm:$0xff]  }
 0x21e   :  { %v422_v16 = vpop.xlane.xlu1 %421 }
 0x21f   :  { %v429_v17 = vmul.f32 0.015625, %v422_v16  ;;  %v6961_v16 = vmov 0.0|0.0  }
 0x221   :  { %v432_v18 = vadd.f32 1e-12, %v429_v17  ;;  %v6963_v17 = vmov 0.0  }
 0x222   :  { %v425_v20 = vpop.xlane.xlu0 %424 }
 0x223   :  { %6781 = vrsqrt.f32 %v432_v18  ;;  %v430_v21 = vmul.f32 0.015625, %v425_v20  ;;  %v7349_v18 = vsub.s32 4, %v7206_v23  ;;  %v7357_v20 = vsub.s32 5, %v7206_v23 }
 0x225   :  { %v433_v22 = vadd.f32 1e-12, %v430_v21  ;;  %v478_v21 = vrot.slane %v7354_v19, %v7349_v18 }
 0x226   :  { %v428_v24 = vpop.xlane.xlu1 %427 }
 0x227   :  { %6783 = vrsqrt.f32 %v433_v22  ;;  %v431_v25 = vmul.f32 0.015625, %v428_v24 }
 0x229   :  { %v434_v26 = vadd.f32 1e-12, %v431_v25  ;;  %v482_v25 = vrot.slane %v7354_v19, %v7357_v20 }
 0x22b   :  { %6785 = vrsqrt.f32 %v434_v26 }
 0x22d   :  { %v6782_v29 = vpop.eup %6781 }
 0x22e   :  { %v438_v32 = vmul.f32 %v6782_v29, %v7133_v48 }
 0x230   :  { %v445_v37 = vmul.f32 %v444_v30, %v438_v32 }
 0x231   :  { %v6784_v34 = vpop.eup %6783 }
 0x232   :  { %v439_v38 = vmul.f32 %v6784_v34, %v7138_v52  ;;  %v452_v41 = vadd.f32 %v451_v36, %v445_v37  ;;  %v6546_v52 = vld [vmem:[%s8601_s4 + $0x80] ss:$48 sps:$4 sm:$0xff]  }
 0x234   :  { %v446_v39 = vmul.f32 %v444_v30, %v439_v38 }
 0x235   :  { %v6786_v40 = vpop.eup %6785 }
 0x236   :  { %v453_v42 = vadd.f32 %v451_v36, %v446_v39  ;;  %v440_v43 = vmul.f32 %v6786_v40, %v7144_v57  ;;  %v6552_v57 = vld [vmem:[%s8601_s4 + $0xe0] ss:$48 sps:$4 sm:$0xff]  }
 0x238   :  { %v447_v47 = vmul.f32 %v444_v30, %v440_v43  ;;  %v7228_v48 = vpack.c.bf16 %v453_v42, %v452_v41 }
 0x23a   :  { %5376 = vmatmul.mubr.msk.bf16.vlgmr.msra.gmra.mrb[0].mxu1 %vm400_vm0, %v7228_v48  ;;  %5380 = vmatmul.mubr.msk.bf16.vlgmr.msra.gmra.mrb[8].mxu0 %vm400_vm0, %v7228_v48  ;;  %v454_v53 = vadd.f32 %v451_v36, %v447_v47 }
 0x23b   :  { %817 = vmatpush1.bf16.msra.mxu1 %v6537_v45  ;;  %970 = vmatpush1.bf16.msra.mxu0 %v6540_v46 }
 0x23c   :  { %818 = vmatprep.subr.bf16.mxu1 %v6545_v49  ;;  %971 = vmatprep.subr.bf16.mxu0 %v6548_v50  ;;  %v456_v58 = vpack.c.bf16 %v454_v53, %v454_v53 }
 0x23d   :  { %807 = vmatprep.mubr.bf16.mxu1 %v8615_v15  ;;  %909 = vmatprep.mubr.bf16.mxu0 %v8615_v15 }
 0x23f   :  { %819 = vmatpush1.bf16.msra.mxu1 %v6543_v51  ;;  %972 = vmatpush1.bf16.msra.mxu0 %v6546_v52  ;;  %v7373_v51 = vld [vmem:[%s8602_s5 + $0x8] sm:$0xf]  ;;  %v462_v52 = vrot.slane %v7354_v19, %v7209_v27 }
 0x240   :  { %820 = vmatprep.subr.bf16.mxu1 %v6551_v54  ;;  %973 = vmatprep.subr.bf16.mxu0 %v6554_v55  ;;  %v498_v54 = vrot.slane %v7373_v51, %v7216_v31  ;;  %v494_v55 = vrot.slane %v7373_v51, %v7209_v27 }
 0x242   :  { %5377 = vmatmul.mubr.msk.bf16.gmra.mrb[4].mxu1 %vm400_vm0, %v456_v58  ;;  %5381 = vmatmul.mubr.msk.bf16.gmra.mrb[12].mxu0 %vm400_vm0, %v456_v58 }
 0x243   :  { %821 = vmatpush1.bf16.msra.mxu1 %v6549_v56  ;;  %974 = vmatpush1.bf16.msra.mxu0 %v6552_v57 }
 0x244   :  { %822 = vmatprep.subr.bf16.mxu1 %v6557_v59  ;;  %975 = vmatprep.subr.bf16.mxu0 %v6560_v60 }
 0x245   :  { %848 = vmatprep.mubr.bf16.mxu1 %v8615_v15  ;;  %1001 = vmatprep.mubr.bf16.mxu0 %v8615_v15 }
 0x247   :  { %823 = vmatpush1.bf16.msra.mxu1 %v6555_v61  ;;  %976 = vmatpush1.bf16.msra.mxu0 %v6558_v62 }
 0x248   :  { %918 = vmatprep.subr.bf16.mxu1 %v6563_v63  ;;  %6441 = vmatprep.subr.bf16.mxu0 %v6961_v16 }
 0x24a   :  { %5378 = vmatmul.mubr.msk.bf16.vlgmr.msra.gmra.mrb[8].mxu1 %vm400_vm0, %v7228_v48  ;;  %5384 = vmatmul.mubr.msk.bf16.vlgmr.msra.gmra.mrb[16].mxu0 %vm400_vm0, %v7228_v48 }
 0x24b   :  { %919 = vmatpush1.bf16.msra.mxu1 %v6561_v0  ;;  %858 = vmatprep.mubr.bf16.mxu1 %v8615_v15 }
 0x24c   :  { %920 = vmatprep.subr.bf16.mxu1 %v6566_v1  ;;  %1011 = vmatprep.mubr.bf16.mxu0 %v8615_v15 }
 0x24f   :  { %921 = vmatpush1.bf16.msra.mxu1 %v6564_v2 }
 0x250   :  { %922 = vmatprep.subr.bf16.mxu1 %v6569_v3 }
 0x252   :  { %5379 = vmatmul.mubr.msk.bf16.gmra.mrb[12].mxu1 %vm400_vm0, %v456_v58  ;;  %5385 = vmatmul.mubr.msk.bf16.gmra.mrb[20].mxu0 %vm400_vm0, %v456_v58 }
 0x253   :  { %923 = vmatpush1.bf16.msra.mxu1 %v6567_v4  ;;  %950 = vmatprep.mubr.bf16.mxu1 %v8615_v15 }
 0x254   :  { %924 = vmatprep.subr.bf16.mxu1 %v6572_v5  ;;  %6026 = vmatprep.mubr.msk.f32.mxu0 %vm6962_vm1, %v6963_v17 }
 0x257   :  { %925 = vmatpush1.bf16.msra.mxu1 %v6570_v6 }
 0x258   :  { %1020 = vmatprep.subr.bf16.mxu1 %v6575_v7 }
 0x25a   :  { %5382 = vmatmul.mubr.msk.bf16.vlgmr.msra.gmra.mrb[16].mxu1 %vm400_vm0, %v7228_v48 }
 0x25b   :  { %1021 = vmatpush1.bf16.msra.mxu1 %v6573_v8  ;;  %960 = vmatprep.mubr.bf16.mxu1 %v8615_v15  ;;  %v466_v8 = vrot.slane %v7354_v19, %v7216_v31 }
 0x25c   :  { %1022 = vmatprep.subr.bf16.mxu1 %v6578_v9 }
 0x25f   :  { %1023 = vmatpush1.bf16.msra.mxu1 %v6576_v10 }
 0x260   :  { %1024 = vmatprep.subr.bf16.mxu1 %v6581_v11 }
 0x262   :  { %5383 = vmatmul.mubr.msk.bf16.gmra.mrb[20].mxu1 %vm400_vm0, %v456_v58 }
 0x263   :  { %1025 = vmatpush1.bf16.msra.mxu1 %v6579_v12  ;;  %1052 = vmatprep.mubr.bf16.mxu1 %v8615_v15 }
 0x264   :  { %1026 = vmatprep.subr.bf16.mxu1 %v6584_v13 }
 0x267   :  { %1027 = vmatpush1.bf16.msra.mxu1 %v6582_v14 }
 0x268   :  { %6444 = vmatprep.subr.bf16.mxu1 %v6961_v16 }
 0x26a   :  { %5386 = vmatmul.mubr.msk.bf16.vlgmr.msra.gmra.mrb[24].mxu1 %vm400_vm0, %v7228_v48 }
 0x26b   :  { %1062 = vmatprep.mubr.bf16.mxu1 %v8615_v15 }
 0x272   :  { %5387 = vmatmul.mubr.msk.bf16.gmra.mrb[28].mxu1 %vm400_vm0, %v456_v58 }
 0x273   :  { %6041 = vmatprep.mubr.msk.f32.mxu1 %vm6962_vm1, %v6963_v17 }
 0x30d   :  { %v799_v22 = vpop.f32.mrb[0].mxu1  ;;  %v901_v24 = vpop.f32.mrb[8].mxu0 }
 0x30e   :  { %v7363_v26 = vpop.f32.mrb[1].mxu1  ;;  %v903_v28 = vpop.f32.mrb[9].mxu0  ;;  %v902_v32 = vadd.f32 %v901_v24, %v478_v21  ;;  %v800_v56 = vadd.f32 %v799_v22, %v462_v52 }
 0x30f   :  { %v803_v29 = vpop.f32.mrb[2].mxu1  ;;  %v905_v30 = vpop.f32.mrb[10].mxu0  ;;  %v904_v38 = vadd.f32 %v903_v28, %v482_v25 }
 0x310   :  { %v906_v34 = vadd.f32 %v905_v30, %v478_v21  ;;  %v7365_v36 = vpop.f32.mrb[3].mxu1  ;;  %v907_v37 = vpop.f32.mrb[11].mxu0  ;;  %v804_v4 = vadd.f32 %v803_v29, %v462_v52 }
 0x311   :  { %v908_v39 = vadd.f32 %v907_v37, %v482_v25 }
 0x312   :  { %v6442_v40 = vpack.c.bf16 %v906_v34, %v902_v32  ;;  %v8614_v32 = vsub.s32 6, %v7206_v23  ;;  %v802_v34 = vadd.f32 %v7363_v26, %v466_v8 }
 0x313   :  { %v6448_v41 = vpack.c.bf16 %v908_v39, %v904_v38  ;;  %v806_v38 = vadd.f32 %v7365_v36, %v466_v8 }
 0x314   :  { %6443 = vmatpush3.bf16.xpose.msra.mxu0 %v6442_v40  ;;  %v7419_v37 = vrot.slane %v7354_v19, %v8614_v32 }
 0x315   :  { %v809_v42 = vpop.f32.mrb[4].mxu1  ;;  %v911_v43 = vpop.f32.mrb[12].mxu0  ;;  %6024 = vmatprep.subr.mxu0 %v6963_v17 }
 0x316   :  { %v7368_v45 = vpop.f32.mrb[5].mxu1  ;;  %v913_v46 = vpop.f32.mrb[13].mxu0  ;;  %v912_v53 = vadd.f32 %v911_v43, %v478_v21  ;;  %v810_v9 = vadd.f32 %v809_v42, %v462_v52 }
 0x317   :  { %v813_v47 = vpop.f32.mrb[6].mxu1  ;;  %v915_v48 = vpop.f32.mrb[14].mxu0  ;;  %v914_v12 = vadd.f32 %v913_v46, %v482_v25  ;;  %v8613_v25 = vsub.s32 7, %v7206_v23  ;;  %v812_v36 = vadd.f32 %v7368_v45, %v466_v8  ;;  %v7453_v45 = vsub.s32 2, %v7206_v23 }
 0x318   :  { %v814_v49 = vpop.f32.mrb[7].mxu1  ;;  %v916_v50 = vpop.f32.mrb[15].mxu0 }
 0x319   :  { %v7427_v26 = vrot.slane %v7354_v19, %v8613_v25 }
 0x31c   :  { %6025 = vmatpush3.xpose.msra.mxu0 %v912_v53 }
 0x31d   :  { %v7381_v57 = vpop.f32.mrb[8].mxu1  ;;  %v1003_v58 = vpop.f32.mrb[16].mxu0  ;;  %6447 = vmatprep.subr.bf16.mxu0 %v6961_v16 }
 0x31e   :  { %v7384_v59 = vpop.f32.mrb[9].mxu1  ;;  %v1005_v60 = vpop.f32.mrb[17].mxu0  ;;  %v1004_v0 = vadd.f32 %v1003_v58, %v494_v55  ;;  %v502_v58 = vrot.slane %v7373_v51, %v7453_v45 }
 0x31f   :  { %v7386_v61 = vadd.f32 %v1005_v60, %v498_v54  ;;  %v7388_v62 = vpop.f32.mrb[10].mxu1  ;;  %v1007_v63 = vpop.f32.mrb[18].mxu0  ;;  %6027 = vmatmul.mubr.f32.vlgmr.msra.gmra.mrb[24].mxu0 %v800_v56  ;;  %v7456_v56 = vsub.s32 3, %v7206_v23 }
 0x320   :  { %v1008_v1 = vadd.f32 %v1007_v63, %v494_v55  ;;  %v7390_v2 = vpop.f32.mrb[11].mxu1  ;;  %v1009_v3 = vpop.f32.mrb[19].mxu0  ;;  %6449 = vmatpush3.bf16.xpose.msra.mxu0 %v6448_v41  ;;  %6029 = vmatprep.mubr.msk.f32.mxu0 %vm6962_vm1, %v6963_v17 }
 0x321   :  { %v7394_v5 = vadd.f32 %v1009_v3, %v498_v54  ;;  %6054 = vmatprep.subr.mxu0 %v6963_v17  ;;  %v506_v60 = vrot.slane %v7373_v51, %v7456_v56 }
 0x322   :  { %v6445_v6 = vpack.c.bf16 %v1008_v1, %v1004_v0 }
 0x323   :  { %v6451_v7 = vpack.c.bf16 %v7394_v5, %v7386_v61  ;;  %6030 = vmatmul.mubr.f32.gmra.mrb[26].mxu0 %v804_v4 }
 0x324   :  { %6446 = vmatpush3.bf16.msra.mxu1 %v6445_v6  ;;  %6032 = vmatprep.mubr.msk.f32.mxu0 %vm6962_vm1, %v6963_v17 }
 0x325   :  { %v7403_v10 = vpop.f32.mrb[12].mxu1  ;;  %v1013_v11 = vpop.f32.mrb[20].mxu0  ;;  %6039 = vmatprep.subr.mxu1 %v6963_v17 }
 0x326   :  { %v1014_v13 = vadd.f32 %v1013_v11, %v494_v55  ;;  %v7406_v14 = vpop.f32.mrb[13].mxu1  ;;  %v1015_v21 = vpop.f32.mrb[21].mxu0 }
 0x327   :  { %v7408_v22 = vadd.f32 %v1015_v21, %v498_v54  ;;  %v864_v24 = vpop.f32.mrb[14].mxu1  ;;  %v1017_v28 = vpop.f32.mrb[22].mxu0  ;;  %6033 = vmatmul.mubr.f32.gmra.mrb[28].mxu0 %v810_v9 }
 0x328   :  { %v865_v29 = vpop.f32.mrb[15].mxu1  ;;  %v1018_v30 = vpop.f32.mrb[23].mxu0  ;;  %6040 = vmatpush3.msra.mxu1 %v1014_v13  ;;  %6055 = vmatpush3.xpose.msra.mxu0 %v914_v12 }
 0x329   :  { %6056 = vmatprep.mubr.msk.f32.mxu0 %vm6962_vm1, %v6963_v17  ;;  %6450 = vmatprep.subr.bf16.mxu1 %v6961_v16  ;;  %v7481_v30 = vld [vmem:[%s8600_s3] sm:$0xff] }
 0x32b   :  { %6057 = vmatmul.mubr.f32.vlgmr.msra.gmra.mrb[30].mxu0 %v802_v34 }
 0x32c   :  { %6059 = vmatprep.mubr.msk.f32.mxu0 %vm6962_vm1, %v6963_v17 }
 0x32d   :  { %v952_v39 = vpop.f32.mrb[16].mxu1 }
 0x32e   :  { %v954_v40 = vpop.f32.mrb[17].mxu1  ;;  %v7430_v42 = vadd.f32 %v952_v39, %v7419_v37 }
 0x32f   :  { %v956_v41 = vpop.f32.mrb[18].mxu1  ;;  %6060 = vmatmul.mubr.f32.gmra.mrb[32].mxu0 %v806_v38  ;;  %v7439_v47 = vadd.f32 %v954_v40, %v7427_v26  ;;  %v7487_v40 = vld [vmem:[%s8600_s3 + $0x8] sm:$0xff] }
 0x330   :  { %v7433_v43 = vadd.f32 %v956_v41, %v7419_v37  ;;  %v958_v46 = vpop.f32.mrb[19].mxu1  ;;  %6062 = vmatprep.mubr.msk.f32.mxu0 %vm6962_vm1, %v6963_v17 }
 0x331   :  { %v7442_v48 = vadd.f32 %v958_v46, %v7427_v26 }
 0x332   :  { %v6454_v49 = vpack.c.bf16 %v7433_v43, %v7430_v42 }
 0x333   :  { %6063 = vmatmul.mubr.f32.gmra.mrb[34].mxu0 %v812_v36  ;;  %v8617_v42 = vpack.c.bf16 %v7442_v48, %v7439_v47 }
 0x335   :  { %v7448_v52 = vpop.f32.mrb[20].mxu1 }
 0x336   :  { %v7450_v53 = vpop.f32.mrb[21].mxu1 }
 0x337   :  { %v966_v54 = vpop.f32.mrb[22].mxu1  ;;  %v965_v47 = vadd.f32 %v7450_v53, %v7427_v26 }
 0x338   :  { %v967_v55 = vpop.f32.mrb[23].mxu1 }
 0x339   :  { %v7494_v55 = vld [vmem:[%s8600_s3 + $0x10] sm:$0xff] }
 0x33d   :  { %v1054_v63 = vpop.f32.mrb[24].mxu1 }
 0x33e   :  { %v7462_v0 = vadd.f32 %v1054_v63, %v502_v58  ;;  %v1056_v1 = vpop.f32.mrb[25].mxu1 }
 0x33f   :  { %v7464_v3 = vadd.f32 %v1056_v1, %v506_v60  ;;  %v1058_v4 = vpop.f32.mrb[26].mxu1 }
 0x340   :  { %v7466_v6 = vadd.f32 %v1058_v4, %v502_v58  ;;  %v1060_v8 = vpop.f32.mrb[27].mxu1 }
 0x341   :  { %v7468_v9 = vadd.f32 %v1060_v8, %v506_v60 }
 0x342   :  { %v6457_v11 = vpack.c.bf16 %v7466_v6, %v7462_v0  ;;  %v470_v0 = vrot.slane %v7354_v19, %v7453_v45  ;;  %v963_v6 = vadd.f32 %v7448_v52, %v7419_v37 }
 0x343   :  { %v8618_v48 = vpack.c.bf16 %v7468_v9, %v7464_v3 }
 0x344   :  { %v855_v43 = vadd.f32 %v7388_v62, %v470_v0  ;;  %v861_v37 = vadd.f32 %v7403_v10, %v470_v0 }
 0x345   :  { %v1064_v13 = vpop.f32.mrb[28].mxu1 }
 0x346   :  { %v7474_v51 = vadd.f32 %v1064_v13, %v502_v58  ;;  %v1066_v21 = vpop.f32.mrb[29].mxu1 }
 0x347   :  { %v7476_v24 = vadd.f32 %v1066_v21, %v506_v60  ;;  %v1068_v28 = vpop.f32.mrb[30].mxu1 }
 0x348   :  { %v1069_v29 = vpop.f32.mrb[31].mxu1 }
 0x3f2   :  { %v1137_v34 = vpop.f32.mrb[24].mxu0 }
 0x3f3   :  { %v1138_v38 = vadd.f32 %v1137_v34, %v7481_v30  ;;  %v6028_v39 = vpop.f32.mrb[25].mxu0 }
 0x3f5   :  { %v1152_v41 = vsel %vm1151_vm2, %v1138_v38, -inf }
 0x3f6   :  { %1153 = vmax.xlane.f32.xlu0 %v1152_v41  ;;  %v1142_v46 = vpop.f32.mrb[26].mxu0 }
 0x3f7   :  { %v1143_v36 = vadd.f32 %v1142_v46, %v7487_v40  ;;  %v6031_v54 = vpop.f32.mrb[27].mxu0 }
 0x3f9   :  { %v1155_v58 = vsel %vm1151_vm2, %v1143_v36, -inf }
 0x3fa   :  { %1156 = vmax.xlane.f32.xlu1 %v1155_v58  ;;  %v1147_v60 = vpop.f32.mrb[28].mxu0 }
 0x3fb   :  { %v1148_v63 = vadd.f32 %v1147_v60, %v7494_v55  ;;  %v6034_v1 = vpop.f32.mrb[29].mxu0 }
 0x3fd   :  { %v1158_v4 = vsel %vm1151_vm2, %v1148_v63, -inf }
 0x3fe   :  { %1159 = vmax.xlane.f32.xlu0 %v1158_v4  ;;  %v1342_v8 = vpop.f32.mrb[30].mxu0 }
 0x3ff   :  { %v1343_v13 = vadd.f32 %v1342_v8, %v7481_v30  ;;  %v6058_v21 = vpop.f32.mrb[31].mxu0 }
 0x401   :  { %v1356_v28 = vsel %vm1151_vm2, %v1343_v13, -inf }
 0x402   :  { %1357 = vmax.xlane.f32.xlu1 %v1356_v28  ;;  %v1347_v29 = vpop.f32.mrb[32].mxu0 }
 0x403   :  { %v1348_v34 = vadd.f32 %v1347_v29, %v7487_v40  ;;  %v6061_v39 = vpop.f32.mrb[33].mxu0 }
 0x405   :  { %v1359_v41 = vsel %vm1151_vm2, %v1348_v34, -inf }
 0x406   :  { %1360 = vmax.xlane.f32.xlu0 %v1359_v41  ;;  %v1352_v46 = vpop.f32.mrb[34].mxu0 }
 0x407   :  { %v1353_v54 = vadd.f32 %v1352_v46, %v7494_v55  ;;  %v6064_v58 = vpop.f32.mrb[35].mxu0 }
 0x409   :  { %v1362_v60 = vsel %vm1151_vm2, %v1353_v54, -inf }
 0x40a   :  { %1363 = vmax.xlane.f32.xlu1 %v1362_v60 }
 0x483   :  { %v1154_v1 = vpop.xlane.xlu0 %1153 }
 0x484   :  { %v1161_v4 = vsub.f32 %v1138_v38, %v1154_v1 }
 0x486   :  { %v1164_v8 = vmul.f32 1.442695, %v1161_v4 }
 0x487   :  { %v1157_v21 = vpop.xlane.xlu1 %1156 }
 0x488   :  { %6787 = vpow2.f32 %v1164_v8  ;;  %v1162_v28 = vsub.f32 %v1143_v36, %v1157_v21 }
 0x48a   :  { %v1166_v25 = vmul.f32 1.442695, %v1162_v28 }
 0x48b   :  { %v1160_v32 = vpop.xlane.xlu0 %1159 }
 0x48c   :  { %6789 = vpow2.f32 %v1166_v25  ;;  %v1163_v29 = vsub.f32 %v1148_v63, %v1160_v32 }
 0x48e   :  { %v1168_v39 = vmul.f32 1.442695, %v1163_v29  ;;  %v6589_v29 = vld [vmem:[%s8603_s6 + $0x48] sm:$0xff]  }
 0x48f   :  { %v1358_v15 = vpop.xlane.xlu1 %1357 }
 0x490   :  { %6791 = vpow2.f32 %v1168_v39  ;;  %v1365_v41 = vsub.f32 %v1343_v13, %v1358_v15  ;;  %v6591_v39 = vld [vmem:[%s8603_s6 + $0x50] sm:$0xff]  }
 0x492   :  { %v6788_v12 = vpop.eup %6787  ;;  %v1368_v46 = vmul.f32 1.442695, %v1365_v41  ;;  %v6593_v41 = vld [vmem:[%s8603_s6 + $0x58] sm:$0xff]  }
 0x493   :  { %v1361_v58 = vpop.xlane.xlu0 %1360  ;;  %v1170_v50 = vsel %vm1151_vm2, %v6788_v12, 0.0 }
 0x494   :  { %6793 = vpow2.f32 %v1368_v46  ;;  %v1366_v60 = vsub.f32 %v1348_v34, %v1361_v58  ;;  %1171 = vadd.xlane.f32.xlu0 %v1170_v50 }
 0x496   :  { %v6790_v38 = vpop.eup %6789  ;;  %v1370_v1 = vmul.f32 1.442695, %v1366_v60 }
 0x497   :  { %v1364_v4 = vpop.xlane.xlu1 %1363  ;;  %v1173_v36 = vsel %vm1151_vm2, %v6790_v38, 0.0 }
 0x498   :  { %6795 = vpow2.f32 %v1370_v1  ;;  %v1367_v25 = vsub.f32 %v1353_v54, %v1364_v4  ;;  %1174 = vadd.xlane.f32.xlu1 %v1173_v36  ;;  %v6587_v54 = vld [vmem:[%s8603_s6 + $0x40] sm:$0xff]  }
 0x499   :  { %6080 = vmatprep.subr.bf16.mxu0 %v6587_v54 }
 0x49a   :  { %v6792_v32 = vpop.eup %6791  ;;  %v1372_v63 = vmul.f32 1.442695, %v1367_v25  ;;  %6081 = vmatpush3.bf16.msra.mxu0 %v6587_v54 }
 0x49b   :  { %v1176_v15 = vsel %vm1151_vm2, %v6792_v32, 0.0  ;;  %6082 = vmatprep.subr.bf16.mxu0 %v6589_v29 }
 0x49c   :  { %6797 = vpow2.f32 %v1372_v63  ;;  %1177 = vadd.xlane.f32.xlu0 %v1176_v15 }
 0x49e   :  { %v6794_v13 = vpop.eup %6793  ;;  %6083 = vmatpush3.bf16.msra.mxu0 %v6589_v29  ;;  %v6590_v29 = vld [vmem:[%s8603_s6 + $0x18] sm:$0xff]  }
 0x49f   :  { %v1374_v8 = vsel %vm1151_vm2, %v6794_v13, 0.0  ;;  %6084 = vmatprep.subr.bf16.mxu0 %v6591_v39 }
 0x4a0   :  { %1375 = vadd.xlane.f32.xlu1 %v1374_v8 }
 0x4a2   :  { %v6796_v34 = vpop.eup %6795  ;;  %6085 = vmatpush3.bf16.msra.mxu0 %v6591_v39  ;;  %v6594_v39 = vld [vmem:[%s8603_s6 + $0x28] sm:$0xff]  }
 0x4a3   :  { %v1377_v50 = vsel %vm1151_vm2, %v6796_v34, 0.0  ;;  %6086 = vmatprep.subr.bf16.mxu0 %v6593_v41 }
 0x4a4   :  { %1378 = vadd.xlane.f32.xlu0 %v1377_v50  ;;  %v6586_v50 = vld [vmem:[%s8603_s6 + $0x8] sm:$0xff]  }
 0x4a6   :  { %v6798_v21 = vpop.eup %6797  ;;  %6087 = vmatpush3.bf16.msra.mxu0 %v6593_v41  ;;  %v6596_v41 = vld [vmem:[%s8603_s6 + $0x30] sm:$0xff]  }
 0x4a7   :  { %v1380_v28 = vsel %vm1151_vm2, %v6798_v21, 0.0 }
 0x4a8   :  { %1381 = vadd.xlane.f32.xlu1 %v1380_v28  ;;  %v6588_v28 = vld [vmem:[%s8603_s6 + $0x10] sm:$0xff]  }
 0x521   :  { %v1172_v46 = vpop.xlane.xlu0 %1171 }
 0x522   :  { %6799 = vrcp.f32 %v1172_v46  ;;  %v6597_v46 = vld [vmem:[%s8603_s6 + $0x68] sm:$0xff]  }
 0x525   :  { %v1175_v58 = vpop.xlane.xlu1 %1174 }
 0x526   :  { %6801 = vrcp.f32 %v1175_v58  ;;  %v6598_v58 = vld [vmem:[%s8603_s6 + $0x38] sm:$0xff]  }
 0x529   :  { %v1178_v60 = vpop.xlane.xlu0 %1177 }
 0x52a   :  { %6803 = vrcp.f32 %v1178_v60  ;;  %v6599_v60 = vld [vmem:[%s8603_s6 + $0x70] sm:$0xff]  }
 0x52c   :  { %v6800_v1 = vpop.eup %6799 }
 0x52d   :  { %v1182_v4 = vmul.f32 %v6800_v1, %v6788_v12  ;;  %v1376_v36 = vpop.xlane.xlu1 %1375  ;;  %v6585_v12 = vld [vmem:[%s8603_s6] sm:$0xff]   ;;  %v6600_v1 = vld [vmem:[%s8603_s6 + $0x78] sm:$0xff]  }
 0x52e   :  { %6805 = vrcp.f32 %v1376_v36 }
 0x52f   :  { %6042 = vmatmul.mubr.msk.f32.vlgmr.msra.gmra.mrb[32].mxu1 %vm1151_vm2, %v1182_v4 }
 0x530   :  { %v6802_v25 = vpop.eup %6801  ;;  %6452 = vmatpush3.bf16.msra.mxu1 %v6451_v7  ;;  %6044 = vmatprep.mubr.msk.f32.mxu1 %vm6962_vm1, %v6963_v17 }
 0x531   :  { %v1379_v63 = vpop.xlane.xlu0 %1378  ;;  %6069 = vmatprep.subr.mxu1 %v6963_v17  ;;  %v1183_v15 = vmul.f32 %v6802_v25, %v6790_v38 }
 0x532   :  { %6807 = vrcp.f32 %v1379_v63 }
 0x533   :  { %6045 = vmatmul.mubr.msk.f32.gmra.mrb[34].mxu1 %vm1151_vm2, %v1183_v15 }
 0x534   :  { %v6804_v8 = vpop.eup %6803  ;;  %6070 = vmatpush3.msra.mxu1 %v7408_v22  ;;  %6047 = vmatprep.mubr.msk.f32.mxu1 %vm6962_vm1, %v6963_v17 }
 0x535   :  { %v1382_v61 = vpop.xlane.xlu1 %1381  ;;  %v1184_v5 = vmul.f32 %v6804_v8, %v6792_v32  ;;  %6100 = vmatprep.subr.bf16.mxu1 %v6585_v12 }
 0x536   :  { %6809 = vrcp.f32 %v1382_v61 }
 0x537   :  { %6048 = vmatmul.mubr.msk.f32.gmra.mrb[36].mxu1 %vm1151_vm2, %v1184_v5 }
 0x538   :  { %v6806_v7 = vpop.eup %6805  ;;  %6071 = vmatprep.mubr.msk.f32.mxu1 %vm6962_vm1, %v6963_v17 }
 0x539   :  { %v1386_v38 = vmul.f32 %v6806_v7, %v6794_v13 }
 0x53b   :  { %6072 = vmatmul.mubr.msk.f32.vlgmr.msra.gmra.mrb[38].mxu1 %vm1151_vm2, %v1386_v38 }
 0x53c   :  { %v6808_v22 = vpop.eup %6807  ;;  %6074 = vmatprep.mubr.msk.f32.mxu1 %vm6962_vm1, %v6963_v17  ;;  %6101 = vmatpush3.bf16.msra.mxu1 %v6585_v12 }
 0x53d   :  { %v1387_v32 = vmul.f32 %v6808_v22, %v6796_v34  ;;  %6102 = vmatprep.subr.bf16.mxu1 %v6586_v50  ;;  %v6592_v34 = vld [vmem:[%s8603_s6 + $0x20] sm:$0xff]  }
 0x53f   :  { %6075 = vmatmul.mubr.msk.f32.gmra.mrb[40].mxu1 %vm1151_vm2, %v1387_v32 }
 0x540   :  { %v6810_v13 = vpop.eup %6809  ;;  %6077 = vmatprep.mubr.msk.f32.mxu1 %vm6962_vm1, %v6963_v17  ;;  %6103 = vmatpush3.bf16.msra.mxu1 %v6586_v50 }
 0x541   :  { %v1388_v54 = vmul.f32 %v6810_v13, %v6798_v21  ;;  %6104 = vmatprep.subr.bf16.mxu1 %v6588_v28  ;;  %v6595_v21 = vld [vmem:[%s8603_s6 + $0x60] sm:$0xff]  }
 0x542   :  { %6088 = vmatprep.subr.bf16.mxu0 %v6595_v21 }
 0x543   :  { %6078 = vmatmul.mubr.msk.f32.gmra.mrb[42].mxu1 %vm1151_vm2, %v1388_v54  ;;  %6089 = vmatpush3.bf16.msra.mxu0 %v6595_v21 }
 0x544   :  { %6105 = vmatpush3.bf16.msra.mxu1 %v6588_v28  ;;  %6090 = vmatprep.subr.bf16.mxu0 %v6597_v46 }
 0x545   :  { %6106 = vmatprep.subr.bf16.mxu1 %v6590_v29 }
 0x547   :  { %6091 = vmatpush3.bf16.msra.mxu0 %v6597_v46 }
 0x548   :  { %6107 = vmatpush3.bf16.msra.mxu1 %v6590_v29  ;;  %6092 = vmatprep.subr.bf16.mxu0 %v6599_v60 }
 0x549   :  { %6108 = vmatprep.subr.bf16.mxu1 %v6592_v34 }
 0x54b   :  { %6093 = vmatpush3.bf16.msra.mxu0 %v6599_v60 }
 0x54c   :  { %6109 = vmatpush3.bf16.msra.mxu1 %v6592_v34  ;;  %6094 = vmatprep.subr.bf16.mxu0 %v6600_v1 }
 0x54d   :  { %6110 = vmatprep.subr.bf16.mxu1 %v6594_v39 }
 0x54f   :  { %6095 = vmatpush3.bf16.msra.mxu0 %v6600_v1 }
 0x550   :  { %6111 = vmatpush3.bf16.msra.mxu1 %v6594_v39  ;;  %6453 = vmatprep.subr.bf16.mxu0 %v6961_v16 }
 0x551   :  { %6112 = vmatprep.subr.bf16.mxu1 %v6596_v41 }
 0x554   :  { %6113 = vmatpush3.bf16.msra.mxu1 %v6596_v41 }
 0x555   :  { %6114 = vmatprep.subr.bf16.mxu1 %v6598_v58 }
 0x558   :  { %6115 = vmatpush3.bf16.msra.mxu1 %v6598_v58 }
 0x559   :  { %6456 = vmatprep.subr.bf16.mxu1 %v6961_v16 }
 0x602   :  { %v1260_v4 = vpop.f32.mrb[32].mxu1 }
 0x603   :  { %v6043_v36 = vpop.f32.mrb[33].mxu1 }
 0x606   :  { %v1265_v25 = vpop.f32.mrb[34].mxu1 }
 0x607   :  { %v1274_v63 = vpack.c.bf16 %v1265_v25, %v1260_v4  ;;  %v6046_v15 = vpop.f32.mrb[35].mxu1 }
 0x609   :  { %6116 = vmatprep.mubr.bf16.mxu1 %v1274_v63 }
 0x60a   :  { %v1270_v12 = vpop.f32.mrb[36].mxu1 }
 0x60b   :  { %v1275_v8 = vpack.c.bf16 %v1270_v12, %v1270_v12  ;;  %v6049_v61 = vpop.f32.mrb[37].mxu1 }
 0x60d   :  { %6117 = vmatmul.mubr.bf16.vlgmr.msra.gmra.mrb[44].mxu1 %v1275_v8 }
 0x60e   :  { %6458 = vmatpush3.bf16.msra.mxu1 %v6457_v11  ;;  %v1464_v5 = vpop.f32.mrb[38].mxu1  ;;  %6141 = vmatprep.mubr.msk.f32.mxu1 %vm6962_vm1, %v6963_v17  ;;  %v851_v11 = vadd.f32 %v7381_v57, %v470_v0  ;;  %v474_v57 = vrot.slane %v7354_v19, %v7456_v56 }
 0x60f   :  { %v6073_v7 = vpop.f32.mrb[39].mxu1  ;;  %6139 = vmatprep.subr.mxu1 %v6963_v17 }
 0x610   :  { %v853_v62 = vadd.f32 %v7384_v59, %v474_v57  ;;  %v857_v19 = vadd.f32 %v7390_v2, %v474_v57  ;;  %v863_v59 = vadd.f32 %v7406_v14, %v474_v57 }
 0x612   :  { %6140 = vmatpush3.msra.mxu1 %v7474_v51  ;;  %v1469_v38 = vpop.f32.mrb[40].mxu1 }
 0x613   :  { %v1478_v50 = vpack.c.bf16 %v1469_v38, %v1464_v5  ;;  %v6076_v22 = vpop.f32.mrb[41].mxu1 }
 0x615   :  { %6096 = vmatprep.mubr.bf16.mxu0 %v1478_v50 }
 0x616   :  { %v1474_v32 = vpop.f32.mrb[42].mxu1 }
 0x617   :  { %v1479_v28 = vpack.c.bf16 %v1474_v32, %v1474_v32  ;;  %v6079_v13 = vpop.f32.mrb[43].mxu1 }
 0x619   :  { %6097 = vmatmul.mubr.bf16.vlgmr.msra.gmra.mrb[36].mxu0 %v1479_v28 }
 0x61a   :  { %6455 = vmatpush3.bf16.xpose.msra.mxu0 %v6454_v49  ;;  %6126 = vmatprep.mubr.msk.f32.mxu0 %vm6962_vm1, %v6963_v17 }
 0x61b   :  { %6124 = vmatprep.subr.mxu0 %v6963_v17 }
 0x622   :  { %6125 = vmatpush3.xpose.msra.mxu0 %v963_v6 }
 0x623   :  { %6459 = vmatprep.subr.bf16.mxu0 %v6961_v16 }
 0x625   :  { %6127 = vmatmul.mubr.f32.vlgmr.msra.gmra.mrb[40].mxu0 %v851_v11 }
 0x626   :  { %6461 = vmatpush3.bf16.xpose.msra.mxu0 %v8617_v42  ;;  %6129 = vmatprep.mubr.msk.f32.mxu0 %vm6962_vm1, %v6963_v17 }
 0x627   :  { %6174 = vmatprep.subr.mxu0 %v6963_v17 }
 0x629   :  { %6130 = vmatmul.mubr.f32.gmra.mrb[42].mxu0 %v855_v43 }
 0x62a   :  { %6132 = vmatprep.mubr.msk.f32.mxu0 %vm6962_vm1, %v6963_v17 }
 0x62d   :  { %6133 = vmatmul.mubr.f32.gmra.mrb[44].mxu0 %v861_v37 }
 0x62e   :  { %6175 = vmatpush3.xpose.msra.mxu0 %v965_v47  ;;  %6176 = vmatprep.mubr.msk.f32.mxu0 %vm6962_vm1, %v6963_v17 }
 0x62f   :  { %6462 = vmatprep.subr.bf16.mxu0 %v6961_v16 }
 0x631   :  { %6177 = vmatmul.mubr.f32.vlgmr.msra.gmra.mrb[46].mxu0 %v853_v62 }
 0x632   :  { %6464 = vmatpush3.bf16.msra.mxu0 %v8618_v48  ;;  %6179 = vmatprep.mubr.msk.f32.mxu0 %vm6962_vm1, %v6963_v17 }
 0x633   :  { %6189 = vmatprep.subr.mxu0 %v6963_v17 }
 0x635   :  { %6180 = vmatmul.mubr.f32.gmra.mrb[48].mxu0 %v857_v19 }
 0x636   :  { %6190 = vmatpush3.msra.mxu0 %v7476_v24  ;;  %6182 = vmatprep.mubr.msk.f32.mxu0 %vm6962_vm1, %v6963_v17 }
 0x639   :  { %6183 = vmatmul.mubr.f32.gmra.mrb[50].mxu0 %v863_v59 }
 0x63a   :  { %6191 = vmatprep.mubr.msk.f32.mxu0 %vm6962_vm1, %v6963_v17 }
 0x6e0   :  { %v6118_v10 = vpop.f32.mrb[44].mxu1 }
 0x6e1   :  { %v1658_v26 = vpop.f32.mrb[45].mxu1 }
 0x6e2   :  { %v6119_v49 = vpop.f32.mrb[46].mxu1 }
 0x6e3   :  { %v1661_v52 = vpop.f32.mrb[47].mxu1 }
 0x6ec   :  { %v6098_v53 = vpop.f32.mrb[36].mxu0 }
 0x6ed   :  { %v7632_v2 = vadd.f32 %v6118_v10, %v6098_v53  ;;  %v1562_v3 = vpop.f32.mrb[37].mxu0 }
 0x6ee   :  { %v7634_v9 = vadd.f32 %v1658_v26, %v1562_v3  ;;  %v6099_v51 = vpop.f32.mrb[38].mxu0 }
 0x6ef   :  { %v1565_v24 = vpop.f32.mrb[39].mxu0 }
 0x6f0   :  { %v7636_v54 = vadd.f32 %v1661_v52, %v1565_v24 }
 0x6f8   :  { %v1738_v29 = vpop.f32.mrb[40].mxu0 }
 0x6f9   :  { %v1739_v14 = vadd.f32 %v1738_v29, %v7481_v30  ;;  %v6128_v34 = vpop.f32.mrb[41].mxu0 }
 0x6fb   :  { %v1752_v39 = vsel %vm1151_vm2, %v1739_v14, -inf }
 0x6fc   :  { %1753 = vmax.xlane.f32.xlu0 %v1752_v39  ;;  %v1743_v21 = vpop.f32.mrb[42].mxu0 }
 0x6fd   :  { %v1744_v41 = vadd.f32 %v1743_v21, %v7487_v40  ;;  %v6131_v46 = vpop.f32.mrb[43].mxu0 }
 0x6fe   :  { %v6605_v46 = vld [vmem:[%s8603_s6 + $0xc0] sm:$0xff]  }
 0x6ff   :  { %v1755_v58 = vsel %vm1151_vm2, %v1744_v41, -inf  ;;  %6200 = vmatprep.subr.bf16.mxu0 %v6605_v46 }
 0x700   :  { %1756 = vmax.xlane.f32.xlu0 %v1755_v58  ;;  %v1748_v60 = vpop.f32.mrb[44].mxu0 }
 0x701   :  { %v1749_v1 = vadd.f32 %v1748_v60, %v7494_v55  ;;  %v6134_v4 = vpop.f32.mrb[45].mxu0 }
 0x703   :  { %v1758_v36 = vsel %vm1151_vm2, %v1749_v1, -inf }
 0x704   :  { %1759 = vmax.xlane.f32.xlu0 %v1758_v36  ;;  %v2041_v25 = vpop.f32.mrb[46].mxu0 }
 0x705   :  { %v2042_v63 = vadd.f32 %v2041_v25, %v7481_v30  ;;  %v6178_v15 = vpop.f32.mrb[47].mxu0 }
 0x707   :  { %v2055_v12 = vsel %vm1151_vm2, %v2042_v63, -inf }
 0x708   :  { %2056 = vmax.xlane.f32.xlu1 %v2055_v12  ;;  %v2046_v8 = vpop.f32.mrb[48].mxu0 }
 0x709   :  { %v2047_v61 = vadd.f32 %v2046_v8, %v7487_v40  ;;  %v6181_v5 = vpop.f32.mrb[49].mxu0 }
 0x70b   :  { %v2058_v7 = vsel %vm1151_vm2, %v2047_v61, -inf }
 0x70c   :  { %2059 = vmax.xlane.f32.xlu1 %v2058_v7  ;;  %v2051_v38 = vpop.f32.mrb[50].mxu0 }
 0x70d   :  { %v2052_v50 = vadd.f32 %v2051_v38, %v7494_v55  ;;  %v6184_v22 = vpop.f32.mrb[51].mxu0 }
 0x70f   :  { %v2061_v32 = vsel %vm1151_vm2, %v2052_v50, -inf }
 0x710   :  { %2062 = vmax.xlane.f32.xlu1 %v2061_v32 }
 0x789   :  { %v1754_v28 = vpop.xlane.xlu0 %1753 }
 0x78a   :  { %v1761_v30 = vsub.f32 %v1739_v14, %v1754_v28  ;;  %v6606_v28 = vld [vmem:[%s8603_s6 + $0xa0] sm:$0xff]  }
 0x78c   :  { %v1764_v13 = vmul.f32 1.442695, %v1761_v30  ;;  %v6607_v30 = vld [vmem:[%s8603_s6 + $0xc8] sm:$0xff]  }
 0x78d   :  { %v1757_v0 = vpop.xlane.xlu0 %1756 }
 0x78e   :  { %6811 = vpow2.f32 %v1764_v13  ;;  %v1762_v6 = vsub.f32 %v1744_v41, %v1757_v0  ;;  %v6601_v41 = vld [vmem:[%s8603_s6 + $0x80] sm:$0xff]  }
 0x78f   :  { %6150 = vmatprep.subr.bf16.mxu1 %v6601_v41 }
 0x790   :  { %v1766_v11 = vmul.f32 1.442695, %v1762_v6  ;;  %v6608_v6 = vld [vmem:[%s8603_s6 + $0xa8] sm:$0xff]  }
 0x791   :  { %v1760_v42 = vpop.xlane.xlu0 %1759 }
 0x792   :  { %6813 = vpow2.f32 %v1766_v11  ;;  %v1763_v40 = vsub.f32 %v1749_v1, %v1760_v42  ;;  %v6609_v11 = vld [vmem:[%s8603_s6 + $0xd0] sm:$0xff]  }
 0x794   :  { %v1768_v43 = vmul.f32 1.442695, %v1763_v40 }
 0x795   :  { %v2057_v57 = vpop.xlane.xlu1 %2056 }
 0x796   :  { %6815 = vpow2.f32 %v1768_v43  ;;  %v2064_v37 = vsub.f32 %v2042_v63, %v2057_v57  ;;  %v6602_v63 = vld [vmem:[%s8603_s6 + $0x88] sm:$0xff]   ;;  %v6610_v43 = vld [vmem:[%s8603_s6 + $0xb0] sm:$0xff]   ;;  %v6611_v57 = vld [vmem:[%s8603_s6 + $0xd8] sm:$0xff]  }
 0x798   :  { %v6812_v47 = vpop.eup %6811  ;;  %v2067_v55 = vmul.f32 1.442695, %v2064_v37  ;;  %v6612_v37 = vld [vmem:[%s8603_s6 + $0xb8] sm:$0xff]  }
 0x799   :  { %v2060_v62 = vpop.xlane.xlu1 %2059  ;;  %v1770_v48 = vsel %vm1151_vm2, %v6812_v47, 0.0 }
 0x79a   :  { %6817 = vpow2.f32 %v2067_v55  ;;  %v2065_v19 = vsub.f32 %v2047_v61, %v2060_v62  ;;  %1771 = vadd.xlane.f32.xlu0 %v1770_v48  ;;  %v6603_v61 = vld [vmem:[%s8603_s6 + $0x90] sm:$0xff]   ;;  %v6614_v55 = vld [vmem:[%s8603_s6 + $0xe8] sm:$0xff]   ;;  %v6616_v48 = vld [vmem:[%s8603_s6 + $0xf8] sm:$0xff]  }
 0x79b   :  { %v6615_v62 = vld [vmem:[%s8603_s6 + $0xf0] sm:$0xff]  }
 0x79c   :  { %v6814_v59 = vpop.eup %6813  ;;  %v2069_v10 = vmul.f32 1.442695, %v2065_v19 }
 0x79d   :  { %v2063_v26 = vpop.xlane.xlu1 %2062  ;;  %v1773_v49 = vsel %vm1151_vm2, %v6814_v59, 0.0 }
 0x79e   :  { %6819 = vpow2.f32 %v2069_v10  ;;  %v2066_v52 = vsub.f32 %v2052_v50, %v2063_v26  ;;  %1774 = vadd.xlane.f32.xlu0 %v1773_v49  ;;  %v6604_v50 = vld [vmem:[%s8603_s6 + $0x98] sm:$0xff]  }
 0x7a0   :  { %v6816_v53 = vpop.eup %6815  ;;  %v2071_v3 = vmul.f32 1.442695, %v2066_v52 }
 0x7a1   :  { %v1776_v51 = vsel %vm1151_vm2, %v6816_v53, 0.0 }
 0x7a2   :  { %6821 = vpow2.f32 %v2071_v3  ;;  %1777 = vadd.xlane.f32.xlu0 %v1776_v51 }
 0x7a4   :  { %v6818_v24 = vpop.eup %6817 }
 0x7a5   :  { %v2073_v29 = vsel %vm1151_vm2, %v6818_v24, 0.0 }
 0x7a6   :  { %2074 = vadd.xlane.f32.xlu1 %v2073_v29 }
 0x7a8   :  { %v6820_v14 = vpop.eup %6819 }
 0x7a9   :  { %v2076_v34 = vsel %vm1151_vm2, %v6820_v14, 0.0 }
 0x7aa   :  { %2077 = vadd.xlane.f32.xlu1 %v2076_v34 }
 0x7ac   :  { %v6822_v39 = vpop.eup %6821 }
 0x7ad   :  { %v2079_v21 = vsel %vm1151_vm2, %v6822_v39, 0.0 }
 0x7ae   :  { %2080 = vadd.xlane.f32.xlu1 %v2079_v21 }
 0x827   :  { %v1772_v58 = vpop.xlane.xlu0 %1771 }
 0x828   :  { %6823 = vrcp.f32 %v1772_v58 }
 0x82b   :  { %v1775_v60 = vpop.xlane.xlu0 %1774 }
 0x82c   :  { %6825 = vrcp.f32 %v1775_v60 }
 0x82f   :  { %v1778_v1 = vpop.xlane.xlu0 %1777 }
 0x830   :  { %6827 = vrcp.f32 %v1778_v1 }
 0x832   :  { %v6824_v4 = vpop.eup %6823 }
 0x833   :  { %v1782_v36 = vmul.f32 %v6824_v4, %v6812_v47  ;;  %v2075_v25 = vpop.xlane.xlu1 %2074  ;;  %v6613_v47 = vld [vmem:[%s8603_s6 + $0xe0] sm:$0xff]  }
 0x834   :  { %6829 = vrcp.f32 %v2075_v25 }
 0x835   :  { %6142 = vmatmul.mubr.msk.f32.vlgmr.msra.gmra.mrb[48].mxu1 %vm1151_vm2, %v1782_v36 }
 0x836   :  { %v6826_v15 = vpop.eup %6825  ;;  %6144 = vmatprep.mubr.msk.f32.mxu1 %vm6962_vm1, %v6963_v17  ;;  %6151 = vmatpush3.bf16.msra.mxu1 %v6601_v41 }
 0x837   :  { %v2078_v12 = vpop.xlane.xlu1 %2077  ;;  %v1783_v8 = vmul.f32 %v6826_v15, %v6814_v59  ;;  %6152 = vmatprep.subr.bf16.mxu1 %v6602_v63 }
 0x838   :  { %6831 = vrcp.f32 %v2078_v12 }
 0x839   :  { %6145 = vmatmul.mubr.msk.f32.gmra.mrb[50].mxu1 %vm1151_vm2, %v1783_v8 }
 0x83a   :  { %v6828_v5 = vpop.eup %6827  ;;  %6147 = vmatprep.mubr.msk.f32.mxu1 %vm6962_vm1, %v6963_v17  ;;  %6153 = vmatpush3.bf16.msra.mxu1 %v6602_v63 }
 0x83b   :  { %v2081_v7 = vpop.xlane.xlu1 %2080  ;;  %v1784_v38 = vmul.f32 %v6828_v5, %v6816_v53  ;;  %6154 = vmatprep.subr.bf16.mxu1 %v6603_v61 }
 0x83c   :  { %6833 = vrcp.f32 %v2081_v7 }
 0x83d   :  { %6148 = vmatmul.mubr.msk.f32.gmra.mrb[52].mxu1 %vm1151_vm2, %v1784_v38 }
 0x83e   :  { %v6830_v22 = vpop.eup %6829  ;;  %6155 = vmatpush3.bf16.msra.mxu1 %v6603_v61  ;;  %v7726_v61 = vld [vmem:[%s8607_s10] sm:$0x3f] }
 0x83f   :  { %v2085_v32 = vmul.f32 %v6830_v22, %v6818_v24  ;;  %6156 = vmatprep.subr.bf16.mxu1 %v6604_v50  ;;  %v8619_v24 = vmov 0   ;;  %v2284_v5 = vrot.slane %v7726_v61, %v7453_v45 }
 0x841   :  { %6192 = vmatmul.mubr.msk.f32.vlgmr.msra.gmra.mrb[52].mxu0 %vm1151_vm2, %v2085_v32 }
 0x842   :  { %v6832_v13 = vpop.eup %6831  ;;  %6194 = vmatprep.mubr.msk.f32.mxu0 %vm6962_vm1, %v6963_v17  ;;  %6157 = vmatpush3.bf16.msra.mxu1 %v6604_v50 }
 0x843   :  { %v2086_v0 = vmul.f32 %v6832_v13, %v6820_v14  ;;  %6201 = vmatpush3.bf16.msra.mxu0 %v6605_v46  ;;  %6158 = vmatprep.subr.bf16.mxu1 %v6606_v28 }
 0x844   :  { %6202 = vmatprep.subr.bf16.mxu0 %v6607_v30 }
 0x845   :  { %6195 = vmatmul.mubr.msk.f32.gmra.mrb[54].mxu0 %vm1151_vm2, %v2086_v0 }
 0x846   :  { %v6834_v42 = vpop.eup %6833  ;;  %6197 = vmatprep.mubr.msk.f32.mxu0 %vm6962_vm1, %v6963_v17  ;;  %6159 = vmatpush3.bf16.msra.mxu1 %v6606_v28 }
 0x847   :  { %v2087_v40 = vmul.f32 %v6834_v42, %v6822_v39  ;;  %6203 = vmatpush3.bf16.msra.mxu0 %v6607_v30  ;;  %6160 = vmatprep.subr.bf16.mxu1 %v6608_v6 }
 0x848   :  { %6204 = vmatprep.subr.bf16.mxu0 %v6609_v11 }
 0x849   :  { %6198 = vmatmul.mubr.msk.f32.gmra.mrb[56].mxu0 %vm1151_vm2, %v2087_v40 }
 0x84a   :  { %6161 = vmatpush3.bf16.msra.mxu1 %v6608_v6 }
 0x84b   :  { %6205 = vmatpush3.bf16.msra.mxu0 %v6609_v11  ;;  %6162 = vmatprep.subr.bf16.mxu1 %v6610_v43 }
 0x84c   :  { %6206 = vmatprep.subr.bf16.mxu0 %v6611_v57 }
 0x84e   :  { %6163 = vmatpush3.bf16.msra.mxu1 %v6610_v43 }
 0x84f   :  { %6207 = vmatpush3.bf16.msra.mxu0 %v6611_v57  ;;  %6164 = vmatprep.subr.bf16.mxu1 %v6612_v37 }
 0x850   :  { %6208 = vmatprep.subr.bf16.mxu0 %v6613_v47 }
 0x852   :  { %6165 = vmatpush3.bf16.msra.mxu1 %v6612_v37 }
 0x853   :  { %6209 = vmatpush3.bf16.msra.mxu0 %v6613_v47 }
 0x854   :  { %6210 = vmatprep.subr.bf16.mxu0 %v6614_v55 }
 0x857   :  { %6211 = vmatpush3.bf16.msra.mxu0 %v6614_v55 }
 0x858   :  { %6212 = vmatprep.subr.bf16.mxu0 %v6615_v62 }
 0x85b   :  { %6213 = vmatpush3.bf16.msra.mxu0 %v6615_v62 }
 0x85c   :  { %6214 = vmatprep.subr.bf16.mxu0 %v6616_v48 }
 0x85f   :  { %6215 = vmatpush3.bf16.msra.mxu0 %v6616_v48 }
 0x908   :  { %v1860_v19 = vpop.f32.mrb[48].mxu1 }
 0x909   :  { %v6143_v59 = vpop.f32.mrb[49].mxu1 }
 0x90c   :  { %v1865_v10 = vpop.f32.mrb[50].mxu1 }
 0x90d   :  { %v1874_v26 = vpack.c.bf16 %v1865_v10, %v1860_v19  ;;  %v6146_v49 = vpop.f32.mrb[51].mxu1  ;;  %v6619_v10 = vld [vmem:[%s8604_s7 + $0x4] ss:$8 sps:$4 sm:$0xff]  }
 0x90e   :  { %2400 = vmatprep.subr.bf16.mxu1 %v6619_v10  ;;  %v6622_v49 = vld [vmem:[%s8604_s7 + $0x14] ss:$8 sps:$4 sm:$0xff]  }
 0x90f   :  { %6166 = vmatprep.mubr.bf16.mxu1 %v1874_v26  ;;  %v6617_v26 = vld [vmem:[%s8604_s7] ss:$8 sps:$4 sm:$0xff]  }
 0x910   :  { %v1870_v52 = vpop.f32.mrb[52].mxu1 }
 0x911   :  { %v1875_v53 = vpack.c.bf16 %v1870_v52, %v1870_v52  ;;  %v6149_v3 = vpop.f32.mrb[53].mxu1  ;;  %v6620_v52 = vld [vmem:[%s8604_s7 + $0x10] ss:$8 sps:$4 sm:$0xff]  }
 0x912   :  { %v6623_v3 = vld [vmem:[%s8604_s7 + $0x20] ss:$8 sps:$4 sm:$0xff]  }
 0x913   :  { %6167 = vmatmul.mubr.bf16.vlgmr.msra.gmra.mrb[56].mxu1 %v1875_v53  ;;  %v6625_v53 = vld [vmem:[%s8604_s7 + $0x24] ss:$8 sps:$4 sm:$0xff]  }
 0x914   :  { %v2163_v51 = vpop.f32.mrb[52].mxu0  ;;  %2432 = vmatprep.mubr.bf16.mxu1 %v8619_v24  ;;  %2401 = vmatpush1.bf16.msra.mxu1 %v6617_v26 }
 0x915   :  { %v6193_v29 = vpop.f32.mrb[53].mxu0  ;;  %2402 = vmatprep.subr.bf16.mxu1 %v6622_v49 }
 0x916   :  { %v6628_v29 = vld [vmem:[%s8604_s7 + $0x34] ss:$8 sps:$4 sm:$0xff]  }
 0x918   :  { %v2168_v14 = vpop.f32.mrb[54].mxu0  ;;  %2403 = vmatpush1.bf16.msra.mxu1 %v6620_v52 }
 0x919   :  { %v2177_v34 = vpack.c.bf16 %v2168_v14, %v2163_v51  ;;  %v6196_v39 = vpop.f32.mrb[55].mxu0  ;;  %2404 = vmatprep.subr.bf16.mxu1 %v6625_v53  ;;  %v6626_v51 = vld [vmem:[%s8604_s7 + $0x30] ss:$8 sps:$4 sm:$0xff]  }
 0x91b   :  { %6216 = vmatprep.mubr.bf16.mxu0 %v2177_v34 }
 0x91c   :  { %v2173_v21 = vpop.f32.mrb[56].mxu0  ;;  %2405 = vmatpush1.bf16.msra.mxu1 %v6623_v3 }
 0x91d   :  { %v2178_v41 = vpack.c.bf16 %v2173_v21, %v2173_v21  ;;  %v6199_v46 = vpop.f32.mrb[57].mxu0  ;;  %2406 = vmatprep.subr.bf16.mxu1 %v6628_v29 }
 0x91f   :  { %6217 = vmatmul.mubr.bf16.vlgmr.msra.gmra.mrb[60].mxu0 %v2178_v41 }
 0x920   :  { %3221 = vmatprep.mubr.bf16.mxu0 %v8619_v24  ;;  %2407 = vmatpush1.bf16.msra.mxu1 %v6626_v51 }
 0x9e6   :  { %v6168_v58 = vpop.f32.mrb[56].mxu1 }
 0x9e7   :  { %v1974_v60 = vadd.f32 %v6168_v58, %v7632_v2  ;;  %v1958_v1 = vpop.f32.mrb[57].mxu1 }
 0x9e8   :  { %v1972_v4 = vadd.f32 %v1958_v1, %v7634_v9  ;;  %v6169_v36 = vpop.f32.mrb[58].mxu1 }
 0x9e9   :  { %v1961_v25 = vpop.f32.mrb[59].mxu1 }
 0x9ea   :  { %v1973_v63 = vadd.f32 %v1961_v25, %v7636_v54 }
 0x9f2   :  { %v6218_v15 = vpop.f32.mrb[60].mxu0 }
 0x9f3   :  { %v2277_v12 = vadd.f32 %v6218_v15, %v1974_v60  ;;  %v2261_v8 = vpop.f32.mrb[61].mxu0 }
 0x9f4   :  { %v2275_v7 = vadd.f32 %v2261_v8, %v1972_v4  ;;  %v6219_v2 = vpop.f32.mrb[62].mxu0  ;;  %v2330_v4 = vrot.slane %v7726_v61, %v7456_v56  ;;  %v2337_v8 = vrot.slane %v7726_v61, %v7349_v18 }
 0x9f5   :  { %v2264_v38 = vpop.f32.mrb[63].mxu0  ;;  %v2280_v9 = vadd.f32 %v2277_v12, %v7128_v44 }
 0x9f6   :  { %v2278_v50 = vadd.f32 %v2275_v7, %v7117_v33  ;;  %v2276_v22 = vadd.f32 %v2264_v38, %v1973_v63 }
 0x9f7   :  { %v7735_v28 = vadd.f32 %v2284_v5, %v2280_v9 }
 0x9f8   :  { %v7732_v54 = vadd.f32 %v2284_v5, %v2278_v50  ;;  %v2279_v32 = vadd.f32 %v2276_v22, %v7119_v35 }
 0x9f9   :  { %v2294_v33 = vsel %vm400_vm0, %v7735_v28, 0.0 }
 0x9fa   :  { %v7737_v30 = vadd.f32 %v2284_v5, %v2279_v32  ;;  %v2288_v13 = vsel %vm400_vm0, %v7732_v54, 0.0 }
 0x9fb   :  { %2289 = vadd.xlane.f32.xlu0 %v2288_v13 }
 0x9fc   :  { %v2291_v0 = vsel %vm400_vm0, %v7737_v30, 0.0 }
 0x9fd   :  { %2292 = vadd.xlane.f32.xlu1 %v2291_v0  ;;  %v6629_v0 = vld [vmem:[%s8606_s9 + $0x40] sm:$0xff]  }
 0x9fe   :  { %5867 = vmatprep.subr.bf16.mxu1 %v6629_v0 }
 0x9ff   :  { %2295 = vadd.xlane.f32.xlu0 %v2294_v33  ;;  %v6630_v33 = vld [vmem:[%s8606_s9] sm:$0xff]  }
 0xa88   :  { %v2290_v44 = vpop.xlane.xlu0 %2289 }
 0xa89   :  { %v2297_v6 = vmul.f32 0.015625, %v2290_v44  ;;  %v6631_v44 = vld [vmem:[%s8606_s9 + $0x48] sm:$0xff]  }
 0xa8a   :  { %v2293_v11 = vpop.xlane.xlu1 %2292 }
 0xa8b   :  { %v2300_v35 = vsub.f32 %v7732_v54, %v2297_v6  ;;  %v2298_v42 = vmul.f32 0.015625, %v2293_v11  ;;  %v6632_v6 = vld [vmem:[%s8606_s9 + $0x8] sm:$0xff]   ;;  %v6633_v11 = vld [vmem:[%s8606_s9 + $0x50] sm:$0xff]  }
 0xa8c   :  { %v2296_v40 = vpop.xlane.xlu0 %2295 }
 0xa8d   :  { %v2301_v43 = vsub.f32 %v7737_v30, %v2298_v42  ;;  %v2299_v57 = vmul.f32 0.015625, %v2296_v40  ;;  %v2303_v37 = vmul.f32 %v2300_v35, %v2300_v35  ;;  %v6635_v42 = vld [vmem:[%s8606_s9 + $0x58] sm:$0xff]  }
 0xa8e   :  { %v6636_v40 = vld [vmem:[%s8606_s9 + $0x18] sm:$0xff]  }
 0xa8f   :  { %v2302_v47 = vsub.f32 %v7735_v28, %v2299_v57  ;;  %v2306_v55 = vsel %vm400_vm0, %v2303_v37, 0.0  ;;  %v2304_v62 = vmul.f32 %v2301_v43, %v2301_v43  ;;  %v6638_v57 = vld [vmem:[%s8606_s9 + $0x20] sm:$0xff]   ;;  %v6639_v37 = vld [vmem:[%s8606_s9 + $0x68] sm:$0xff]  }
 0xa90   :  { %2307 = vadd.xlane.f32.xlu1 %v2306_v55  ;;  %v6641_v55 = vld [vmem:[%s8606_s9 + $0x70] sm:$0xff]  }
 0xa91   :  { %v2309_v48 = vsel %vm400_vm0, %v2304_v62, 0.0  ;;  %v2305_v19 = vmul.f32 %v2302_v47, %v2302_v47  ;;  %v6642_v62 = vld [vmem:[%s8606_s9 + $0x30] sm:$0xff]  }
 0xa92   :  { %2310 = vadd.xlane.f32.xlu0 %v2309_v48  ;;  %v6643_v48 = vld [vmem:[%s8606_s9 + $0x78] sm:$0xff]  }
 0xa93   :  { %v2312_v59 = vsel %vm400_vm0, %v2305_v19, 0.0  ;;  %v6644_v19 = vld [vmem:[%s8606_s9 + $0x38] sm:$0xff]  }
 0xa94   :  { %2313 = vadd.xlane.f32.xlu1 %v2312_v59  ;;  %v366_v59 = vld [vmem:[%s8605_s8] sm:$0x3] }
 0xa95   :  { %v2347_v10 = vrot.slane %v366_v59, %v7209_v27  ;;  %v2351_v26 = vrot.slane %v366_v59, %v7216_v31 }
 0xb1d   :  { %v2308_v14 = vpop.xlane.xlu1 %2307 }
 0xb1e   :  { %v2315_v34 = vmul.f32 0.015625, %v2308_v14 }
 0xb1f   :  { %v2311_v39 = vpop.xlane.xlu0 %2310 }
 0xb20   :  { %v2318_v21 = vadd.f32 1e-12, %v2315_v34  ;;  %v2316_v41 = vmul.f32 0.015625, %v2311_v39 }
 0xb21   :  { %v2314_v46 = vpop.xlane.xlu1 %2313 }
 0xb22   :  { %6835 = vrsqrt.f32 %v2318_v21  ;;  %v2319_v58 = vadd.f32 1e-12, %v2316_v41  ;;  %v2317_v60 = vmul.f32 0.015625, %v2314_v46 }
 0xb24   :  { %6837 = vrsqrt.f32 %v2319_v58  ;;  %v2320_v1 = vadd.f32 1e-12, %v2317_v60 }
 0xb26   :  { %6839 = vrsqrt.f32 %v2320_v1 }
 0xb2c   :  { %v6836_v36 = vpop.eup %6835 }
 0xb2d   :  { %v2324_v25 = vmul.f32 %v6836_v36, %v2300_v35  ;;  %v6634_v35 = vld [vmem:[%s8606_s9 + $0x10] sm:$0xff]  }
 0xb2e   :  { %v6838_v63 = vpop.eup %6837 }
 0xb2f   :  { %v2331_v15 = vmul.f32 %v2330_v4, %v2324_v25  ;;  %v2325_v12 = vmul.f32 %v6838_v63, %v2301_v43  ;;  %v6637_v43 = vld [vmem:[%s8606_s9 + $0x60] sm:$0xff]  }
 0xb30   :  { %v6840_v5 = vpop.eup %6839 }
 0xb31   :  { %v2332_v7 = vmul.f32 %v2330_v4, %v2325_v12  ;;  %v2326_v2 = vmul.f32 %v6840_v5, %v2302_v47  ;;  %v2338_v38 = vadd.f32 %v2337_v8, %v2331_v15  ;;  %v6640_v47 = vld [vmem:[%s8606_s9 + $0x28] sm:$0xff]  }
 0xb33   :  { %v2339_v9 = vadd.f32 %v2337_v8, %v2332_v7  ;;  %v2333_v22 = vmul.f32 %v2330_v4, %v2326_v2 }
 0xb35   :  { %v2341_v50 = vpack.c.bf16 %v2339_v9, %v2338_v38  ;;  %v2340_v32 = vadd.f32 %v2337_v8, %v2333_v22 }
 0xb37   :  { %5440 = vmatmul.mubr.msk.bf16.vlgmr.msra.gmra.mrb[60].mxu1 %vm400_vm0, %v2341_v50  ;;  %v2342_v13 = vpack.c.bf16 %v2340_v32, %v2340_v32 }
 0xb38   :  { %2442 = vmatprep.mubr.bf16.mxu1 %v8619_v24  ;;  %5868 = vmatpush3.bf16.msra.mxu1 %v6630_v33 }
 0xb39   :  { %5869 = vmatprep.subr.bf16.mxu1 %v6631_v44 }
 0xb3c   :  { %5870 = vmatpush3.bf16.msra.mxu1 %v6632_v6 }
 0xb3d   :  { %5871 = vmatprep.subr.bf16.mxu1 %v6633_v11 }
 0xb3f   :  { %5441 = vmatmul.mubr.msk.bf16.gmra.mrb[64].mxu1 %vm400_vm0, %v2342_v13 }
 0xb40   :  { %5872 = vmatpush3.bf16.msra.mxu1 %v6634_v35 }
 0xb41   :  { %5873 = vmatprep.subr.bf16.mxu1 %v6635_v42 }
 0xb44   :  { %5874 = vmatpush3.bf16.msra.mxu1 %v6636_v40 }
 0xb45   :  { %5875 = vmatprep.subr.bf16.mxu1 %v6637_v43 }
 0xb48   :  { %5876 = vmatpush3.bf16.msra.mxu1 %v6638_v57 }
 0xb49   :  { %5877 = vmatprep.subr.bf16.mxu1 %v6639_v37 }
 0xb4c   :  { %5878 = vmatpush3.bf16.msra.mxu1 %v6640_v47 }
 0xb4d   :  { %5879 = vmatprep.subr.bf16.mxu1 %v6641_v55 }
 0xb50   :  { %5880 = vmatpush3.bf16.msra.mxu1 %v6642_v62 }
 0xb51   :  { %5881 = vmatprep.subr.bf16.mxu1 %v6643_v48 }
 0xb54   :  { %5882 = vmatpush3.bf16.msra.mxu1 %v6644_v19 }
 0xc0a   :  { %v2434_v49 = vpop.f32.mrb[60].mxu1 }
 0xc0b   :  { %v2435_v52 = vadd.f32 %v2434_v49, %v2347_v10  ;;  %v2436_v53 = vpop.f32.mrb[61].mxu1 }
 0xc0c   :  { %v2437_v3 = vadd.f32 %v2436_v53, %v2351_v26  ;;  %v2438_v51 = vpop.f32.mrb[62].mxu1 }
 0xc0d   :  { %v2457_v29 = vmul.f32 0.044715, %v2435_v52  ;;  %v2439_v14 = vadd.f32 %v2438_v51, %v2347_v10  ;;  %v2440_v34 = vpop.f32.mrb[63].mxu1  ;;  %v2451_v49 = vmul.f32 0.5, %v2435_v52 }
 0xc0e   :  { %v2458_v39 = vmul.f32 0.044715, %v2437_v3  ;;  %v2441_v21 = vadd.f32 %v2440_v34, %v2351_v26 }
 0xc0f   :  { %v2463_v41 = vmul.f32 %v2457_v29, %v2435_v52  ;;  %v2459_v46 = vmul.f32 0.044715, %v2439_v14  ;;  %v2453_v53 = vmul.f32 0.5, %v2439_v14  ;;  %v2452_v29 = vmul.f32 0.5, %v2437_v3 }
 0xc10   :  { %v2464_v58 = vmul.f32 %v2458_v39, %v2437_v3  ;;  %v2460_v60 = vmul.f32 0.044715, %v2441_v21  ;;  %v2454_v34 = vmul.f32 0.5, %v2441_v21 }
 0xc11   :  { %v2469_v1 = vmul.f32 %v2463_v41, %v2435_v52  ;;  %v2465_v4 = vmul.f32 %v2459_v46, %v2439_v14 }
 0xc12   :  { %v2470_v36 = vmul.f32 %v2464_v58, %v2437_v3  ;;  %v2466_v25 = vmul.f32 %v2460_v60, %v2441_v21  ;;  %v2444_v63 = vpop.f32.mrb[64].mxu1 }
 0xc13   :  { %v2475_v15 = vadd.f32 %v2469_v1, %v2435_v52  ;;  %v2471_v12 = vmul.f32 %v2465_v4, %v2439_v14  ;;  %v2445_v8 = vadd.f32 %v2444_v63, %v2347_v10  ;;  %v2446_v5 = vpop.f32.mrb[65].mxu1 }
 0xc14   :  { %v2472_v7 = vmul.f32 %v2466_v25, %v2441_v21  ;;  %v2447_v2 = vadd.f32 %v2446_v5, %v2351_v26  ;;  %v2448_v38 = vpop.f32.mrb[66].mxu1  ;;  %v2476_v9 = vadd.f32 %v2470_v36, %v2437_v3 }
 0xc15   :  { %v2481_v50 = vmul.f32 0.7978846, %v2475_v15  ;;  %v2477_v22 = vadd.f32 %v2471_v12, %v2439_v14  ;;  %v2461_v32 = vmul.f32 0.044715, %v2445_v8  ;;  %v2449_v13 = vpop.f32.mrb[67].mxu1  ;;  %v2455_v5 = vmul.f32 0.5, %v2445_v8 }
 0xc16   :  { %v2462_v0 = vmul.f32 0.044715, %v2447_v2  ;;  %v2478_v33 = vadd.f32 %v2472_v7, %v2441_v21  ;;  %v2482_v44 = vmul.f32 0.7978846, %v2476_v9  ;;  %v2456_v15 = vmul.f32 0.5, %v2447_v2 }
 0xc17   :  { %6841 = vtanh.f32 %v2481_v50  ;;  %v2483_v6 = vmul.f32 0.7978846, %v2477_v22  ;;  %v2467_v11 = vmul.f32 %v2461_v32, %v2445_v8  ;;  %v2659_v50 = vrot.slane %v7726_v61, %v7357_v20 }
 0xc18   :  { %v2468_v35 = vmul.f32 %v2462_v0, %v2447_v2  ;;  %v2484_v42 = vmul.f32 0.7978846, %v2478_v33  ;;  %6843 = vtanh.f32 %v2482_v44 }
 0xc19   :  { %6845 = vtanh.f32 %v2483_v6  ;;  %v2473_v40 = vmul.f32 %v2467_v11, %v2445_v8 }
 0xc1a   :  { %6847 = vtanh.f32 %v2484_v42  ;;  %v2474_v43 = vmul.f32 %v2468_v35, %v2447_v2 }
 0xc1b   :  { %v2479_v57 = vadd.f32 %v2473_v40, %v2445_v8 }
 0xc1c   :  { %v2480_v37 = vadd.f32 %v2474_v43, %v2447_v2 }
 0xc1d   :  { %v2485_v47 = vmul.f32 0.7978846, %v2479_v57 }
 0xc1e   :  { %v2486_v55 = vmul.f32 0.7978846, %v2480_v37 }
 0xc1f   :  { %6849 = vtanh.f32 %v2485_v47 }
 0xc20   :  { %6851 = vtanh.f32 %v2486_v55 }
 0xc21   :  { %v6842_v62 = vpop.eup %6841 }
 0xc22   :  { %v6844_v48 = vpop.eup %6843  ;;  %v2493_v19 = vadd.f32 1.0, %v6842_v62 }
 0xc23   :  { %v6846_v59 = vpop.eup %6845  ;;  %v2494_v10 = vadd.f32 1.0, %v6844_v48 }
 0xc24   :  { %v6848_v26 = vpop.eup %6847  ;;  %v2495_v51 = vadd.f32 1.0, %v6846_v59  ;;  %v2499_v41 = vmul.f32 %v2493_v19, %v2451_v49 }
 0xc25   :  { %v2496_v39 = vadd.f32 1.0, %v6848_v26  ;;  %v2500_v58 = vmul.f32 %v2494_v10, %v2452_v29 }
 0xc26   :  { %v2501_v46 = vmul.f32 %v2495_v51, %v2453_v53 }
 0xc27   :  { %v2502_v60 = vmul.f32 %v2496_v39, %v2454_v34  ;;  %v6647_v34 = vld [vmem:[%s8601_s4 + $0x184] ss:$48 sps:$4 sm:$0xff]  }
 0xc28   :  { %v2505_v1 = vpack.c.bf16 %v2501_v46, %v2499_v41  ;;  %v6650_v39 = vld [vmem:[%s8601_s4 + $0x194] ss:$48 sps:$4 sm:$0xff]   ;;  %v6645_v41 = vld [vmem:[%s8601_s4 + $0x180] ss:$48 sps:$4 sm:$0xff]   ;;  %3189 = vmatprep.subr.bf16.mxu0 %v6647_v34  ;;  %v6681_v34 = vld [vmem:[%s8601_s4 + $0x248] ss:$48 sps:$4 sm:$0xff]  }
 0xc29   :  { %v6850_v4 = vpop.eup %6849  ;;  %v2506_v36 = vpack.c.bf16 %v2502_v60, %v2500_v58  ;;  %v6648_v46 = vld [vmem:[%s8601_s4 + $0x190] ss:$48 sps:$4 sm:$0xff]   ;;  %3291 = vmatprep.subr.bf16.mxu1 %v6650_v39  ;;  %3190 = vmatpush1.bf16.msra.mxu0 %v6645_v41  ;;  %v6653_v58 = vld [vmem:[%s8601_s4 + $0x1e4] ss:$48 sps:$4 sm:$0xff]  }
 0xc2a   :  { %v6852_v25 = vpop.eup %6851  ;;  %v2497_v63 = vadd.f32 1.0, %v6850_v4  ;;  %v6656_v60 = vld [vmem:[%s8601_s4 + $0x1f4] ss:$48 sps:$4 sm:$0xff]   ;;  %v6654_v4 = vld [vmem:[%s8601_s4 + $0x1f0] ss:$48 sps:$4 sm:$0xff]   ;;  %3191 = vmatprep.subr.bf16.mxu0 %v6653_v58 }
 0xc2b   :  { %2637 = vmatprep.mubr.bf16.mxu1 %v2506_v36  ;;  %v2498_v12 = vadd.f32 1.0, %v6852_v25  ;;  %v6659_v36 = vld [vmem:[%s8601_s4 + $0x244] ss:$48 sps:$4 sm:$0xff]   ;;  %v6684_v39 = vld [vmem:[%s8601_s4 + $0x260] ss:$48 sps:$4 sm:$0xff]  }
 0xc2c   :  { %2638 = vmatmul.mubr.bf16.vlgmr.msra.gmra.mrb[68].mxu1 %v2505_v1  ;;  %v2503_v14 = vmul.f32 %v2497_v63, %v2455_v5  ;;  %v6651_v1 = vld [vmem:[%s8601_s4 + $0x1e0] ss:$48 sps:$4 sm:$0xff]   ;;  %v6662_v25 = vld [vmem:[%s8601_s4 + $0x254] ss:$48 sps:$4 sm:$0xff]  }
 0xc2d   :  { %v2504_v52 = vmul.f32 %v2498_v12, %v2456_v15  ;;  %3292 = vmatpush1.bf16.msra.mxu1 %v6648_v46  ;;  %3192 = vmatpush1.bf16.msra.mxu0 %v6651_v1  ;;  %v6657_v63 = vld [vmem:[%s8601_s4 + $0x240] ss:$48 sps:$4 sm:$0xff]   ;;  %v6665_v12 = vld [vmem:[%s8601_s4 + $0x2a4] ss:$48 sps:$4 sm:$0xff]   ;;  %v6689_v46 = vld [vmem:[%s8601_s4 + $0x2ac] ss:$48 sps:$4 sm:$0xff]  }
 0xc2e   :  { %v2507_v3 = vpack.c.bf16 %v2503_v14, %v2503_v14  ;;  %3293 = vmatprep.subr.bf16.mxu1 %v6656_v60  ;;  %v6660_v15 = vld [vmem:[%s8601_s4 + $0x250] ss:$48 sps:$4 sm:$0xff]   ;;  %3193 = vmatprep.subr.bf16.mxu0 %v6659_v36  ;;  %v6668_v5 = vld [vmem:[%s8601_s4 + $0x2b4] ss:$48 sps:$4 sm:$0xff]   ;;  %v6687_v60 = vld [vmem:[%s8601_s4 + $0x2a8] ss:$48 sps:$4 sm:$0xff]  }
 0xc2f   :  { %v2508_v7 = vpack.c.bf16 %v2504_v52, %v2504_v52  ;;  %v6663_v52 = vld [vmem:[%s8601_s4 + $0x2a0] ss:$48 sps:$4 sm:$0xff]   ;;  %v6692_v58 = vld [vmem:[%s8601_s4 + $0x2c4] ss:$48 sps:$4 sm:$0xff]   ;;  %v6693_v36 = vld [vmem:[%s8601_s4 + $0x198] ss:$48 sps:$4 sm:$0xff]  }
 0xc30   :  { %v6666_v14 = vld [vmem:[%s8601_s4 + $0x2b0] ss:$48 sps:$4 sm:$0xff]  }
 0xc31   :  { %2645 = vmatprep.mubr.bf16.mxu1 %v2508_v7  ;;  %3294 = vmatpush1.bf16.msra.mxu1 %v6654_v4  ;;  %v6671_v7 = vld [vmem:[%s8601_s4 + $0x18c] ss:$48 sps:$4 sm:$0xff]   ;;  %v6690_v1 = vld [vmem:[%s8601_s4 + $0x2c0] ss:$48 sps:$4 sm:$0xff]  }
 0xc32   :  { %3295 = vmatprep.subr.bf16.mxu1 %v6662_v25  ;;  %3194 = vmatpush1.bf16.msra.mxu0 %v6657_v63  ;;  %v6695_v4 = vld [vmem:[%s8601_s4 + $0x19c] ss:$48 sps:$4 sm:$0xff]   ;;  %v6696_v63 = vld [vmem:[%s8601_s4 + $0x1f8] ss:$48 sps:$4 sm:$0xff]  }
 0xc33   :  { %3195 = vmatprep.subr.bf16.mxu0 %v6665_v12  ;;  %v6698_v25 = vld [vmem:[%s8601_s4 + $0x1fc] ss:$48 sps:$4 sm:$0xff]   ;;  %v6699_v12 = vld [vmem:[%s8601_s4 + $0x258] ss:$48 sps:$4 sm:$0xff]  }
 0xc34   :  { %2646 = vmatmul.mubr.bf16.gmra.mrb[72].mxu1 %v2507_v3  ;;  %v6674_v3 = vld [vmem:[%s8601_s4 + $0x1a4] ss:$48 sps:$4 sm:$0xff]  }
 0xc35   :  { %3323 = vmatprep.mubr.bf16.mxu1 %v8619_v24  ;;  %3296 = vmatpush1.bf16.msra.mxu1 %v6660_v15  ;;  %v6701_v15 = vld [vmem:[%s8601_s4 + $0x25c] ss:$48 sps:$4 sm:$0xff]  }
 0xc36   :  { %3297 = vmatprep.subr.bf16.mxu1 %v6668_v5  ;;  %3196 = vmatpush1.bf16.msra.mxu0 %v6663_v52  ;;  %v6704_v5 = vld [vmem:[%s8601_s4 + $0x2bc] ss:$48 sps:$4 sm:$0xff]   ;;  %v6702_v52 = vld [vmem:[%s8601_s4 + $0x2b8] ss:$48 sps:$4 sm:$0xff]  }
 0xc37   :  { %3240 = vmatprep.subr.bf16.mxu0 %v6671_v7  ;;  %v6705_v7 = vld [vmem:[%s8601_s4 + $0x1a8] ss:$48 sps:$4 sm:$0xff]  }
 0xc39   :  { %3298 = vmatpush1.bf16.msra.mxu1 %v6666_v14  ;;  %v6707_v14 = vld [vmem:[%s8601_s4 + $0x1ac] ss:$48 sps:$4 sm:$0xff]  }
 0xc3a   :  { %3393 = vmatprep.subr.bf16.mxu1 %v6674_v3  ;;  %v6710_v3 = vld [vmem:[%s8601_s4 + $0x20c] ss:$48 sps:$4 sm:$0xff]  }
 0xcff   :  { %v5883_v21 = vpop.f32.mrb[68].mxu1 }
 0xd00   :  { %v5884_v38 = vpop.f32.mrb[69].mxu1 }
 0xd01   :  { %v5885_v9 = vadd.f32 %v5884_v38, %v5883_v21  ;;  %v5886_v22 = vpop.f32.mrb[70].mxu1 }
 0xd02   :  { %v5887_v32 = vpop.f32.mrb[71].mxu1 }
 0xd03   :  { %v2653_v2 = vadd.f32 %v5885_v9, %v7732_v54  ;;  %v5888_v13 = vadd.f32 %v5887_v32, %v5886_v22 }
 0xd05   :  { %v7839_v8 = vadd.f32 %v2659_v50, %v2653_v2  ;;  %v2654_v0 = vadd.f32 %v5888_v13, %v7737_v30 }
 0xd07   :  { %v7842_v33 = vadd.f32 %v2659_v50, %v2654_v0  ;;  %v5889_v44 = vpop.f32.mrb[72].mxu1  ;;  %v2826_v6 = vsel %vm400_vm0, %v7839_v8, 0.0  ;;  %v5613_v0 = vld [vmem:[%s8607_s10 + $0x8] sm:$0x3f] }
 0xd08   :  { %2827 = vadd.xlane.f32.xlu0 %v2826_v6  ;;  %v5890_v11 = vpop.f32.mrb[73].mxu1  ;;  %v2868_v6 = vrot.slane %v5613_v0, %v7209_v27 }
 0xd09   :  { %v5891_v35 = vadd.f32 %v5890_v11, %v5889_v44  ;;  %v5892_v42 = vpop.f32.mrb[74].mxu1  ;;  %v2829_v61 = vsel %vm400_vm0, %v7842_v33, 0.0 }
 0xd0a   :  { %2830 = vadd.xlane.f32.xlu1 %v2829_v61  ;;  %v5893_v54 = vpop.f32.mrb[75].mxu1  ;;  %v2875_v61 = vrot.slane %v5613_v0, %v7216_v31 }
 0xd0b   :  { %v2655_v40 = vadd.f32 %v5891_v35, %v7735_v28 }
 0xd0d   :  { %v7849_v43 = vadd.f32 %v2659_v50, %v2655_v40 }
 0xd0f   :  { %v2832_v30 = vsel %vm400_vm0, %v7849_v43, 0.0 }
 0xd10   :  { %2833 = vadd.xlane.f32.xlu0 %v2832_v30 }
 0xd95   :  { %v2828_v57 = vpop.xlane.xlu0 %2827 }
 0xd96   :  { %v2835_v37 = vmul.f32 0.015625, %v2828_v57 }
 0xd97   :  { %v2831_v47 = vpop.xlane.xlu1 %2830 }
 0xd98   :  { %v7854_v55 = vsub.f32 %v7839_v8, %v2835_v37  ;;  %v2836_v62 = vmul.f32 0.015625, %v2831_v47 }
 0xd9a   :  { %v7857_v48 = vsub.f32 %v7842_v33, %v2836_v62  ;;  %v2841_v19 = vmul.f32 %v7854_v55, %v7854_v55  ;;  %v6669_v62 = vld [vmem:[%s8601_s4 + $0x188] ss:$48 sps:$4 sm:$0xff]  }
 0xd9c   :  { %v2844_v28 = vsel %vm400_vm0, %v2841_v19, 0.0  ;;  %v2842_v59 = vmul.f32 %v7857_v48, %v7857_v48  ;;  %v6672_v19 = vld [vmem:[%s8601_s4 + $0x1a0] ss:$48 sps:$4 sm:$0xff]  }
 0xd9d   :  { %2845 = vadd.xlane.f32.xlu1 %v2844_v28  ;;  %v2834_v10 = vpop.xlane.xlu0 %2833 }
 0xd9e   :  { %v2837_v26 = vmul.f32 0.015625, %v2834_v10  ;;  %v2847_v49 = vsel %vm400_vm0, %v2842_v59, 0.0  ;;  %v6680_v59 = vld [vmem:[%s8601_s4 + $0x204] ss:$48 sps:$4 sm:$0xff]  }
 0xd9f   :  { %2848 = vadd.xlane.f32.xlu0 %v2847_v49  ;;  %v6678_v49 = vld [vmem:[%s8601_s4 + $0x200] ss:$48 sps:$4 sm:$0xff]  }
 0xda0   :  { %v7866_v53 = vsub.f32 %v7849_v43, %v2837_v26  ;;  %v6675_v26 = vld [vmem:[%s8601_s4 + $0x1e8] ss:$48 sps:$4 sm:$0xff]  }
 0xda2   :  { %v2843_v51 = vmul.f32 %v7866_v53, %v7866_v53 }
 0xda4   :  { %v2850_v29 = vsel %vm400_vm0, %v2843_v51, 0.0  ;;  %v6683_v51 = vld [vmem:[%s8601_s4 + $0x24c] ss:$48 sps:$4 sm:$0xff]  }
 0xda5   :  { %2851 = vadd.xlane.f32.xlu1 %v2850_v29  ;;  %v6686_v29 = vld [vmem:[%s8601_s4 + $0x264] ss:$48 sps:$4 sm:$0xff]  }
 0xe2a   :  { %v2846_v21 = vpop.xlane.xlu1 %2845 }
 0xe2b   :  { %v2853_v38 = vmul.f32 0.015625, %v2846_v21  ;;  %v6708_v21 = vld [vmem:[%s8601_s4 + $0x208] ss:$48 sps:$4 sm:$0xff]  }
 0xe2c   :  { %v2849_v9 = vpop.xlane.xlu0 %2848 }
 0xe2d   :  { %v2856_v50 = vadd.f32 1e-12, %v2853_v38  ;;  %v2854_v22 = vmul.f32 0.015625, %v2849_v9  ;;  %v6713_v38 = vld [vmem:[%s8601_s4 + $0x26c] ss:$48 sps:$4 sm:$0xff]  }
 0xe2e   :  { %v6711_v9 = vld [vmem:[%s8601_s4 + $0x268] ss:$48 sps:$4 sm:$0xff]  }
 0xe2f   :  { %6853 = vrsqrt.f32 %v2856_v50  ;;  %v2857_v32 = vadd.f32 1e-12, %v2854_v22  ;;  %v6716_v50 = vld [vmem:[%s8601_s4 + $0x2cc] ss:$48 sps:$4 sm:$0xff]   ;;  %v6714_v22 = vld [vmem:[%s8601_s4 + $0x2c8] ss:$48 sps:$4 sm:$0xff]  }
 0xe31   :  { %6855 = vrsqrt.f32 %v2857_v32  ;;  %v8070_v32 = vld [vmem:[%s8602_s5 + $0xc] sm:$0xff] }
 0xe32   :  { %v2852_v2 = vpop.xlane.xlu1 %2851 }
 0xe33   :  { %v2855_v13 = vmul.f32 0.015625, %v2852_v2  ;;  %v2902_v2 = vrot.slane %v8070_v32, %v7349_v18 }
 0xe35   :  { %v2858_v44 = vadd.f32 1e-12, %v2855_v13 }
 0xe37   :  { %6857 = vrsqrt.f32 %v2858_v44  ;;  %v2906_v44 = vrot.slane %v8070_v32, %v7357_v20 }
 0xe39   :  { %v6854_v11 = vpop.eup %6853 }
 0xe3a   :  { %v2862_v35 = vmul.f32 %v6854_v11, %v7854_v55 }
 0xe3b   :  { %v6856_v42 = vpop.eup %6855 }
 0xe3c   :  { %v2869_v54 = vmul.f32 %v2868_v6, %v2862_v35  ;;  %v2863_v40 = vmul.f32 %v6856_v42, %v7857_v48  ;;  %v6677_v48 = vld [vmem:[%s8601_s4 + $0x1ec] ss:$48 sps:$4 sm:$0xff]   ;;  %s6964_s4 = smov [#allocation2]  }
 0xe3d   :  { %s5304_s2 = sshll.u32 %s6964_s4, 4  ;;  %s5305_s2 = int_to_ptr.vmem [resolvable:$true] %s5304_s2 }
 0xe3e   :  { %v2870_v30 = vmul.f32 %v2868_v6, %v2863_v40  ;;  %v2876_v57 = vadd.f32 %v2875_v61, %v2869_v54  ;;  %p6941_p1 = scmp.lt.s32.totalorder %s5305_s2, %s5305_s2 }
 0xe40   :  { %v2877_v37 = vadd.f32 %v2875_v61, %v2870_v30 }
 0xe41   :  { %v6858_v47 = vpop.eup %6857 }
 0xe42   :  { %v2864_v55 = vmul.f32 %v6858_v47, %v7866_v53  ;;  %v7939_v28 = vpack.c.bf16 %v2877_v37, %v2876_v57 }
 0xe44   :  { %v2871_v10 = vmul.f32 %v2868_v6, %v2864_v55  ;;  %5662 = vmatmul.mubr.msk.bf16.vlgmr.msra.gmra.mrb[64].mxu0 %vm400_vm0, %v7939_v28  ;;  %5666 = vmatmul.mubr.msk.bf16.vlgmr.msra.gmra.mrb[76].mxu1 %vm400_vm0, %v7939_v28 }
 0xe45   :  { %3241 = vmatpush1.bf16.msra.mxu0 %v6669_v62  ;;  %3394 = vmatpush1.bf16.msra.mxu1 %v6672_v19 }
 0xe46   :  { %v2878_v53 = vadd.f32 %v2875_v61, %v2871_v10  ;;  %3242 = vmatprep.subr.bf16.mxu0 %v6677_v48  ;;  %3395 = vmatprep.subr.bf16.mxu1 %v6680_v59 }
 0xe47   :  { %3231 = vmatprep.mubr.bf16.mxu0 %v8619_v24  ;;  %3333 = vmatprep.mubr.bf16.mxu1 %v8619_v24 }
 0xe48   :  { %v7971_v41 = vpack.c.bf16 %v2878_v53, %v2878_v53  ;;  %v8086_v53 = vld [vmem:[%s8602_s5 + $0x14] sm:$0xf] }
 0xe49   :  { %3243 = vmatpush1.bf16.msra.mxu0 %v6675_v26  ;;  %3396 = vmatpush1.bf16.msra.mxu1 %v6678_v49 }
 0xe4a   :  { %3244 = vmatprep.subr.bf16.mxu0 %v6683_v51  ;;  %3397 = vmatprep.subr.bf16.mxu1 %v6686_v29  ;;  %v2886_v51 = vrot.slane %v8070_v32, %v7209_v27 }
 0xe4c   :  { %5663 = vmatmul.mubr.msk.bf16.gmra.mrb[68].mxu0 %vm400_vm0, %v7971_v41  ;;  %5667 = vmatmul.mubr.msk.bf16.gmra.mrb[80].mxu1 %vm400_vm0, %v7971_v41 }
 0xe4d   :  { %3245 = vmatpush1.bf16.msra.mxu0 %v6681_v34  ;;  %3398 = vmatpush1.bf16.msra.mxu1 %v6684_v39  ;;  %v2922_v34 = vrot.slane %v8086_v53, %v7216_v31  ;;  %v2918_v39 = vrot.slane %v8086_v53, %v7209_v27 }
 0xe4e   :  { %3246 = vmatprep.subr.bf16.mxu0 %v6689_v46  ;;  %3399 = vmatprep.subr.bf16.mxu1 %v6692_v58 }
 0xe4f   :  { %3272 = vmatprep.mubr.bf16.mxu0 %v8619_v24  ;;  %3425 = vmatprep.mubr.bf16.mxu1 %v8619_v24 }
 0xe51   :  { %3247 = vmatpush1.bf16.msra.mxu0 %v6687_v60  ;;  %3400 = vmatpush1.bf16.msra.mxu1 %v6690_v1 }
 0xe52   :  { %3342 = vmatprep.subr.bf16.mxu0 %v6695_v4  ;;  %6465 = vmatprep.subr.bf16.mxu1 %v6961_v16 }
 0xe54   :  { %5664 = vmatmul.mubr.msk.bf16.vlgmr.msra.gmra.mrb[72].mxu0 %vm400_vm0, %v7939_v28  ;;  %5670 = vmatmul.mubr.msk.bf16.vlgmr.msra.gmra.mrb[84].mxu1 %vm400_vm0, %v7939_v28 }
 0xe55   :  { %3343 = vmatpush1.bf16.msra.mxu0 %v6693_v36  ;;  %3282 = vmatprep.mubr.bf16.mxu0 %v8619_v24 }
 0xe56   :  { %3344 = vmatprep.subr.bf16.mxu0 %v6698_v25  ;;  %3435 = vmatprep.mubr.bf16.mxu1 %v8619_v24 }
 0xe59   :  { %3345 = vmatpush1.bf16.msra.mxu0 %v6696_v63 }
 0xe5a   :  { %3346 = vmatprep.subr.bf16.mxu0 %v6701_v15 }
 0xe5c   :  { %5665 = vmatmul.mubr.msk.bf16.gmra.mrb[76].mxu0 %vm400_vm0, %v7971_v41  ;;  %5671 = vmatmul.mubr.msk.bf16.gmra.mrb[88].mxu1 %vm400_vm0, %v7971_v41 }
 0xe5d   :  { %3347 = vmatpush1.bf16.msra.mxu0 %v6699_v12  ;;  %3374 = vmatprep.mubr.bf16.mxu0 %v8619_v24 }
 0xe5e   :  { %3348 = vmatprep.subr.bf16.mxu0 %v6704_v5  ;;  %6226 = vmatprep.mubr.msk.f32.mxu1 %vm6962_vm1, %v6963_v17 }
 0xe61   :  { %3349 = vmatpush1.bf16.msra.mxu0 %v6702_v52 }
 0xe62   :  { %3444 = vmatprep.subr.bf16.mxu0 %v6707_v14 }
 0xe64   :  { %5668 = vmatmul.mubr.msk.bf16.vlgmr.msra.gmra.mrb[80].mxu0 %vm400_vm0, %v7939_v28 }
 0xe65   :  { %3445 = vmatpush1.bf16.msra.mxu0 %v6705_v7  ;;  %3384 = vmatprep.mubr.bf16.mxu0 %v8619_v24 }
 0xe66   :  { %3446 = vmatprep.subr.bf16.mxu0 %v6710_v3 }
 0xe69   :  { %3447 = vmatpush1.bf16.msra.mxu0 %v6708_v21  ;;  %v2890_v21 = vrot.slane %v8070_v32, %v7216_v31 }
 0xe6a   :  { %3448 = vmatprep.subr.bf16.mxu0 %v6713_v38 }
 0xe6c   :  { %5669 = vmatmul.mubr.msk.bf16.gmra.mrb[84].mxu0 %vm400_vm0, %v7971_v41 }
 0xe6d   :  { %3449 = vmatpush1.bf16.msra.mxu0 %v6711_v9  ;;  %3476 = vmatprep.mubr.bf16.mxu0 %v8619_v24 }
 0xe6e   :  { %3450 = vmatprep.subr.bf16.mxu0 %v6716_v50 }
 0xe71   :  { %3451 = vmatpush1.bf16.msra.mxu0 %v6714_v22 }
 0xe72   :  { %6468 = vmatprep.subr.bf16.mxu0 %v6961_v16 }
 0xe74   :  { %5672 = vmatmul.mubr.msk.bf16.vlgmr.msra.gmra.mrb[88].mxu0 %vm400_vm0, %v7939_v28 }
 0xe75   :  { %3486 = vmatprep.mubr.bf16.mxu0 %v8619_v24 }
 0xe7c   :  { %5673 = vmatmul.mubr.msk.bf16.gmra.mrb[92].mxu0 %vm400_vm0, %v7971_v41 }
 0xe7d   :  { %6241 = vmatprep.mubr.msk.f32.mxu0 %vm6962_vm1, %v6963_v17 }
 0xf17   :  { %v3223_v13 = vpop.f32.mrb[64].mxu0  ;;  %v3325_v0 = vpop.f32.mrb[76].mxu1 }
 0xf18   :  { %v8076_v6 = vpop.f32.mrb[65].mxu0  ;;  %v3327_v11 = vpop.f32.mrb[77].mxu1  ;;  %v3326_v61 = vadd.f32 %v3325_v0, %v2902_v2  ;;  %v3224_v41 = vadd.f32 %v3223_v13, %v2886_v51 }
 0xf19   :  { %v3227_v35 = vpop.f32.mrb[66].mxu0  ;;  %v3329_v42 = vpop.f32.mrb[78].mxu1  ;;  %v3328_v57 = vadd.f32 %v3327_v11, %v2906_v44 }
 0xf1a   :  { %v3330_v54 = vadd.f32 %v3329_v42, %v2902_v2  ;;  %v8078_v40 = vpop.f32.mrb[67].mxu0  ;;  %v3331_v30 = vpop.f32.mrb[79].mxu1  ;;  %v3228_v52 = vadd.f32 %v3227_v35, %v2886_v51 }
 0xf1b   :  { %v3332_v37 = vadd.f32 %v3331_v30, %v2906_v44  ;;  %v3226_v30 = vadd.f32 %v8076_v6, %v2890_v21 }
 0xf1c   :  { %v6466_v47 = vpack.c.bf16 %v3330_v54, %v3326_v61 }
 0xf1d   :  { %v6472_v62 = vpack.c.bf16 %v3332_v37, %v3328_v57  ;;  %v3230_v37 = vadd.f32 %v8078_v40, %v2890_v21 }
 0xf1e   :  { %6467 = vmatpush3.bf16.xpose.msra.mxu1 %v6466_v47 }
 0xf1f   :  { %v3233_v19 = vpop.f32.mrb[68].mxu0  ;;  %v3335_v55 = vpop.f32.mrb[80].mxu1  ;;  %6224 = vmatprep.subr.mxu1 %v6963_v17 }
 0xf20   :  { %v8081_v28 = vpop.f32.mrb[69].mxu0  ;;  %v3337_v48 = vpop.f32.mrb[81].mxu1  ;;  %v3336_v29 = vadd.f32 %v3335_v55, %v2902_v2  ;;  %v3234_v38 = vadd.f32 %v3233_v19, %v2886_v51 }
 0xf21   :  { %v3237_v59 = vpop.f32.mrb[70].mxu0  ;;  %v3339_v10 = vpop.f32.mrb[82].mxu1  ;;  %v3338_v22 = vadd.f32 %v3337_v48, %v2906_v44  ;;  %v8620_v44 = vsub.s32 6, %v7206_v23  ;;  %v3236_v40 = vadd.f32 %v8081_v28, %v2890_v21  ;;  %v2926_v28 = vrot.slane %v8086_v53, %v7453_v45 }
 0xf22   :  { %v3238_v26 = vpop.f32.mrb[71].mxu0  ;;  %v3340_v49 = vpop.f32.mrb[83].mxu1 }
 0xf23   :  { %v8130_v57 = vrot.slane %v8070_v32, %v8620_v44 }
 0xf26   :  { %6225 = vmatpush3.xpose.msra.mxu1 %v3336_v29 }
 0xf27   :  { %v8094_v46 = vpop.f32.mrb[72].mxu0  ;;  %v3427_v58 = vpop.f32.mrb[84].mxu1  ;;  %6471 = vmatprep.subr.bf16.mxu1 %v6961_v16 }
 0xf28   :  { %v8097_v60 = vpop.f32.mrb[73].mxu0  ;;  %v3429_v1 = vpop.f32.mrb[85].mxu1  ;;  %v3428_v63 = vadd.f32 %v3427_v58, %v2918_v39  ;;  %v2930_v58 = vrot.slane %v8086_v53, %v7456_v56 }
 0xf29   :  { %v8099_v4 = vadd.f32 %v3429_v1, %v2922_v34  ;;  %v8101_v36 = vpop.f32.mrb[74].mxu0  ;;  %v3431_v25 = vpop.f32.mrb[86].mxu1  ;;  %6227 = vmatmul.mubr.f32.vlgmr.msra.gmra.mrb[54].mxu1 %v3224_v41 }
 0xf2a   :  { %v3432_v15 = vadd.f32 %v3431_v25, %v2918_v39  ;;  %v8103_v12 = vpop.f32.mrb[75].mxu0  ;;  %v3433_v5 = vpop.f32.mrb[87].mxu1  ;;  %6473 = vmatpush3.bf16.xpose.msra.mxu1 %v6472_v62  ;;  %6229 = vmatprep.mubr.msk.f32.mxu1 %vm6962_vm1, %v6963_v17  ;;  %v8621_v62 = vsub.s32 7, %v7206_v23 }
 0xf2b   :  { %v8107_v14 = vadd.f32 %v3433_v5, %v2922_v34  ;;  %6254 = vmatprep.subr.mxu1 %v6963_v17 }
 0xf2c   :  { %v6469_v7 = vpack.c.bf16 %v3432_v15, %v3428_v63  ;;  %v8138_v6 = vrot.slane %v8070_v32, %v8621_v62  ;;  %v8193_v62 = vld [vmem:[%s8600_s3 + $0x8] sm:$0xff] }
 0xf2d   :  { %v6475_v3 = vpack.c.bf16 %v8107_v14, %v8099_v4  ;;  %6230 = vmatmul.mubr.f32.gmra.mrb[92].mxu1 %v3228_v52 }
 0xf2e   :  { %6470 = vmatpush3.bf16.msra.mxu0 %v6469_v7  ;;  %6232 = vmatprep.mubr.msk.f32.mxu1 %vm6962_vm1, %v6963_v17 }
 0xf2f   :  { %v8116_v9 = vpop.f32.mrb[76].mxu0  ;;  %v3437_v50 = vpop.f32.mrb[88].mxu1  ;;  %6239 = vmatprep.subr.mxu0 %v6963_v17 }
 0xf30   :  { %v3438_v2 = vadd.f32 %v3437_v50, %v2918_v39  ;;  %v8119_v13 = vpop.f32.mrb[77].mxu0  ;;  %v3439_v0 = vpop.f32.mrb[89].mxu1 }
 0xf31   :  { %v8121_v11 = vadd.f32 %v3439_v0, %v2922_v34  ;;  %v3288_v35 = vpop.f32.mrb[78].mxu0  ;;  %v3441_v42 = vpop.f32.mrb[90].mxu1  ;;  %6233 = vmatmul.mubr.f32.gmra.mrb[94].mxu1 %v3234_v38 }
 0xf32   :  { %v3289_v61 = vpop.f32.mrb[79].mxu0  ;;  %v3442_v54 = vpop.f32.mrb[91].mxu1  ;;  %6240 = vmatpush3.msra.mxu0 %v3438_v2  ;;  %6255 = vmatpush3.xpose.msra.mxu1 %v3338_v22 }
 0xf33   :  { %6256 = vmatprep.mubr.msk.f32.mxu1 %vm6962_vm1, %v6963_v17  ;;  %6474 = vmatprep.subr.bf16.mxu0 %v6961_v16  ;;  %v8186_v54 = vld [vmem:[%s8600_s3] sm:$0xff] }
 0xf35   :  { %6257 = vmatmul.mubr.f32.vlgmr.msra.gmra.mrb[96].mxu1 %v3226_v30 }
 0xf36   :  { %6259 = vmatprep.mubr.msk.f32.mxu1 %vm6962_vm1, %v6963_v17 }
 0xf37   :  { %v3376_v47 = vpop.f32.mrb[80].mxu0 }
 0xf38   :  { %v3378_v19 = vpop.f32.mrb[81].mxu0  ;;  %v8141_v48 = vadd.f32 %v3376_v47, %v8130_v57 }
 0xf39   :  { %v3380_v55 = vpop.f32.mrb[82].mxu0  ;;  %6260 = vmatmul.mubr.f32.gmra.mrb[98].mxu1 %v3230_v37  ;;  %v8150_v23 = vadd.f32 %v3378_v19, %v8138_v6 }
 0xf3a   :  { %v8144_v59 = vadd.f32 %v3380_v55, %v8130_v57  ;;  %v3382_v10 = vpop.f32.mrb[83].mxu0  ;;  %6262 = vmatprep.mubr.msk.f32.mxu1 %vm6962_vm1, %v6963_v17 }
 0xf3b   :  { %v8153_v26 = vadd.f32 %v3382_v10, %v8138_v6 }
 0xf3c   :  { %v6478_v49 = vpack.c.bf16 %v8144_v59, %v8141_v48 }
 0xf3d   :  { %6263 = vmatmul.mubr.f32.gmra.mrb[100].mxu1 %v3236_v40 }
 0xf3f   :  { %v8159_v29 = vpop.f32.mrb[84].mxu0 }
 0xf40   :  { %v8161_v34 = vpop.f32.mrb[85].mxu0 }
 0xf41   :  { %v3390_v39 = vpop.f32.mrb[86].mxu0 }
 0xf42   :  { %v3391_v41 = vpop.f32.mrb[87].mxu0  ;;  %v8200_v39 = vld [vmem:[%s8600_s3 + $0x10] sm:$0xff] }
 0xf47   :  { %v3478_v1 = vpop.f32.mrb[88].mxu0 }
 0xf48   :  { %v8167_v25 = vadd.f32 %v3478_v1, %v2926_v28  ;;  %v3480_v63 = vpop.f32.mrb[89].mxu0 }
 0xf49   :  { %v8169_v15 = vadd.f32 %v3480_v63, %v2930_v58  ;;  %v3482_v5 = vpop.f32.mrb[90].mxu0 }
 0xf4a   :  { %v8171_v52 = vadd.f32 %v3482_v5, %v2926_v28  ;;  %v3484_v7 = vpop.f32.mrb[91].mxu0 }
 0xf4b   :  { %v8173_v21 = vadd.f32 %v3484_v7, %v2930_v58 }
 0xf4c   :  { %v6481_v38 = vpack.c.bf16 %v8171_v52, %v8167_v25  ;;  %v2894_v25 = vrot.slane %v8070_v32, %v7453_v45  ;;  %v3387_v52 = vadd.f32 %v8159_v29, %v8130_v57 }
 0xf4e   :  { %v3279_v48 = vadd.f32 %v8101_v36, %v2894_v25  ;;  %v3285_v59 = vadd.f32 %v8116_v9, %v2894_v25 }
 0xf4f   :  { %v3488_v22 = vpop.f32.mrb[92].mxu0 }
 0xf50   :  { %v8179_v53 = vadd.f32 %v3488_v22, %v2926_v28  ;;  %v3490_v2 = vpop.f32.mrb[93].mxu0 }
 0xf51   :  { %v8181_v0 = vadd.f32 %v3490_v2, %v2930_v58  ;;  %v3492_v35 = vpop.f32.mrb[94].mxu0 }
 0xf52   :  { %v3493_v42 = vpop.f32.mrb[95].mxu0 }
 0xffc   :  { %v3561_v61 = vpop.f32.mrb[54].mxu1 }
 0xffd   :  { %v3562_v30 = vadd.f32 %v8186_v54, %v3561_v61  ;;  %v6228_v44 = vpop.f32.mrb[55].mxu1 }
 0xfff   :  { %v3575_v37 = vsel %vm1151_vm2, %v3562_v30, -inf }
0x1000   :  { %3576 = vmax.xlane.f32.xlu0 %v3575_v37  ;;  %v3566_v47 = vpop.f32.mrb[92].mxu1 }
0x1001   :  { %v3567_v19 = vadd.f32 %v8193_v62, %v3566_v47  ;;  %v6231_v55 = vpop.f32.mrb[93].mxu1 }
0x1003   :  { %v3578_v10 = vsel %vm1151_vm2, %v3567_v19, -inf }
0x1004   :  { %3579 = vmax.xlane.f32.xlu1 %v3578_v10  ;;  %v3571_v40 = vpop.f32.mrb[94].mxu1 }
0x1005   :  { %v3572_v41 = vadd.f32 %v8200_v39, %v3571_v40  ;;  %v6234_v28 = vpop.f32.mrb[95].mxu1 }
0x1007   :  { %v3581_v58 = vsel %vm1151_vm2, %v3572_v41, -inf }
0x1008   :  { %3582 = vmax.xlane.f32.xlu0 %v3581_v58  ;;  %v3765_v1 = vpop.f32.mrb[96].mxu1 }
0x1009   :  { %v3766_v63 = vadd.f32 %v8186_v54, %v3765_v1  ;;  %v6258_v5 = vpop.f32.mrb[97].mxu1 }
0x100b   :  { %v3779_v7 = vsel %vm1151_vm2, %v3766_v63, -inf }
0x100c   :  { %3780 = vmax.xlane.f32.xlu1 %v3779_v7  ;;  %v3770_v22 = vpop.f32.mrb[98].mxu1 }
0x100d   :  { %v3771_v2 = vadd.f32 %v8193_v62, %v3770_v22  ;;  %v6261_v35 = vpop.f32.mrb[99].mxu1 }
0x100f   :  { %v3782_v42 = vsel %vm1151_vm2, %v3771_v2, -inf }
0x1010   :  { %3783 = vmax.xlane.f32.xlu0 %v3782_v42  ;;  %v3775_v61 = vpop.f32.mrb[100].mxu1 }
0x1011   :  { %v3776_v44 = vadd.f32 %v8200_v39, %v3775_v61  ;;  %v6264_v37 = vpop.f32.mrb[101].mxu1 }
0x1013   :  { %v3785_v47 = vsel %vm1151_vm2, %v3776_v44, -inf }
0x1014   :  { %3786 = vmax.xlane.f32.xlu1 %v3785_v47 }
0x108d   :  { %v3577_v55 = vpop.xlane.xlu0 %3576 }
0x108e   :  { %v3584_v10 = vsub.f32 %v3562_v30, %v3577_v55 }
0x1090   :  { %v3587_v40 = vmul.f32 1.442695, %v3584_v10 }
0x1091   :  { %v3580_v28 = vpop.xlane.xlu1 %3579 }
0x1092   :  { %6859 = vpow2.f32 %v3587_v40  ;;  %v3585_v58 = vsub.f32 %v3567_v19, %v3580_v28 }
0x1094   :  { %v3589_v1 = vmul.f32 1.442695, %v3585_v58 }
0x1095   :  { %v3583_v5 = vpop.xlane.xlu0 %3582 }
0x1096   :  { %6861 = vpow2.f32 %v3589_v1  ;;  %v3586_v7 = vsub.f32 %v3572_v41, %v3583_v5 }
0x1098   :  { %v3591_v22 = vmul.f32 1.442695, %v3586_v7 }
0x1099   :  { %v3781_v35 = vpop.xlane.xlu1 %3780 }
0x109a   :  { %6863 = vpow2.f32 %v3591_v22  ;;  %v3788_v42 = vsub.f32 %v3766_v63, %v3781_v35  ;;  %v6721_v22 = vld [vmem:[%s8603_s6 + $0x148] sm:$0xff]   ;;  %v6723_v35 = vld [vmem:[%s8603_s6 + $0x150] sm:$0xff]  }
0x109c   :  { %v6860_v50 = vpop.eup %6859  ;;  %v3791_v61 = vmul.f32 1.442695, %v3788_v42  ;;  %v6725_v42 = vld [vmem:[%s8603_s6 + $0x158] sm:$0xff]  }
0x109d   :  { %v3784_v37 = vpop.xlane.xlu0 %3783  ;;  %v3593_v51 = vsel %vm1151_vm2, %v6860_v50, 0.0 }
0x109e   :  { %6865 = vpow2.f32 %v3791_v61  ;;  %v3789_v47 = vsub.f32 %v3771_v2, %v3784_v37  ;;  %3594 = vadd.xlane.f32.xlu0 %v3593_v51 }
0x10a0   :  { %v6862_v30 = vpop.eup %6861  ;;  %v3793_v55 = vmul.f32 1.442695, %v3789_v47 }
0x10a1   :  { %v3787_v10 = vpop.xlane.xlu1 %3786  ;;  %v3596_v19 = vsel %vm1151_vm2, %v6862_v30, 0.0 }
0x10a2   :  { %6867 = vpow2.f32 %v3793_v55  ;;  %v3790_v40 = vsub.f32 %v3776_v44, %v3787_v10  ;;  %3597 = vadd.xlane.f32.xlu1 %v3596_v19  ;;  %v6719_v44 = vld [vmem:[%s8603_s6 + $0x140] sm:$0xff]  }
0x10a3   :  { %6280 = vmatprep.subr.bf16.mxu1 %v6719_v44 }
0x10a4   :  { %v6864_v41 = vpop.eup %6863  ;;  %v3795_v28 = vmul.f32 1.442695, %v3790_v40  ;;  %6281 = vmatpush3.bf16.msra.mxu1 %v6719_v44 }
0x10a5   :  { %v3599_v63 = vsel %vm1151_vm2, %v6864_v41, 0.0  ;;  %6282 = vmatprep.subr.bf16.mxu1 %v6721_v22 }
0x10a6   :  { %6869 = vpow2.f32 %v3795_v28  ;;  %3600 = vadd.xlane.f32.xlu0 %v3599_v63 }
0x10a8   :  { %v6866_v58 = vpop.eup %6865  ;;  %6283 = vmatpush3.bf16.msra.mxu1 %v6721_v22  ;;  %v6722_v22 = vld [vmem:[%s8603_s6 + $0x118] sm:$0xff]  }
0x10a9   :  { %v3797_v1 = vsel %vm1151_vm2, %v6866_v58, 0.0  ;;  %6284 = vmatprep.subr.bf16.mxu1 %v6723_v35 }
0x10aa   :  { %3798 = vadd.xlane.f32.xlu1 %v3797_v1 }
0x10ac   :  { %v6868_v2 = vpop.eup %6867  ;;  %6285 = vmatpush3.bf16.msra.mxu1 %v6723_v35  ;;  %v6726_v35 = vld [vmem:[%s8603_s6 + $0x128] sm:$0xff]  }
0x10ad   :  { %v3800_v51 = vsel %vm1151_vm2, %v6868_v2, 0.0  ;;  %6286 = vmatprep.subr.bf16.mxu1 %v6725_v42 }
0x10ae   :  { %3801 = vadd.xlane.f32.xlu0 %v3800_v51  ;;  %v6718_v51 = vld [vmem:[%s8603_s6 + $0x108] sm:$0xff]  }
0x10b0   :  { %v6870_v5 = vpop.eup %6869  ;;  %6287 = vmatpush3.bf16.msra.mxu1 %v6725_v42  ;;  %v6728_v42 = vld [vmem:[%s8603_s6 + $0x130] sm:$0xff]  }
0x10b1   :  { %v3803_v7 = vsel %vm1151_vm2, %v6870_v5, 0.0 }
0x10b2   :  { %3804 = vadd.xlane.f32.xlu1 %v3803_v7  ;;  %v6720_v7 = vld [vmem:[%s8603_s6 + $0x110] sm:$0xff]  }
0x112b   :  { %v3595_v61 = vpop.xlane.xlu0 %3594 }
0x112c   :  { %6871 = vrcp.f32 %v3595_v61  ;;  %v6729_v61 = vld [vmem:[%s8603_s6 + $0x168] sm:$0xff]  }
0x112f   :  { %v3598_v37 = vpop.xlane.xlu1 %3597 }
0x1130   :  { %6873 = vrcp.f32 %v3598_v37  ;;  %v6730_v37 = vld [vmem:[%s8603_s6 + $0x138] sm:$0xff]  }
0x1133   :  { %v3601_v47 = vpop.xlane.xlu0 %3600 }
0x1134   :  { %6875 = vrcp.f32 %v3601_v47  ;;  %v6731_v47 = vld [vmem:[%s8603_s6 + $0x170] sm:$0xff]  }
0x1136   :  { %v6872_v55 = vpop.eup %6871 }
0x1137   :  { %v3605_v10 = vmul.f32 %v6872_v55, %v6860_v50  ;;  %v3799_v19 = vpop.xlane.xlu1 %3798  ;;  %v6717_v50 = vld [vmem:[%s8603_s6 + $0x100] sm:$0xff]   ;;  %v6732_v55 = vld [vmem:[%s8603_s6 + $0x178] sm:$0xff]  }
0x1138   :  { %6877 = vrcp.f32 %v3799_v19 }
0x1139   :  { %6242 = vmatmul.mubr.msk.f32.vlgmr.msra.gmra.mrb[58].mxu0 %vm1151_vm2, %v3605_v10 }
0x113a   :  { %v6874_v40 = vpop.eup %6873  ;;  %6476 = vmatpush3.bf16.msra.mxu0 %v6475_v3  ;;  %6244 = vmatprep.mubr.msk.f32.mxu0 %vm6962_vm1, %v6963_v17 }
0x113b   :  { %v3802_v28 = vpop.xlane.xlu0 %3801  ;;  %6269 = vmatprep.subr.mxu0 %v6963_v17  ;;  %v3606_v63 = vmul.f32 %v6874_v40, %v6862_v30 }
0x113c   :  { %6879 = vrcp.f32 %v3802_v28 }
0x113d   :  { %6245 = vmatmul.mubr.msk.f32.gmra.mrb[96].mxu0 %vm1151_vm2, %v3606_v63 }
0x113e   :  { %v6876_v1 = vpop.eup %6875  ;;  %6270 = vmatpush3.msra.mxu0 %v8121_v11  ;;  %6247 = vmatprep.mubr.msk.f32.mxu0 %vm6962_vm1, %v6963_v17 }
0x113f   :  { %v3805_v4 = vpop.xlane.xlu1 %3804  ;;  %v3607_v14 = vmul.f32 %v6876_v1, %v6864_v41  ;;  %6300 = vmatprep.subr.bf16.mxu0 %v6717_v50 }
0x1140   :  { %6881 = vrcp.f32 %v3805_v4 }
0x1141   :  { %6248 = vmatmul.mubr.msk.f32.gmra.mrb[98].mxu0 %vm1151_vm2, %v3607_v14 }
0x1142   :  { %v6878_v3 = vpop.eup %6877  ;;  %6271 = vmatprep.mubr.msk.f32.mxu0 %vm6962_vm1, %v6963_v17 }
0x1143   :  { %v3809_v30 = vmul.f32 %v6878_v3, %v6866_v58 }
0x1145   :  { %6272 = vmatmul.mubr.msk.f32.vlgmr.msra.gmra.mrb[100].mxu0 %vm1151_vm2, %v3809_v30 }
0x1146   :  { %v6880_v11 = vpop.eup %6879  ;;  %6274 = vmatprep.mubr.msk.f32.mxu0 %vm6962_vm1, %v6963_v17  ;;  %6301 = vmatpush3.bf16.msra.mxu0 %v6717_v50 }
0x1147   :  { %v3810_v41 = vmul.f32 %v6880_v11, %v6868_v2  ;;  %6302 = vmatprep.subr.bf16.mxu0 %v6718_v51  ;;  %v6724_v2 = vld [vmem:[%s8603_s6 + $0x120] sm:$0xff]  }
0x1149   :  { %6275 = vmatmul.mubr.msk.f32.gmra.mrb[102].mxu0 %vm1151_vm2, %v3810_v41 }
0x114a   :  { %v6882_v58 = vpop.eup %6881  ;;  %6277 = vmatprep.mubr.msk.f32.mxu0 %vm6962_vm1, %v6963_v17  ;;  %6303 = vmatpush3.bf16.msra.mxu0 %v6718_v51 }
0x114b   :  { %v3811_v44 = vmul.f32 %v6882_v58, %v6870_v5  ;;  %6304 = vmatprep.subr.bf16.mxu0 %v6720_v7  ;;  %v6727_v5 = vld [vmem:[%s8603_s6 + $0x160] sm:$0xff]  }
0x114c   :  { %6288 = vmatprep.subr.bf16.mxu1 %v6727_v5 }
0x114d   :  { %6278 = vmatmul.mubr.msk.f32.gmra.mrb[104].mxu0 %vm1151_vm2, %v3811_v44  ;;  %6289 = vmatpush3.bf16.msra.mxu1 %v6727_v5 }
0x114e   :  { %6305 = vmatpush3.bf16.msra.mxu0 %v6720_v7  ;;  %6290 = vmatprep.subr.bf16.mxu1 %v6729_v61 }
0x114f   :  { %6306 = vmatprep.subr.bf16.mxu0 %v6722_v22 }
0x1151   :  { %6291 = vmatpush3.bf16.msra.mxu1 %v6729_v61 }
0x1152   :  { %6307 = vmatpush3.bf16.msra.mxu0 %v6722_v22  ;;  %6292 = vmatprep.subr.bf16.mxu1 %v6731_v47 }
0x1153   :  { %6308 = vmatprep.subr.bf16.mxu0 %v6724_v2 }
0x1155   :  { %6293 = vmatpush3.bf16.msra.mxu1 %v6731_v47 }
0x1156   :  { %6309 = vmatpush3.bf16.msra.mxu0 %v6724_v2  ;;  %6294 = vmatprep.subr.bf16.mxu1 %v6732_v55 }
0x1157   :  { %6310 = vmatprep.subr.bf16.mxu0 %v6726_v35 }
0x1159   :  { %6295 = vmatpush3.bf16.msra.mxu1 %v6732_v55 }
0x115a   :  { %6311 = vmatpush3.bf16.msra.mxu0 %v6726_v35  ;;  %6477 = vmatprep.subr.bf16.mxu1 %v6961_v16 }
0x115b   :  { %6312 = vmatprep.subr.bf16.mxu0 %v6728_v42 }
0x115e   :  { %6313 = vmatpush3.bf16.msra.mxu0 %v6728_v42 }
0x115f   :  { %6314 = vmatprep.subr.bf16.mxu0 %v6730_v37 }
0x1162   :  { %6315 = vmatpush3.bf16.msra.mxu0 %v6730_v37 }
0x1163   :  { %6480 = vmatprep.subr.bf16.mxu0 %v6961_v16 }
0x120c   :  { %v3683_v10 = vpop.f32.mrb[58].mxu0 }
0x120d   :  { %v6243_v19 = vpop.f32.mrb[59].mxu0 }
0x1210   :  { %v3688_v40 = vpop.f32.mrb[96].mxu0 }
0x1211   :  { %v3697_v28 = vpack.c.bf16 %v3688_v40, %v3683_v10  ;;  %v6246_v63 = vpop.f32.mrb[97].mxu0 }
0x1213   :  { %6316 = vmatprep.mubr.bf16.mxu0 %v3697_v28 }
0x1214   :  { %v3693_v50 = vpop.f32.mrb[98].mxu0 }
0x1215   :  { %v3698_v1 = vpack.c.bf16 %v3693_v50, %v3693_v50  ;;  %v6249_v4 = vpop.f32.mrb[99].mxu0 }
0x1217   :  { %6317 = vmatmul.mubr.bf16.vlgmr.msra.gmra.mrb[108].mxu0 %v3698_v1 }
0x1218   :  { %6482 = vmatpush3.bf16.msra.mxu0 %v6481_v38  ;;  %v3887_v14 = vpop.f32.mrb[100].mxu0  ;;  %6341 = vmatprep.mubr.msk.f32.mxu0 %vm6962_vm1, %v6963_v17  ;;  %v3275_v38 = vadd.f32 %v8094_v46, %v2894_v25 }
0x1219   :  { %v6273_v3 = vpop.f32.mrb[101].mxu0  ;;  %6339 = vmatprep.subr.mxu0 %v6963_v17 }
0x121c   :  { %6340 = vmatpush3.msra.mxu0 %v8179_v53  ;;  %v3892_v30 = vpop.f32.mrb[102].mxu0 }
0x121d   :  { %v3901_v51 = vpack.c.bf16 %v3892_v30, %v3887_v14  ;;  %v6276_v11 = vpop.f32.mrb[103].mxu0  ;;  %6483 = vmatprep.subr.bf16.mxu0 %v6961_v16 }
0x121f   :  { %6296 = vmatprep.mubr.bf16.mxu1 %v3901_v51 }
0x1220   :  { %v3897_v41 = vpop.f32.mrb[104].mxu0 }
0x1221   :  { %v3902_v7 = vpack.c.bf16 %v3897_v41, %v3897_v41  ;;  %v6279_v58 = vpop.f32.mrb[105].mxu0 }
0x1223   :  { %6297 = vmatmul.mubr.bf16.vlgmr.msra.gmra.mrb[104].mxu1 %v3902_v7 }
0x1224   :  { %6479 = vmatpush3.bf16.xpose.msra.mxu1 %v6478_v49  ;;  %6326 = vmatprep.mubr.msk.f32.mxu1 %vm6962_vm1, %v6963_v17 }
0x1225   :  { %6324 = vmatprep.subr.mxu1 %v6963_v17 }
0x122c   :  { %6325 = vmatpush3.xpose.msra.mxu1 %v3387_v52 }
0x122f   :  { %6327 = vmatmul.mubr.f32.vlgmr.msra.gmra.mrb[102].mxu1 %v3275_v38 }
0x1230   :  { %6329 = vmatprep.mubr.msk.f32.mxu1 %vm6962_vm1, %v6963_v17 }
0x1233   :  { %6330 = vmatmul.mubr.f32.gmra.mrb[108].mxu1 %v3279_v48 }
0x1234   :  { %6332 = vmatprep.mubr.msk.f32.mxu1 %vm6962_vm1, %v6963_v17 }
0x1237   :  { %6333 = vmatmul.mubr.f32.gmra.mrb[110].mxu1 %v3285_v59 }
0x12ea   :  { %v6318_v49 = vpop.f32.mrb[108].mxu0 }
0x12eb   :  { %v4081_v53 = vpop.f32.mrb[109].mxu0 }
0x12ec   :  { %v6319_v44 = vpop.f32.mrb[110].mxu0 }
0x12ed   :  { %v4084_v57 = vpop.f32.mrb[111].mxu0  ;;  %v6735_v44 = vld [vmem:[%s8603_s6 + $0x190] sm:$0xff]  }
0x12f6   :  { %v6298_v29 = vpop.f32.mrb[104].mxu1 }
0x12f7   :  { %v8312_v22 = vadd.f32 %v6318_v49, %v6298_v29  ;;  %v3985_v46 = vpop.f32.mrb[105].mxu1  ;;  %v6733_v49 = vld [vmem:[%s8603_s6 + $0x180] sm:$0xff]  }
0x12f8   :  { %v8314_v2 = vadd.f32 %v4081_v53, %v3985_v46  ;;  %v6299_v35 = vpop.f32.mrb[106].mxu1  ;;  %v6734_v53 = vld [vmem:[%s8603_s6 + $0x188] sm:$0xff]   ;;  %6350 = vmatprep.subr.bf16.mxu1 %v6733_v49  ;;  %v6737_v29 = vld [vmem:[%s8603_s6 + $0x1a0] sm:$0xff]  }
0x12f9   :  { %v3988_v5 = vpop.f32.mrb[107].mxu1  ;;  %6351 = vmatpush3.bf16.msra.mxu1 %v6733_v49  ;;  %v6738_v46 = vld [vmem:[%s8603_s6 + $0x1a8] sm:$0xff]  }
0x12fa   :  { %v8316_v36 = vadd.f32 %v4084_v57, %v3988_v5  ;;  %6352 = vmatprep.subr.bf16.mxu1 %v6734_v53  ;;  %v6736_v57 = vld [vmem:[%s8603_s6 + $0x198] sm:$0xff]  }
0x12fd   :  { %6353 = vmatpush3.bf16.msra.mxu1 %v6734_v53 }
0x12fe   :  { %6354 = vmatprep.subr.bf16.mxu1 %v6735_v44 }
0x1301   :  { %6355 = vmatpush3.bf16.msra.mxu1 %v6735_v44 }
0x1302   :  { %v4161_v42 = vpop.f32.mrb[102].mxu1  ;;  %6356 = vmatprep.subr.bf16.mxu1 %v6736_v57 }
0x1303   :  { %v4162_v61 = vadd.f32 %v8186_v54, %v4161_v42  ;;  %v6328_v37 = vpop.f32.mrb[103].mxu1 }
0x1305   :  { %v4175_v9 = vsel %vm1151_vm2, %v4162_v61, -inf  ;;  %6357 = vmatpush3.bf16.msra.mxu1 %v6736_v57 }
0x1306   :  { %4176 = vmax.xlane.f32.xlu0 %v4175_v9  ;;  %v4166_v47 = vpop.f32.mrb[108].mxu1  ;;  %6358 = vmatprep.subr.bf16.mxu1 %v6737_v29 }
0x1307   :  { %v4167_v55 = vadd.f32 %v8193_v62, %v4166_v47  ;;  %v6331_v10 = vpop.f32.mrb[109].mxu1  ;;  %v8622_v47 = vpack.c.bf16 %v8153_v26, %v8150_v23  ;;  %v3389_v23 = vadd.f32 %v8161_v34, %v8138_v6  ;;  %v6739_v6 = vld [vmem:[%s8603_s6 + $0x1b0] sm:$0xff]  }
0x1309   :  { %v4178_v19 = vsel %vm1151_vm2, %v4167_v55, -inf  ;;  %6359 = vmatpush3.bf16.msra.mxu1 %v6737_v29 }
0x130a   :  { %4179 = vmax.xlane.f32.xlu1 %v4178_v19  ;;  %v4171_v40 = vpop.f32.mrb[110].mxu1  ;;  %6360 = vmatprep.subr.bf16.mxu1 %v6738_v46  ;;  %v2898_v19 = vrot.slane %v8070_v32, %v7456_v56 }
0x130b   :  { %v4172_v28 = vadd.f32 %v8200_v39, %v4171_v40  ;;  %v6334_v63 = vpop.f32.mrb[111].mxu1 }
0x130c   :  { %v3277_v26 = vadd.f32 %v8097_v60, %v2898_v19  ;;  %v3281_v32 = vadd.f32 %v8103_v12, %v2898_v19  ;;  %v3287_v60 = vadd.f32 %v8119_v13, %v2898_v19  ;;  %v6740_v12 = vld [vmem:[%s8603_s6 + $0x1b8] sm:$0xff]  }
0x130d   :  { %v4181_v50 = vsel %vm1151_vm2, %v4172_v28, -inf  ;;  %6361 = vmatpush3.bf16.msra.mxu1 %v6738_v46 }
0x130e   :  { %4182 = vmax.xlane.f32.xlu0 %v4181_v50  ;;  %6362 = vmatprep.subr.bf16.mxu1 %v6739_v6 }
0x1311   :  { %6363 = vmatpush3.bf16.msra.mxu1 %v6739_v6 }
0x1312   :  { %6364 = vmatprep.subr.bf16.mxu1 %v6740_v12 }
0x1315   :  { %6365 = vmatpush3.bf16.msra.mxu1 %v6740_v12  ;;  %v6742_v12 = vld [vmem:[%s8603_s6 + $0x1c8] sm:$0xff]  }
0x1393   :  { %v4177_v1 = vpop.xlane.xlu0 %4176 }
0x1394   :  { %v4184_v4 = vsub.f32 %v4162_v61, %v4177_v1 }
0x1396   :  { %v4187_v14 = vmul.f32 1.442695, %v4184_v4 }
0x1397   :  { %v4180_v3 = vpop.xlane.xlu1 %4179 }
0x1398   :  { %6883 = vpow2.f32 %v4187_v14  ;;  %v4185_v30 = vsub.f32 %v4167_v55, %v4180_v3 }
0x139a   :  { %v4189_v51 = vmul.f32 1.442695, %v4185_v30 }
0x139b   :  { %v4183_v11 = vpop.xlane.xlu0 %4182 }
0x139c   :  { %6885 = vpow2.f32 %v4189_v51  ;;  %v4186_v41 = vsub.f32 %v4172_v28, %v4183_v11  ;;  %v8623_v28 = vpack.c.bf16 %v8173_v21, %v8169_v15 }
0x139e   :  { %v4191_v7 = vmul.f32 1.442695, %v4186_v41 }
0x13a0   :  { %6887 = vpow2.f32 %v4191_v7 }
0x13a2   :  { %v6884_v58 = vpop.eup %6883 }
0x13a3   :  { %v4193_v25 = vsel %vm1151_vm2, %v6884_v58, 0.0 }
0x13a4   :  { %4194 = vadd.xlane.f32.xlu1 %v4193_v25 }
0x13a6   :  { %v6886_v52 = vpop.eup %6885 }
0x13a7   :  { %v4196_v38 = vsel %vm1151_vm2, %v6886_v52, 0.0 }
0x13a8   :  { %4197 = vadd.xlane.f32.xlu0 %v4196_v38 }
0x13aa   :  { %v6888_v48 = vpop.eup %6887 }
0x13ab   :  { %v4199_v59 = vsel %vm1151_vm2, %v6888_v48, 0.0 }
0x13ac   :  { %4200 = vadd.xlane.f32.xlu1 %v4199_v59 }
0x1431   :  { %v4195_v35 = vpop.xlane.xlu1 %4194 }
0x1432   :  { %6889 = vrcp.f32 %v4195_v35 }
0x1435   :  { %v4198_v5 = vpop.xlane.xlu0 %4197 }
0x1436   :  { %6891 = vrcp.f32 %v4198_v5 }
0x1439   :  { %v4201_v42 = vpop.xlane.xlu1 %4200 }
0x143a   :  { %6893 = vrcp.f32 %v4201_v42 }
0x143c   :  { %v6890_v61 = vpop.eup %6889 }
0x143d   :  { %v4205_v37 = vmul.f32 %v6890_v61, %v6884_v58 }
0x143f   :  { %6342 = vmatmul.mubr.msk.f32.vlgmr.msra.gmra.mrb[106].mxu0 %vm1151_vm2, %v4205_v37  ;;  %v6741_v37 = vld [vmem:[%s8603_s6 + $0x1c0] sm:$0xff]  }
0x1440   :  { %v6892_v9 = vpop.eup %6891  ;;  %6485 = vmatpush3.bf16.xpose.msra.mxu0 %v8622_v47  ;;  %6344 = vmatprep.mubr.msk.f32.mxu0 %vm6962_vm1, %v6963_v17 }
0x1441   :  { %v4206_v55 = vmul.f32 %v6892_v9, %v6886_v52  ;;  %6374 = vmatprep.subr.mxu0 %v6963_v17 }
0x1443   :  { %6345 = vmatmul.mubr.msk.f32.gmra.mrb[112].mxu0 %vm1151_vm2, %v4206_v55 }
0x1444   :  { %v6894_v10 = vpop.eup %6893  ;;  %6347 = vmatprep.mubr.msk.f32.mxu0 %vm6962_vm1, %v6963_v17 }
0x1445   :  { %v4207_v40 = vmul.f32 %v6894_v10, %v6888_v48 }
0x1447   :  { %6348 = vmatmul.mubr.msk.f32.gmra.mrb[114].mxu0 %vm1151_vm2, %v4207_v40 }
0x1448   :  { %6375 = vmatpush3.xpose.msra.mxu0 %v3389_v23  ;;  %6376 = vmatprep.mubr.msk.f32.mxu0 %vm6962_vm1, %v6963_v17 }
0x1449   :  { %6486 = vmatprep.subr.bf16.mxu0 %v6961_v16 }
0x144b   :  { %6377 = vmatmul.mubr.f32.vlgmr.msra.gmra.mrb[116].mxu0 %v3277_v26 }
0x144c   :  { %6488 = vmatpush3.bf16.msra.mxu0 %v8623_v28  ;;  %6379 = vmatprep.mubr.msk.f32.mxu0 %vm6962_vm1, %v6963_v17 }
0x144d   :  { %6389 = vmatprep.subr.mxu0 %v6963_v17 }
0x144f   :  { %6380 = vmatmul.mubr.f32.gmra.mrb[118].mxu0 %v3281_v32 }
0x1450   :  { %6390 = vmatpush3.msra.mxu0 %v8181_v0  ;;  %6382 = vmatprep.mubr.msk.f32.mxu0 %vm6962_vm1, %v6963_v17 }
0x1451   :  { %6400 = vmatprep.subr.bf16.mxu0 %v6741_v37 }
0x1453   :  { %6383 = vmatmul.mubr.f32.gmra.mrb[120].mxu0 %v3287_v60 }
0x1454   :  { %6391 = vmatprep.mubr.msk.f32.mxu0 %vm6962_vm1, %v6963_v17 }
0x1512   :  { %v4283_v34 = vpop.f32.mrb[106].mxu0 }
0x1513   :  { %v6343_v15 = vpop.f32.mrb[107].mxu0 }
0x1516   :  { %v4288_v21 = vpop.f32.mrb[112].mxu0 }
0x1517   :  { %v4297_v13 = vpack.c.bf16 %v4288_v21, %v4283_v34  ;;  %v6346_v0 = vpop.f32.mrb[113].mxu0  ;;  %v6744_v21 = vld [vmem:[%s8603_s6 + $0x1d8] sm:$0xff]  }
0x1518   :  { %v6746_v0 = vld [vmem:[%s8603_s6 + $0x1e8] sm:$0xff]  }
0x1519   :  { %6366 = vmatprep.mubr.bf16.mxu1 %v4297_v13  ;;  %v6745_v13 = vld [vmem:[%s8603_s6 + $0x1e0] sm:$0xff]  }
0x151a   :  { %v4293_v63 = vpop.f32.mrb[114].mxu0 }
0x151b   :  { %v4298_v50 = vpack.c.bf16 %v4293_v63, %v4293_v63  ;;  %v6349_v1 = vpop.f32.mrb[115].mxu0  ;;  %v6747_v63 = vld [vmem:[%s8603_s6 + $0x1f0] sm:$0xff]  }
0x151d   :  { %6367 = vmatmul.mubr.bf16.vlgmr.msra.gmra.mrb[112].mxu1 %v4298_v50  ;;  %v6748_v50 = vld [vmem:[%s8603_s6 + $0x1f8] sm:$0xff]  }
0x151e   :  { %v4464_v4 = vpop.f32.mrb[116].mxu0  ;;  %4855 = vmatprep.mubr.bf16.mxu1 %v8619_v24 }
0x151f   :  { %v4465_v14 = vadd.f32 %v8186_v54, %v4464_v4  ;;  %v6378_v3 = vpop.f32.mrb[117].mxu0 }
0x1521   :  { %v4478_v30 = vsel %vm1151_vm2, %v4465_v14, -inf }
0x1522   :  { %4479 = vmax.xlane.f32.xlu0 %v4478_v30  ;;  %v4469_v51 = vpop.f32.mrb[118].mxu0 }
0x1523   :  { %v4470_v11 = vadd.f32 %v8193_v62, %v4469_v51  ;;  %v6381_v41 = vpop.f32.mrb[119].mxu0 }
0x1525   :  { %v4481_v7 = vsel %vm1151_vm2, %v4470_v11, -inf }
0x1526   :  { %4482 = vmax.xlane.f32.xlu1 %v4481_v7  ;;  %v4474_v58 = vpop.f32.mrb[120].mxu0 }
0x1527   :  { %v4475_v25 = vadd.f32 %v8200_v39, %v4474_v58  ;;  %v6384_v52 = vpop.f32.mrb[121].mxu0 }
0x1529   :  { %v4484_v38 = vsel %vm1151_vm2, %v4475_v25, -inf }
0x152a   :  { %4485 = vmax.xlane.f32.xlu0 %v4484_v38 }
0x15af   :  { %v4480_v48 = vpop.xlane.xlu0 %4479 }
0x15b0   :  { %v4487_v54 = vsub.f32 %v4465_v14, %v4480_v48 }
0x15b2   :  { %v4490_v59 = vmul.f32 1.442695, %v4487_v54 }
0x15b3   :  { %v4483_v49 = vpop.xlane.xlu1 %4482 }
0x15b4   :  { %6895 = vpow2.f32 %v4490_v59  ;;  %v4488_v53 = vsub.f32 %v4470_v11, %v4483_v49 }
0x15b6   :  { %v4492_v44 = vmul.f32 1.442695, %v4488_v53 }
0x15b7   :  { %v4486_v57 = vpop.xlane.xlu0 %4485 }
0x15b8   :  { %6897 = vpow2.f32 %v4492_v44  ;;  %v4489_v62 = vsub.f32 %v4475_v25, %v4486_v57 }
0x15ba   :  { %v4494_v29 = vmul.f32 1.442695, %v4489_v62 }
0x15bc   :  { %6899 = vpow2.f32 %v4494_v29 }
0x15be   :  { %v6896_v46 = vpop.eup %6895 }
0x15bf   :  { %v4496_v35 = vsel %vm1151_vm2, %v6896_v46, 0.0 }
0x15c0   :  { %4497 = vadd.xlane.f32.xlu1 %v4496_v35 }
0x15c2   :  { %v6898_v39 = vpop.eup %6897 }
0x15c3   :  { %v4499_v5 = vsel %vm1151_vm2, %v6898_v39, 0.0 }
0x15c4   :  { %4500 = vadd.xlane.f32.xlu0 %v4499_v5 }
0x15c6   :  { %v6900_v42 = vpop.eup %6899 }
0x15c7   :  { %v4502_v61 = vsel %vm1151_vm2, %v6900_v42, 0.0 }
0x15c8   :  { %4503 = vadd.xlane.f32.xlu1 %v4502_v61 }
0x15f0   :  { %v6368_v9 = vpop.f32.mrb[112].mxu1 }
0x15f1   :  { %v4397_v47 = vadd.f32 %v6368_v9, %v8312_v22  ;;  %v4381_v55 = vpop.f32.mrb[113].mxu1 }
0x15f2   :  { %v4395_v10 = vadd.f32 %v4381_v55, %v8314_v2  ;;  %v6369_v19 = vpop.f32.mrb[114].mxu1 }
0x15f3   :  { %v4384_v40 = vpop.f32.mrb[115].mxu1 }
0x15f4   :  { %v4396_v23 = vadd.f32 %v4384_v40, %v8316_v36  ;;  %v6743_v36 = vld [vmem:[%s8603_s6 + $0x1d0] sm:$0xff]  }
0x164d   :  { %v4498_v26 = vpop.xlane.xlu1 %4497 }
0x164e   :  { %6901 = vrcp.f32 %v4498_v26  ;;  %v6751_v26 = vld [vmem:[%s8604_s7 + $0x44] ss:$8 sps:$4 sm:$0xff]  }
0x164f   :  { %4823 = vmatprep.subr.bf16.mxu1 %v6751_v26 }
0x1651   :  { %v4501_v28 = vpop.xlane.xlu0 %4500 }
0x1652   :  { %6903 = vrcp.f32 %v4501_v28  ;;  %v6749_v28 = vld [vmem:[%s8604_s7 + $0x40] ss:$8 sps:$4 sm:$0xff]  }
0x1653   :  { %4824 = vmatpush1.bf16.msra.mxu1 %v6749_v28 }
0x1655   :  { %v4504_v32 = vpop.xlane.xlu1 %4503 }
0x1656   :  { %6905 = vrcp.f32 %v4504_v32  ;;  %v6754_v32 = vld [vmem:[%s8604_s7 + $0x54] ss:$8 sps:$4 sm:$0xff]  }
0x1657   :  { %4825 = vmatprep.subr.bf16.mxu1 %v6754_v32 }
0x1658   :  { %v6902_v60 = vpop.eup %6901 }
0x1659   :  { %v4508_v6 = vmul.f32 %v6902_v60, %v6896_v46  ;;  %v6752_v60 = vld [vmem:[%s8604_s7 + $0x50] ss:$8 sps:$4 sm:$0xff]  }
0x165a   :  { %4826 = vmatpush1.bf16.msra.mxu1 %v6752_v60 }
0x165b   :  { %6392 = vmatmul.mubr.msk.f32.vlgmr.msra.gmra.mrb[122].mxu0 %vm1151_vm2, %v4508_v6  ;;  %v6757_v6 = vld [vmem:[%s8604_s7 + $0x64] ss:$8 sps:$4 sm:$0xff]  }
0x165c   :  { %v6904_v22 = vpop.eup %6903  ;;  %6394 = vmatprep.mubr.msk.f32.mxu0 %vm6962_vm1, %v6963_v17  ;;  %6401 = vmatpush3.bf16.msra.mxu0 %v6741_v37 }
0x165d   :  { %v4509_v2 = vmul.f32 %v6904_v22, %v6898_v39  ;;  %6402 = vmatprep.subr.bf16.mxu0 %v6742_v12  ;;  %4827 = vmatprep.subr.bf16.mxu1 %v6757_v6  ;;  %v6758_v22 = vld [vmem:[%s8604_s7 + $0x70] ss:$8 sps:$4 sm:$0xff]  }
0x165f   :  { %6395 = vmatmul.mubr.msk.f32.gmra.mrb[124].mxu0 %vm1151_vm2, %v4509_v2  ;;  %v6760_v2 = vld [vmem:[%s8604_s7 + $0x74] ss:$8 sps:$4 sm:$0xff]  }
0x1660   :  { %v6906_v34 = vpop.eup %6905  ;;  %6397 = vmatprep.mubr.msk.f32.mxu0 %vm6962_vm1, %v6963_v17  ;;  %6403 = vmatpush3.bf16.msra.mxu0 %v6742_v12  ;;  %v6755_v12 = vld [vmem:[%s8604_s7 + $0x60] ss:$8 sps:$4 sm:$0xff]  }
0x1661   :  { %v4510_v15 = vmul.f32 %v6906_v34, %v6900_v42  ;;  %6404 = vmatprep.subr.bf16.mxu0 %v6743_v36  ;;  %4828 = vmatpush1.bf16.msra.mxu1 %v6755_v12 }
0x1662   :  { %4829 = vmatprep.subr.bf16.mxu1 %v6760_v2 }
0x1663   :  { %6398 = vmatmul.mubr.msk.f32.gmra.mrb[126].mxu0 %vm1151_vm2, %v4510_v15 }
0x1664   :  { %6405 = vmatpush3.bf16.msra.mxu0 %v6743_v36 }
0x1665   :  { %6406 = vmatprep.subr.bf16.mxu0 %v6744_v21  ;;  %4830 = vmatpush1.bf16.msra.mxu1 %v6758_v22 }
0x1668   :  { %6407 = vmatpush3.bf16.msra.mxu0 %v6744_v21 }
0x1669   :  { %6408 = vmatprep.subr.bf16.mxu0 %v6745_v13 }
0x166c   :  { %6409 = vmatpush3.bf16.msra.mxu0 %v6745_v13 }
0x166d   :  { %6410 = vmatprep.subr.bf16.mxu0 %v6746_v0 }
0x1670   :  { %6411 = vmatpush3.bf16.msra.mxu0 %v6746_v0 }
0x1671   :  { %6412 = vmatprep.subr.bf16.mxu0 %v6747_v63 }
0x1674   :  { %6413 = vmatpush3.bf16.msra.mxu0 %v6747_v63 }
0x1675   :  { %6414 = vmatprep.subr.bf16.mxu0 %v6748_v50 }
0x1678   :  { %6415 = vmatpush3.bf16.msra.mxu0 %v6748_v50 }
0x1679   :  { %6489 = vmatprep.subr.bf16.mxu0 %v6961_v16  ;;  %v8433_v16 = vld [vmem:[%s8607_s10 + $0x8] sm:$0x3f] }
0x167a   :  { %v4707_v52 = vrot.slane %v8433_v16, %v7453_v45 }
0x172e   :  { %v4586_v1 = vpop.f32.mrb[122].mxu0 }
0x172f   :  { %v6393_v4 = vpop.f32.mrb[123].mxu0 }
0x1730   :  { %v4753_v4 = vrot.slane %v8433_v16, %v7456_v56 }
0x1732   :  { %v4591_v14 = vpop.f32.mrb[124].mxu0 }
0x1733   :  { %v4600_v3 = vpack.c.bf16 %v4591_v14, %v4586_v1  ;;  %v6396_v30 = vpop.f32.mrb[125].mxu0 }
0x1735   :  { %6416 = vmatprep.mubr.bf16.mxu0 %v4600_v3 }
0x1736   :  { %v4596_v51 = vpop.f32.mrb[126].mxu0 }
0x1737   :  { %v4601_v11 = vpack.c.bf16 %v4596_v51, %v4596_v51  ;;  %v6399_v41 = vpop.f32.mrb[127].mxu0 }
0x1738   :  { %v4760_v41 = vrot.slane %v8433_v16, %v7349_v18  ;;  %v6762_v18 = vld [vmem:[%s8606_s9 + $0x80] sm:$0xff]  }
0x1739   :  { %6417 = vmatmul.mubr.bf16.vlgmr.msra.gmra.mrb[128].mxu0 %v4601_v11 }
0x173a   :  { %6426 = vmatprep.mubr.msk.f32.mxu0 %vm6962_vm1, %v6963_v17 }
0x180c   :  { %v6418_v7 = vpop.f32.mrb[128].mxu0 }
0x180d   :  { %v4700_v58 = vadd.f32 %v6418_v7, %v4397_v47  ;;  %v4684_v25 = vpop.f32.mrb[129].mxu0 }
0x180e   :  { %v4698_v38 = vadd.f32 %v4684_v25, %v4395_v10  ;;  %v6419_v48 = vpop.f32.mrb[130].mxu0 }
0x180f   :  { %v4687_v54 = vpop.f32.mrb[131].mxu0  ;;  %v4703_v59 = vadd.f32 %v4700_v58, %v7849_v43 }
0x1810   :  { %v4701_v49 = vadd.f32 %v4698_v38, %v7839_v8  ;;  %v4699_v53 = vadd.f32 %v4687_v54, %v4396_v23 }
0x1811   :  { %v8442_v62 = vadd.f32 %v4707_v52, %v4703_v59 }
0x1812   :  { %v8439_v44 = vadd.f32 %v4707_v52, %v4701_v49  ;;  %v4702_v57 = vadd.f32 %v4699_v53, %v7842_v33  ;;  %v6761_v49 = vld [vmem:[%s8606_s9 + $0xc0] sm:$0xff]   ;;  %v6763_v53 = vld [vmem:[%s8606_s9 + $0xc8] sm:$0xff]  }
0x1813   :  { %v4717_v8 = vsel %vm400_vm0, %v8442_v62, 0.0  ;;  %5983 = vmatprep.subr.bf16.mxu1 %v6761_v49 }
0x1814   :  { %v8444_v29 = vadd.f32 %v4707_v52, %v4702_v57  ;;  %v4711_v46 = vsel %vm400_vm0, %v8439_v44, 0.0  ;;  %v6765_v57 = vld [vmem:[%s8606_s9 + $0xd0] sm:$0xff]  }
0x1815   :  { %4712 = vadd.xlane.f32.xlu0 %v4711_v46  ;;  %v6766_v46 = vld [vmem:[%s8606_s9 + $0x90] sm:$0xff]  }
0x1816   :  { %v4714_v45 = vsel %vm400_vm0, %v8444_v29, 0.0 }
0x1817   :  { %4715 = vadd.xlane.f32.xlu1 %v4714_v45  ;;  %v6767_v45 = vld [vmem:[%s8606_s9 + $0xd8] sm:$0xff]  }
0x1819   :  { %4718 = vadd.xlane.f32.xlu0 %v4717_v8  ;;  %v6768_v8 = vld [vmem:[%s8606_s9 + $0x98] sm:$0xff]  }
0x18a2   :  { %v4713_v43 = vpop.xlane.xlu0 %4712 }
0x18a3   :  { %v4720_v35 = vmul.f32 0.015625, %v4713_v43  ;;  %v6769_v43 = vld [vmem:[%s8606_s9 + $0xe0] sm:$0xff]  }
0x18a4   :  { %v4716_v39 = vpop.xlane.xlu1 %4715 }
0x18a5   :  { %v4723_v33 = vsub.f32 %v8439_v44, %v4720_v35  ;;  %v4721_v5 = vmul.f32 0.015625, %v4716_v39  ;;  %v6770_v35 = vld [vmem:[%s8606_s9 + $0xa0] sm:$0xff]   ;;  %v6771_v39 = vld [vmem:[%s8606_s9 + $0xe8] sm:$0xff]  }
0x18a6   :  { %v4719_v42 = vpop.xlane.xlu0 %4718 }
0x18a7   :  { %v4724_v61 = vsub.f32 %v8444_v29, %v4721_v5  ;;  %v4722_v37 = vmul.f32 0.015625, %v4719_v42  ;;  %v4726_v9 = vmul.f32 %v4723_v33, %v4723_v33  ;;  %v6773_v5 = vld [vmem:[%s8606_s9 + $0xf0] sm:$0xff]  }
0x18a8   :  { %v6774_v42 = vld [vmem:[%s8606_s9 + $0xb0] sm:$0xff]  }
0x18a9   :  { %v4725_v47 = vsub.f32 %v8442_v62, %v4722_v37  ;;  %v4729_v55 = vsel %vm400_vm0, %v4726_v9, 0.0  ;;  %v4727_v10 = vmul.f32 %v4724_v61, %v4724_v61  ;;  %v6776_v37 = vld [vmem:[%s8606_s9 + $0xb8] sm:$0xff]   ;;  %v5580_v9 = vld [vmem:[%s8605_s8 + $0x2] sm:$0x3] }
0x18aa   :  { %4730 = vadd.xlane.f32.xlu1 %v4729_v55  ;;  %v4774_v55 = vrot.slane %v5580_v9, %v7216_v31 }
0x18ab   :  { %v4732_v19 = vsel %vm400_vm0, %v4727_v10, 0.0  ;;  %v4728_v40 = vmul.f32 %v4725_v47, %v4725_v47 }
0x18ac   :  { %4733 = vadd.xlane.f32.xlu0 %v4732_v19 }
0x18ad   :  { %v4735_v23 = vsel %vm400_vm0, %v4728_v40, 0.0 }
0x18ae   :  { %4736 = vadd.xlane.f32.xlu1 %v4735_v23 }
0x1937   :  { %v4731_v36 = vpop.xlane.xlu1 %4730 }
0x1938   :  { %v4738_v34 = vmul.f32 0.015625, %v4731_v36 }
0x1939   :  { %v4734_v15 = vpop.xlane.xlu0 %4733 }
0x193a   :  { %v4741_v21 = vadd.f32 1e-12, %v4738_v34  ;;  %v4739_v13 = vmul.f32 0.015625, %v4734_v15 }
0x193b   :  { %v4737_v0 = vpop.xlane.xlu1 %4736 }
0x193c   :  { %6907 = vrsqrt.f32 %v4741_v21  ;;  %v4742_v63 = vadd.f32 1e-12, %v4739_v13  ;;  %v4740_v50 = vmul.f32 0.015625, %v4737_v0 }
0x193e   :  { %6909 = vrsqrt.f32 %v4742_v63  ;;  %v4743_v1 = vadd.f32 1e-12, %v4740_v50 }
0x1940   :  { %6911 = vrsqrt.f32 %v4743_v1 }
0x1946   :  { %v6908_v14 = vpop.eup %6907 }
0x1947   :  { %v4747_v3 = vmul.f32 %v6908_v14, %v4723_v33  ;;  %v6772_v33 = vld [vmem:[%s8606_s9 + $0xa8] sm:$0xff]  }
0x1948   :  { %v6910_v30 = vpop.eup %6909 }
0x1949   :  { %v4754_v51 = vmul.f32 %v4753_v4, %v4747_v3  ;;  %v4748_v11 = vmul.f32 %v6910_v30, %v4724_v61  ;;  %v6775_v61 = vld [vmem:[%s8606_s9 + $0xf8] sm:$0xff]  }
0x194a   :  { %v6912_v7 = vpop.eup %6911 }
0x194b   :  { %v4755_v58 = vmul.f32 %v4753_v4, %v4748_v11  ;;  %v4749_v25 = vmul.f32 %v6912_v7, %v4725_v47  ;;  %v4761_v52 = vadd.f32 %v4760_v41, %v4754_v51  ;;  %v4770_v47 = vrot.slane %v5580_v9, %v7209_v27 }
0x194d   :  { %v4762_v38 = vadd.f32 %v4760_v41, %v4755_v58  ;;  %v4756_v54 = vmul.f32 %v4753_v4, %v4749_v25 }
0x194f   :  { %v4764_v48 = vpack.c.bf16 %v4762_v38, %v4761_v52  ;;  %v4763_v56 = vadd.f32 %v4760_v41, %v4756_v54 }
0x1951   :  { %5726 = vmatmul.mubr.msk.bf16.vlgmr.msra.gmra.mrb[116].mxu1 %vm400_vm0, %v4764_v48  ;;  %v4765_v59 = vpack.c.bf16 %v4763_v56, %v4763_v56 }
0x1952   :  { %4865 = vmatprep.mubr.bf16.mxu1 %v8619_v24  ;;  %5984 = vmatpush3.bf16.msra.mxu1 %v6762_v18  ;;  %v6764_v24 = vld [vmem:[%s8606_s9 + $0x88] sm:$0xff]  }
0x1953   :  { %5985 = vmatprep.subr.bf16.mxu1 %v6763_v53 }
0x1956   :  { %5986 = vmatpush3.bf16.msra.mxu1 %v6764_v24 }
0x1957   :  { %5987 = vmatprep.subr.bf16.mxu1 %v6765_v57 }
0x1959   :  { %5727 = vmatmul.mubr.msk.bf16.gmra.mrb[120].mxu1 %vm400_vm0, %v4765_v59 }
0x195a   :  { %5988 = vmatpush3.bf16.msra.mxu1 %v6766_v46 }
0x195b   :  { %5989 = vmatprep.subr.bf16.mxu1 %v6767_v45 }
0x195e   :  { %5990 = vmatpush3.bf16.msra.mxu1 %v6768_v8 }
0x195f   :  { %5991 = vmatprep.subr.bf16.mxu1 %v6769_v43 }
0x1962   :  { %5992 = vmatpush3.bf16.msra.mxu1 %v6770_v35 }
0x1963   :  { %5993 = vmatprep.subr.bf16.mxu1 %v6771_v39 }
0x1966   :  { %5994 = vmatpush3.bf16.msra.mxu1 %v6772_v33 }
0x1967   :  { %5995 = vmatprep.subr.bf16.mxu1 %v6773_v5 }
0x196a   :  { %5996 = vmatpush3.bf16.msra.mxu1 %v6774_v42 }
0x196b   :  { %5997 = vmatprep.subr.bf16.mxu1 %v6775_v61 }
0x196e   :  { %5998 = vmatpush3.bf16.msra.mxu1 %v6776_v37 }
0x1a24   :  { %v4857_v10 = vpop.f32.mrb[116].mxu1 }
0x1a25   :  { %v4858_v19 = vadd.f32 %v4857_v10, %v4770_v47  ;;  %v4859_v40 = vpop.f32.mrb[117].mxu1 }
0x1a26   :  { %v4860_v23 = vadd.f32 %v4859_v40, %v4774_v55  ;;  %v4861_v26 = vpop.f32.mrb[118].mxu1 }
0x1a27   :  { %v4880_v28 = vmul.f32 0.044715, %v4858_v19  ;;  %v4862_v32 = vadd.f32 %v4861_v26, %v4770_v47  ;;  %v4863_v60 = vpop.f32.mrb[119].mxu1  ;;  %v4874_v42 = vmul.f32 0.5, %v4858_v19 }
0x1a28   :  { %v4881_v6 = vmul.f32 0.044715, %v4860_v23  ;;  %v4864_v12 = vadd.f32 %v4863_v60, %v4774_v55  ;;  %v4875_v9 = vmul.f32 0.5, %v4860_v23 }
0x1a29   :  { %v4886_v22 = vmul.f32 %v4880_v28, %v4858_v19  ;;  %v4882_v2 = vmul.f32 0.044715, %v4862_v32  ;;  %v4876_v61 = vmul.f32 0.5, %v4862_v32 }
0x1a2a   :  { %v4887_v36 = vmul.f32 %v4881_v6, %v4860_v23  ;;  %v4883_v34 = vmul.f32 0.044715, %v4864_v12 }
0x1a2b   :  { %v4892_v15 = vmul.f32 %v4886_v22, %v4858_v19  ;;  %v4888_v21 = vmul.f32 %v4882_v2, %v4862_v32 }
0x1a2c   :  { %v4893_v13 = vmul.f32 %v4887_v36, %v4860_v23  ;;  %v4889_v0 = vmul.f32 %v4883_v34, %v4864_v12  ;;  %v4867_v63 = vpop.f32.mrb[120].mxu1 }
0x1a2d   :  { %v4898_v50 = vadd.f32 %v4892_v15, %v4858_v19  ;;  %v4894_v1 = vmul.f32 %v4888_v21, %v4862_v32  ;;  %v4868_v4 = vadd.f32 %v4867_v63, %v4770_v47  ;;  %v4869_v14 = vpop.f32.mrb[121].mxu1  ;;  %v4877_v47 = vmul.f32 0.5, %v4864_v12 }
0x1a2e   :  { %v4895_v3 = vmul.f32 %v4889_v0, %v4864_v12  ;;  %v4870_v30 = vadd.f32 %v4869_v14, %v4774_v55  ;;  %v4871_v51 = vpop.f32.mrb[122].mxu1  ;;  %v4899_v11 = vadd.f32 %v4893_v13, %v4860_v23 }
0x1a2f   :  { %v4904_v41 = vmul.f32 0.7978846, %v4898_v50  ;;  %v4900_v7 = vadd.f32 %v4894_v1, %v4862_v32  ;;  %v4884_v58 = vmul.f32 0.044715, %v4868_v4  ;;  %v4872_v25 = vpop.f32.mrb[123].mxu1  ;;  %v4878_v21 = vmul.f32 0.5, %v4868_v4 }
0x1a30   :  { %v4885_v52 = vmul.f32 0.044715, %v4870_v30  ;;  %v4901_v38 = vadd.f32 %v4895_v3, %v4864_v12  ;;  %v4905_v48 = vmul.f32 0.7978846, %v4899_v11  ;;  %v4879_v34 = vmul.f32 0.5, %v4870_v30 }
0x1a31   :  { %6913 = vtanh.f32 %v4904_v41  ;;  %v4906_v54 = vmul.f32 0.7978846, %v4900_v7  ;;  %v4890_v56 = vmul.f32 %v4884_v58, %v4868_v4  ;;  %v5082_v1 = vrot.slane %v8433_v16, %v7357_v20 }
0x1a32   :  { %v4891_v59 = vmul.f32 %v4885_v52, %v4870_v30  ;;  %v4907_v49 = vmul.f32 0.7978846, %v4901_v38  ;;  %6915 = vtanh.f32 %v4905_v48 }
0x1a33   :  { %6917 = vtanh.f32 %v4906_v54  ;;  %v4896_v18 = vmul.f32 %v4890_v56, %v4868_v4 }
0x1a34   :  { %6919 = vtanh.f32 %v4907_v49  ;;  %v4897_v53 = vmul.f32 %v4891_v59, %v4870_v30 }
0x1a35   :  { %v4902_v24 = vadd.f32 %v4896_v18, %v4868_v4 }
0x1a36   :  { %v4903_v57 = vadd.f32 %v4897_v53, %v4870_v30 }
0x1a37   :  { %v4908_v46 = vmul.f32 0.7978846, %v4902_v24 }
0x1a38   :  { %v4909_v45 = vmul.f32 0.7978846, %v4903_v57 }
0x1a39   :  { %6921 = vtanh.f32 %v4908_v46 }
0x1a3a   :  { %6923 = vtanh.f32 %v4909_v45 }
0x1a3b   :  { %v6914_v8 = vpop.eup %6913 }
0x1a3c   :  { %v6916_v43 = vpop.eup %6915  ;;  %v4916_v35 = vadd.f32 1.0, %v6914_v8 }
0x1a3d   :  { %v6918_v39 = vpop.eup %6917  ;;  %v4917_v33 = vadd.f32 1.0, %v6916_v43 }
0x1a3e   :  { %v6920_v5 = vpop.eup %6919  ;;  %v4918_v37 = vadd.f32 1.0, %v6918_v39  ;;  %v4922_v10 = vmul.f32 %v4916_v35, %v4874_v42 }
0x1a3f   :  { %v4919_v55 = vadd.f32 1.0, %v6920_v5  ;;  %v4923_v26 = vmul.f32 %v4917_v33, %v4875_v9 }
0x1a40   :  { %v4924_v40 = vmul.f32 %v4918_v37, %v4876_v61 }
0x1a41   :  { %v4925_v28 = vmul.f32 %v4919_v55, %v4877_v47 }
0x1a42   :  { %v4928_v60 = vpack.c.bf16 %v4924_v40, %v4922_v10  ;;  %v5086_v10 = vld [vmem:[%s8608_s11] sm:$0x3] }
0x1a43   :  { %v6922_v6 = vpop.eup %6921  ;;  %v4929_v22 = vpack.c.bf16 %v4925_v28, %v4923_v26  ;;  %v5129_v40 = vrot.slane %v5086_v10, %v7209_v27  ;;  %v5140_v27 = vld [vmem:[%s8609_s12] sm:$0x3] }
0x1a44   :  { %v6924_v2 = vpop.eup %6923  ;;  %v4920_v36 = vadd.f32 1.0, %v6922_v6 }
0x1a45   :  { %5060 = vmatprep.mubr.bf16.mxu1 %v4929_v22  ;;  %v4921_v15 = vadd.f32 1.0, %v6924_v2  ;;  %v5136_v2 = vrot.slane %v5086_v10, %v7216_v31  ;;  %v6778_v31 = vld [vmem:[%s8610_s13 + $0x8] sm:$0xff]  }
0x1a46   :  { %5061 = vmatmul.mubr.bf16.vlgmr.msra.gmra.mrb[124].mxu1 %v4928_v60  ;;  %v4926_v32 = vmul.f32 %v4920_v36, %v4878_v21 }
0x1a47   :  { %v4927_v19 = vmul.f32 %v4921_v15, %v4879_v34 }
0x1a48   :  { %v4930_v23 = vpack.c.bf16 %v4926_v32, %v4926_v32 }
0x1a49   :  { %v4931_v13 = vpack.c.bf16 %v4927_v19, %v4927_v19 }
0x1a4b   :  { %5068 = vmatprep.mubr.bf16.mxu1 %v4931_v13 }
0x1a4e   :  { %5069 = vmatmul.mubr.bf16.gmra.mrb[128].mxu1 %v4930_v23 }
0x1b19   :  { %v5999_v12 = vpop.f32.mrb[124].mxu1 }
0x1b1a   :  { %v6000_v0 = vpop.f32.mrb[125].mxu1 }
0x1b1b   :  { %v6001_v63 = vadd.f32 %v6000_v0, %v5999_v12  ;;  %v6002_v50 = vpop.f32.mrb[126].mxu1  ;;  %v6777_v12 = vld [vmem:[%s8610_s13] sm:$0xff]   ;;  %v6779_v0 = vld [vmem:[%s8610_s13 + $0x10] sm:$0xff]  }
0x1b1c   :  { %v6003_v14 = vpop.f32.mrb[127].mxu1 }
0x1b1d   :  { %v5076_v3 = vadd.f32 %v6001_v63, %v8439_v44  ;;  %v6004_v30 = vadd.f32 %v6003_v14, %v6002_v50  ;;  %v6780_v63 = vld [vmem:[%s8610_s13 + $0x18] sm:$0xff]   ;;  %s6936_s13 = scalar_lea.vmem %s5305_s2, 32 }
0x1b1e   :  { %p6937_p0 = scmp.ne.s32.totalorder %s5305_s2, %s6936_s13  ;;  %p6942_p2 = scmp.lt.s32.totalorder %s6936_s13, %s6936_s13 }
0x1b1f   :  { %v5077_v51 = vadd.f32 %v6004_v30, %v8444_v29  ;;  %v5083_v4 = vadd.f32 %v5082_v1, %v5076_v3  ;;  %v5745_v3 = vld [vmem:[%s8611_s14] ss:$0 sm:$0xff] }
0x1b20   :  { %p6943_p3 = por %p6942_p2, %p6941_p1 }
0x1b21   :  { %v6005_v11 = vpop.f32.mrb[128].mxu1  ;;  %v5087_v41 = vsel %vm400_vm0, %v5083_v4, 0.0  ;;  %v5084_v7 = vadd.f32 %v5082_v1, %v5077_v51 }
0x1b22   :  { %5088 = vadd.xlane.f32.xlu0 %v5087_v41  ;;  %v6006_v58 = vpop.f32.mrb[129].mxu1  ;;  %p6944_p4 = pnand %p6943_p3, %p6937_p0 }
0x1b23   :  { %v6007_v25 = vadd.f32 %v6006_v58, %v6005_v11  ;;  %v6008_v52 = vpop.f32.mrb[130].mxu1  ;;  %v5090_v38 = vsel %vm400_vm0, %v5084_v7, 0.0 }
0x1b24   :  { %5091 = vadd.xlane.f32.xlu1 %v5090_v38  ;;  %v6009_v48 = vpop.f32.mrb[131].mxu1 }
0x1b25   :  { %v5078_v20 = vadd.f32 %v6007_v25, %v8442_v62 }
0x1b27   :  { %v5085_v16 = vadd.f32 %v5082_v1, %v5078_v20 }
0x1b29   :  { %v5093_v44 = vsel %vm400_vm0, %v5085_v16, 0.0 }
0x1b2a   :  { %5094 = vadd.xlane.f32.xlu0 %v5093_v44 }
0x1baf   :  { %v5089_v29 = vpop.xlane.xlu0 %5088 }
0x1bb0   :  { %v5096_v54 = vmul.f32 0.015625, %v5089_v29 }
0x1bb1   :  { %v5092_v56 = vpop.xlane.xlu1 %5091 }
0x1bb2   :  { %v5099_v59 = vsub.f32 %v5083_v4, %v5096_v54  ;;  %v5097_v49 = vmul.f32 0.015625, %v5092_v56 }
0x1bb4   :  { %v5100_v18 = vsub.f32 %v5084_v7, %v5097_v49  ;;  %v5102_v53 = vmul.f32 %v5099_v59, %v5099_v59 }
0x1bb6   :  { %v5105_v24 = vsel %vm400_vm0, %v5102_v53, 0.0  ;;  %v5103_v57 = vmul.f32 %v5100_v18, %v5100_v18 }
0x1bb7   :  { %5106 = vadd.xlane.f32.xlu1 %v5105_v24  ;;  %v5095_v46 = vpop.xlane.xlu0 %5094 }
0x1bb8   :  { %v5098_v45 = vmul.f32 0.015625, %v5095_v46  ;;  %v5108_v8 = vsel %vm400_vm0, %v5103_v57, 0.0 }
0x1bb9   :  { %5109 = vadd.xlane.f32.xlu0 %v5108_v8 }
0x1bba   :  { %v5101_v62 = vsub.f32 %v5085_v16, %v5098_v45 }
0x1bbc   :  { %v5104_v43 = vmul.f32 %v5101_v62, %v5101_v62 }
0x1bbe   :  { %v5111_v35 = vsel %vm400_vm0, %v5104_v43, 0.0 }
0x1bbf   :  { %5112 = vadd.xlane.f32.xlu1 %v5111_v35 }
0x1c44   :  { %v5107_v39 = vpop.xlane.xlu1 %5106 }
0x1c45   :  { %v5114_v33 = vmul.f32 0.015625, %v5107_v39 }
0x1c46   :  { %v5110_v5 = vpop.xlane.xlu0 %5109 }
0x1c47   :  { %v5117_v42 = vadd.f32 1e-12, %v5114_v33  ;;  %v5115_v61 = vmul.f32 0.015625, %v5110_v5 }
0x1c49   :  { %6925 = vrsqrt.f32 %v5117_v42  ;;  %v5118_v37 = vadd.f32 1e-12, %v5115_v61 }
0x1c4b   :  { %6927 = vrsqrt.f32 %v5118_v37 }
0x1c4c   :  { %v5113_v9 = vpop.xlane.xlu1 %5112 }
0x1c4d   :  { %v5116_v47 = vmul.f32 0.015625, %v5113_v9 }
0x1c4f   :  { %v5119_v55 = vadd.f32 1e-12, %v5116_v47 }
0x1c51   :  { %6929 = vrsqrt.f32 %v5119_v55 }
0x1c53   :  { %v6926_v26 = vpop.eup %6925 }
0x1c54   :  { %v5123_v28 = vmul.f32 %v6926_v26, %v5099_v59 }
0x1c55   :  { %v6928_v60 = vpop.eup %6927 }
0x1c56   :  { %v5124_v6 = vmul.f32 %v6928_v60, %v5100_v18  ;;  %v5130_v22 = vmul.f32 %v5129_v40, %v5123_v28 }
0x1c58   :  { %v5131_v36 = vmul.f32 %v5129_v40, %v5124_v6  ;;  %v5137_v34 = vadd.f32 %v5136_v2, %v5130_v22 }
0x1c5a   :  { %v5138_v15 = vadd.f32 %v5136_v2, %v5131_v36 }
0x1c5b   :  { %v6930_v21 = vpop.eup %6929 }
0x1c5c   :  { %v6490_v19 = vpack.c.bf16 %v5138_v15, %v5137_v34  ;;  %v5125_v32 = vmul.f32 %v6930_v21, %v5101_v62 }
0x1c5e   :  { %6491 = vmatpush3.bf16.msra.mxu0 %v6490_v19  ;;  %v5132_v13 = vmul.f32 %v5129_v40, %v5125_v32 }
0x1c5f   :  { %6424 = vmatprep.subr.mxu0 %v6963_v17 }
0x1c60   :  { %v5139_v23 = vadd.f32 %v5136_v2, %v5132_v13 }
0x1c62   :  { %6425 = vmatpush3.msra.mxu0 %v5139_v23 }
0x1c63   :  { %6427 = vmatmul.mubr.msk.f32.vlgmr.msra.gmra.mrb[132].mxu0 %vm1151_vm2, %v5140_v27  ;;  %6429 = vmatprep.subr.bf16.mxu0 %v6963_v17 }
0x1c64   :  { %6430 = vmatpush3.bf16.msra.mxu0 %v6777_v12  ;;  %6437 = vmatprep.mubr.msk.bf16.mxu0 %vm6962_vm1, %v6963_v17 }
0x1c65   :  { %6431 = vmatprep.subr.bf16.mxu0 %v6963_v17 }
0x1c68   :  { %6432 = vmatpush3.bf16.msra.mxu0 %v6778_v31 }
0x1c69   :  { %6433 = vmatprep.subr.bf16.mxu0 %v6963_v17 }
0x1c6c   :  { %6434 = vmatpush3.bf16.msra.mxu0 %v6779_v0 }
0x1c6d   :  { %6435 = vmatprep.subr.bf16.mxu0 %v6963_v17 }
0x1c70   :  { %6436 = vmatpush3.bf16.msra.mxu0 %v6780_v63 }
0x1d36   :  { %v5210_v50 = vpop.f32.mrb[132].mxu0 }
0x1d37   :  { %v5214_v1 = vpack.c.bf16 %v5210_v50, %v5210_v50  ;;  %v6428_v14 = vpop.f32.mrb[133].mxu0 }
0x1d39   :  { %6438 = vmatmul.mubr.msk.bf16.vlgmr.msra.gmra.mrb[136].mxu0 %vm400_vm0, %v5214_v1 }
0x1e0c   :  { %v5291_v30 = vpop.f32.mrb[136].mxu0 }
0x1e0d   :  { %v5292_v51 = vadd.f32 %v5745_v3, %v5291_v30  ;;  %v6439_v4 = vpop.f32.mrb[137].mxu0 }
0x1e0e   :  { %v5294_v17 = vpop.f32.mrb[138].mxu0 }
0x1e0f   :  { %5297 = vst [vmem:[#allocation2] sm:$0x3] %v5292_v51  ;;  %v6440_v11 = vpop.f32.mrb[139].mxu0 }
0x1e10   :  { %6947 = shalt.err (!%p6944_p4)
}
0x1e11   :  { %s6948_s14 = scalar_lea.hbm %s8612_s15, 32 }
0x1e12   :  { %p6949_p5 = scmp.ne.s32.totalorder %s8612_s15, %s6948_s14  ;;  %p6952_p6 = scmp.lt.u32.totalorder %s6948_s14, %s8612_s15 }
0x1e14   :  { %p6954_p7 = pnand %p6952_p6, %p6949_p5 }
0x1e16   :  { %6957 = shalt.err (!%p6954_p7)
}
0x1e17   :  { %5307 = dma.vmem_to_hbm [thread:$0]  %s5305_s2, 32, %s8612_s15, [#allocation3]  }
0x1e18   :  { %6958 = dma.done.wait [#allocation3], 32  }
0x1e19   :  { %6959 = vsyncadd [#allocation3], 4294967264 }
0x1e1a   :  { %5311 = vsyncpa [#allocation3], 1 }

</bundles_post_ra>
